<compile_context>
chip_gen: v5e
topology: v5e:2x2
jax: 0.10.0
libtpu: 0.0.40
codegen_flags: <defaults>
</compile_context>

<pallas_src>
import math

import jax
import jax.numpy as jnp
from jax import lax
from jax.experimental import pallas as pl
from jax.experimental.pallas import tpu as pltpu


# ------------------------------------------------------------------ fused LeNet kernel
def _lenet_kernel(p1_ref, w1_ref, b1_ref, s1_ref, w2_ref, b2_ref, s2_ref,
                  fw1_ref, fb1_ref, fw2_ref, fb2_ref, fw3_ref, fb3_ref,
                  o_ref,
                  y1_s, pool1_s, p2_s, y2_s, pool2_s, flat_s):
    """One batch element of LeNet, end to end.

    Flat lane-dense layouts (channels x flat_spatial):
      conv1 out : (6, 896)  = 28 rows * 32 row-stride  (cols with ow < 28 valid)
      pool1 out : (6, 200)  = 14 rows * 14 row-stride  (+ 4 zero pad cols)
      conv2 out : (16, 140) = 10 rows * 14 row-stride  (cols with ow < 10 valid)
      pool2 out : (16, 25)  =  5 rows *  5 row-stride
    2x2 max-pool = max of 4 shifted views + 0/1 selection matmul (exact, runs on MXU).
    """
    f32 = jnp.float32

    # ---- conv1: single MXU matmul on wrapper-packed im2col patches ------------------
    y1 = jnp.dot(w1_ref[...], p1_ref[0], preferred_element_type=f32)        # (6, 896)
    y1_s[...] = jnp.maximum(y1 + b1_ref[...], 0.0)

    # ---- pool1 (2x2 max) -------------------------------------------------------------
    hv1 = jnp.maximum(jnp.maximum(y1_s[:, 0:863], y1_s[:, 1:864]),
                      jnp.maximum(y1_s[:, 32:895], y1_s[:, 33:896]))         # (6, 863)
    pool1_s[...] = jnp.dot(hv1, s1_ref[...], preferred_element_type=f32)     # (6, 200)

    # ---- conv2: assemble im2col rows (order kh, kw, ci) from the flat activation ----
    for kh in range(5):
        for kw in range(5):
            r = (kh * 5 + kw) * 6
            s = kh * 14 + kw
            p2_s[r:r + 6, :] = pool1_s[:, s:s + 140]
    y2 = jnp.dot(w2_ref[...], p2_s[...], preferred_element_type=f32)         # (16, 140)
    y2_s[...] = jnp.maximum(y2 + b2_ref[...], 0.0)

    # ---- pool2 (2x2 max) -------------------------------------------------------------
    hv2 = jnp.maximum(jnp.maximum(y2_s[:, 0:125], y2_s[:, 1:126]),
                      jnp.maximum(y2_s[:, 14:139], y2_s[:, 15:140]))         # (16, 125)
    pool2_s[...] = jnp.dot(hv2, s2_ref[...], preferred_element_type=f32)     # (16, 25)

    # ---- flatten to (1, 400) in NCHW (c, h, w) order == torch .view(-1, 400) ---------
    for c in range(16):
        flat_s[0:1, 25 * c:25 * (c + 1)] = pool2_s[c:c + 1, :]

    # ---- fused FC stack (zero-padded to lane width 128; pad lanes stay exact zeros) --
    h = flat_s[...]                                                           # (1, 400)
    h = jnp.maximum(jnp.dot(h, fw1_ref[...], preferred_element_type=f32) + fb1_ref[...], 0.0)
    h = jnp.maximum(jnp.dot(h, fw2_ref[...], preferred_element_type=f32) + fb2_ref[...], 0.0)
    o_ref[0] = jnp.dot(h, fw3_ref[...], preferred_element_type=f32) + fb3_ref[...]


# ---------------------------------------------------------------------- wrapper-side prep
def _pool_selectors():
    """0/1 matrices that pick the even-(row,col) entries of the shifted-max activations."""
    i14 = jnp.arange(14)
    r1 = (64 * i14[:, None] + 2 * i14[None, :]).reshape(-1)
    c1 = (14 * i14[:, None] + i14[None, :]).reshape(-1)
    s1 = jnp.zeros((863, 200), jnp.float32).at[r1, c1].set(1.0)

    i5 = jnp.arange(5)
    r2 = (28 * i5[:, None] + 2 * i5[None, :]).reshape(-1)
    c2 = (5 * i5[:, None] + i5[None, :]).reshape(-1)
    s2 = jnp.zeros((125, 25), jnp.float32).at[r2, c2].set(1.0)
    return s1, s2


def lenet_apply(params, x):
    """x: (N, 1, 32, 32) f32 -> logits (N, 10).  One fused Pallas call for the whole net."""
    N = x.shape[0]

    # conv1 im2col patches (full-width trick: each patch row is one contiguous slice of
    # the zero-padded flat image; columns with ow >= 28 are garbage and never selected).
    xf = jnp.pad(x.reshape(N, 32 * 32), ((0, 0), (0, 128)))                 # (N, 1152)
    p1 = jnp.stack([xf[:, kh * 32 + kw: kh * 32 + kw + 896]
                    for kh in range(5) for kw in range(5)], axis=1)         # (N, 25, 896)

    # conv weights as (Cout, K) matmul operands; column order matches the patch rows.
    w1m = params["conv1_w"].transpose(0, 2, 3, 1).reshape(6, 25)            # (kh, kw, ci)
    w2m = params["conv2_w"].transpose(0, 2, 3, 1).reshape(16, 150)          # (kh, kw, ci)
    b1 = params["conv1_b"].reshape(6, 1)
    b2 = params["conv2_b"].reshape(16, 1)
    s1, s2 = _pool_selectors()

    # FC weights zero-padded to lane width 128 (padded lanes stay exactly zero).
    fw1 = jnp.pad(params["fc1_w"], ((0, 0), (0, 8)))                        # (400, 128)
    fb1 = jnp.pad(params["fc1_b"], (0, 8)).reshape(1, 128)
    fw2 = jnp.pad(params["fc2_w"], ((0, 8), (0, 44)))                       # (128, 128)
    fb2 = jnp.pad(params["fc2_b"], (0, 44)).reshape(1, 128)
    fw3 = jnp.pad(params["fc3_w"], ((0, 44), (0, 118)))                     # (128, 128)
    fb3 = jnp.pad(params["fc3_b"], (0, 118)).reshape(1, 128)

    out = pl.pallas_call(
        _lenet_kernel,
        out_shape=jax.ShapeDtypeStruct((N, 1, 128), jnp.float32),
        grid=(N,),
        in_specs=[pl.BlockSpec((1, 25, 896), lambda n: (n, 0, 0))]
                 + [pl.BlockSpec(memory_space=pltpu.MemorySpace.VMEM)] * 12,
        out_specs=pl.BlockSpec((1, 1, 128), lambda n: (n, 0, 0)),
        scratch_shapes=[
            pltpu.VMEM((6, 896), jnp.float32),    # conv1 activation
            pltpu.VMEM((6, 200), jnp.float32),    # pool1 activation (flat, stride 14)
            pltpu.VMEM((150, 140), jnp.float32),  # conv2 im2col patches
            pltpu.VMEM((16, 140), jnp.float32),   # conv2 activation
            pltpu.VMEM((16, 25), jnp.float32),    # pool2 activation
            pltpu.VMEM((1, 400), jnp.float32),    # flattened FC input
        ],
        compiler_params=pltpu.CompilerParams(dimension_semantics=("parallel",)),
    )(p1, w1m, b1, s1, w2m, b2, s2, fw1, fb1, fw2, fb2, fw3, fb3)

    return out[:, 0, :10]


# ---------------------------------------------------------------------- Net "module"
def check_features(x):
    """Equivalent of Net.check_features: x.size()[1:]."""
    return tuple(x.shape[1:])


def num_flat_features(x):
    n = 1
    for s in x.shape[1:]:
        n *= s
    return n


def net_forward(x):
    # Mirrors Net.forward(): returns x.size()[1:].  (The original also prints
    # 'hello from forward'; omitted so stdout is exactly "KERNEL_OK".)
    return check_features(x)


def init_params(key):
    """Deterministic parameters with the shapes declared in Net.__init__ (PyTorch-style init)."""
    ks = jax.random.split(key, 10)

    def uni(k, shape, fan_in):
        bound = 1.0 / math.sqrt(fan_in)
        return jax.random.uniform(k, shape, jnp.float32, -bound, bound)

    return {
        "conv1_w": uni(ks[0], (6, 1, 5, 5), 1 * 5 * 5),
        "conv1_b": uni(ks[1], (6,), 1 * 5 * 5),
        "conv2_w": uni(ks[2], (16, 6, 5, 5), 6 * 5 * 5),
        "conv2_b": uni(ks[3], (16,), 6 * 5 * 5),
        "fc1_w": uni(ks[4], (16 * 5 * 5, 120), 16 * 5 * 5),
        "fc1_b": uni(ks[5], (120,), 16 * 5 * 5),
        "fc2_w": uni(ks[6], (120, 84), 120),
        "fc2_b": uni(ks[7], (84,), 120),
        "fc3_w": uni(ks[8], (84, 10), 84),
        "fc3_b": uni(ks[9], (10,), 84),
    }


# -------------------------------------------------------------------------- reference
def _max_pool_2x2_ref(x):
    N, C, H, W = x.shape
    return x.reshape(N, C, H // 2, 2, W // 2, 2).max(axis=(3, 5))


def _reference(params, x):
    def conv(x, w, b):
        y = lax.conv_general_dilated(
            x, w, (1, 1), "VALID",
            dimension_numbers=("NCHW", "OIHW", "NCHW"),
            precision=lax.Precision.HIGHEST)
        return jnp.maximum(y + b[None, :, None, None], 0.0)

    h = _max_pool_2x2_ref(conv(x, params["conv1_w"], params["conv1_b"]))
    h = _max_pool_2x2_ref(conv(h, params["conv2_w"], params["conv2_b"]))
    h = h.reshape(h.shape[0], -1)
    h = jnp.maximum(jnp.dot(h, params["fc1_w"], precision=lax.Precision.HIGHEST) + params["fc1_b"], 0.0)
    h = jnp.maximum(jnp.dot(h, params["fc2_w"], precision=lax.Precision.HIGHEST) + params["fc2_b"], 0.0)
    return jnp.dot(h, params["fc3_w"], precision=lax.Precision.HIGHEST) + params["fc3_b"]


if __name__ == "__main__":
    key = jax.random.PRNGKey(0)
    kx, kp = jax.random.split(key)

    # Same layout as the PyTorch example input (1, 1, 32, 32); small batch of 2.
    x = jax.random.normal(kx, (2, 1, 32, 32), jnp.float32)
    params = init_params(kp)

    # Exact forward() semantics: returns x.size()[1:]
    feats = net_forward(x)
    assert feats == (1, 32, 32), feats

    # Run the fused Pallas kernel for the layers declared in Net.__init__
    logits = jax.block_until_ready(jax.jit(lenet_apply)(params, x))
    assert logits.shape == (2, 10)

    ref = _reference(params, x)
    # f32 MXU accumulation sits far inside this tolerance.
    assert jnp.allclose(logits, ref, rtol=2e-2, atol=2e-2), (logits, ref)

    print("KERNEL_OK")
</pallas_src>

<mosaic_0001>
module attributes {stable_mosaic.version = 11 : i64} {
  func.func @_lenet_kernel(%arg0: i32, %arg1: memref<1x25x896xf32, #tpu.memory_space<vmem>>, %arg2: memref<6x25xf32, #tpu.memory_space<vmem>>, %arg3: memref<6x1xf32, #tpu.memory_space<vmem>>, %arg4: memref<863x200xf32, #tpu.memory_space<vmem>>, %arg5: memref<16x150xf32, #tpu.memory_space<vmem>>, %arg6: memref<16x1xf32, #tpu.memory_space<vmem>>, %arg7: memref<125x25xf32, #tpu.memory_space<vmem>>, %arg8: memref<400x128xf32, #tpu.memory_space<vmem>>, %arg9: memref<1x128xf32, #tpu.memory_space<vmem>>, %arg10: memref<128x128xf32, #tpu.memory_space<vmem>>, %arg11: memref<1x128xf32, #tpu.memory_space<vmem>>, %arg12: memref<128x128xf32, #tpu.memory_space<vmem>>, %arg13: memref<1x128xf32, #tpu.memory_space<vmem>>, %arg14: memref<1x1x128xf32, #tpu.memory_space<vmem>>, %arg15: memref<6x896xf32, #tpu.memory_space<vmem>>, %arg16: memref<6x200xf32, #tpu.memory_space<vmem>>, %arg17: memref<150x140xf32, #tpu.memory_space<vmem>>, %arg18: memref<16x140xf32, #tpu.memory_space<vmem>>, %arg19: memref<16x25xf32, #tpu.memory_space<vmem>>, %arg20: memref<1x400xf32, #tpu.memory_space<vmem>>) attributes {dimension_semantics = [#tpu.dimension_semantics<parallel>], iteration_bounds = array<i64: 2>, scalar_prefetch = 0 : i64, scratch_operands = 6 : i64, tpu.core_type = #tpu.core_type<tc>, window_params = [{transform_indices = @transform_0, window_bounds = array<i64: 1, 25, 896>}, {pipeline_mode = #tpu.pipeline_mode<synchronous>, transform_indices = @transform_1, window_bounds = array<i64: 6, 25>}, {pipeline_mode = #tpu.pipeline_mode<synchronous>, transform_indices = @transform_2, window_bounds = array<i64: 6, 1>}, {pipeline_mode = #tpu.pipeline_mode<synchronous>, transform_indices = @transform_3, window_bounds = array<i64: 863, 200>}, {pipeline_mode = #tpu.pipeline_mode<synchronous>, transform_indices = @transform_4, window_bounds = array<i64: 16, 150>}, {pipeline_mode = #tpu.pipeline_mode<synchronous>, transform_indices = @transform_5, window_bounds = array<i64: 16, 1>}, {pipeline_mode = #tpu.pipeline_mode<synchronous>, transform_indices = @transform_6, window_bounds = array<i64: 125, 25>}, {pipeline_mode = #tpu.pipeline_mode<synchronous>, transform_indices = @transform_7, window_bounds = array<i64: 400, 128>}, {pipeline_mode = #tpu.pipeline_mode<synchronous>, transform_indices = @transform_8, window_bounds = array<i64: 1, 128>}, {pipeline_mode = #tpu.pipeline_mode<synchronous>, transform_indices = @transform_9, window_bounds = array<i64: 128, 128>}, {pipeline_mode = #tpu.pipeline_mode<synchronous>, transform_indices = @transform_10, window_bounds = array<i64: 1, 128>}, {pipeline_mode = #tpu.pipeline_mode<synchronous>, transform_indices = @transform_11, window_bounds = array<i64: 128, 128>}, {pipeline_mode = #tpu.pipeline_mode<synchronous>, transform_indices = @transform_12, window_bounds = array<i64: 1, 128>}, {transform_indices = @transform_13, window_bounds = array<i64: 1, 1, 128>}]} {
    %c0 = arith.constant 0 : index
    %c0_0 = arith.constant 0 : index
    %0 = vector.load %arg2[%c0, %c0_0] : memref<6x25xf32, #tpu.memory_space<vmem>>, vector<6x25xf32>
    %c0_1 = arith.constant 0 : index
    %c0_2 = arith.constant 0 : index
    %c0_3 = arith.constant 0 : index
    %1 = vector.load %arg1[%c0_1, %c0_2, %c0_3] : memref<1x25x896xf32, #tpu.memory_space<vmem>>, vector<1x25x896xf32>
    %2 = vector.shape_cast %1 : vector<1x25x896xf32> to vector<25x896xf32>
    %cst = arith.constant dense<0.000000e+00> : vector<6x896xf32>
    %3 = tpu.matmul %0, %2, %cst {dimension_numbers = #tpu.dot_dimension_numbers<[1], [0], [0], [1], [0, 0, 1, 1], [], []>} : vector<6x25xf32>, vector<25x896xf32>, vector<6x896xf32> -> vector<6x896xf32>
    %c0_4 = arith.constant 0 : index
    %c0_5 = arith.constant 0 : index
    %4 = vector.load %arg3[%c0_4, %c0_5] : memref<6x1xf32, #tpu.memory_space<vmem>>, vector<6x1xf32>
    %5 = vector.broadcast %4 : vector<6x1xf32> to vector<6x896xf32>
    %6 = arith.addf %3, %5 : vector<6x896xf32>
    %cst_6 = arith.constant 0.000000e+00 : f32
    %7 = vector.broadcast %cst_6 : f32 to vector<6x896xf32>
    %8 = arith.maximumf %6, %7 : vector<6x896xf32>
    %c0_7 = arith.constant 0 : index
    %c0_8 = arith.constant 0 : index
    %9 = vector.load %arg15[%c0_7, %c0_8] : memref<6x896xf32, #tpu.memory_space<vmem>>, vector<6x896xf32>
    tpu.vector_store %arg15[%c0_7, %c0_8], %8 {strides = array<i32>} : memref<6x896xf32, #tpu.memory_space<vmem>>, vector<6x896xf32>,
    %c0_9 = arith.constant 0 : index
    %c0_10 = arith.constant 0 : index
    %10 = vector.load %arg15[%c0_9, %c0_10] : memref<6x896xf32, #tpu.memory_space<vmem>>, vector<6x863xf32>
    %c0_11 = arith.constant 0 : index
    %c1 = arith.constant 1 : index
    %11 = vector.load %arg15[%c0_11, %c1] : memref<6x896xf32, #tpu.memory_space<vmem>>, vector<6x863xf32>
    %12 = arith.maximumf %10, %11 : vector<6x863xf32>
    %c0_12 = arith.constant 0 : index
    %c32 = arith.constant 32 : index
    %13 = vector.load %arg15[%c0_12, %c32] : memref<6x896xf32, #tpu.memory_space<vmem>>, vector<6x863xf32>
    %c0_13 = arith.constant 0 : index
    %c33 = arith.constant 33 : index
    %14 = vector.load %arg15[%c0_13, %c33] : memref<6x896xf32, #tpu.memory_space<vmem>>, vector<6x863xf32>
    %15 = arith.maximumf %13, %14 : vector<6x863xf32>
    %16 = arith.maximumf %12, %15 : vector<6x863xf32>
    %c0_14 = arith.constant 0 : index
    %c0_15 = arith.constant 0 : index
    %17 = vector.load %arg4[%c0_14, %c0_15] : memref<863x200xf32, #tpu.memory_space<vmem>>, vector<863x200xf32>
    %cst_16 = arith.constant dense<0.000000e+00> : vector<6x200xf32>
    %18 = tpu.matmul %16, %17, %cst_16 {dimension_numbers = #tpu.dot_dimension_numbers<[1], [0], [0], [1], [0, 0, 1, 1], [], []>} : vector<6x863xf32>, vector<863x200xf32>, vector<6x200xf32> -> vector<6x200xf32>
    %c0_17 = arith.constant 0 : index
    %c0_18 = arith.constant 0 : index
    %19 = vector.load %arg16[%c0_17, %c0_18] : memref<6x200xf32, #tpu.memory_space<vmem>>, vector<6x200xf32>
    tpu.vector_store %arg16[%c0_17, %c0_18], %18 {strides = array<i32>} : memref<6x200xf32, #tpu.memory_space<vmem>>, vector<6x200xf32>,
    %c0_19 = arith.constant 0 : index
    %c0_20 = arith.constant 0 : index
    %20 = vector.load %arg16[%c0_19, %c0_20] : memref<6x200xf32, #tpu.memory_space<vmem>>, vector<6x140xf32>
    %c0_21 = arith.constant 0 : index
    %c0_22 = arith.constant 0 : index
    %21 = vector.load %arg17[%c0_21, %c0_22] : memref<150x140xf32, #tpu.memory_space<vmem>>, vector<6x140xf32>
    tpu.vector_store %arg17[%c0_21, %c0_22], %20 {strides = array<i32>} : memref<150x140xf32, #tpu.memory_space<vmem>>, vector<6x140xf32>,
    %c0_23 = arith.constant 0 : index
    %c1_24 = arith.constant 1 : index
    %22 = vector.load %arg16[%c0_23, %c1_24] : memref<6x200xf32, #tpu.memory_space<vmem>>, vector<6x140xf32>
    %c6 = arith.constant 6 : index
    %c0_25 = arith.constant 0 : index
    %23 = vector.load %arg17[%c6, %c0_25] : memref<150x140xf32, #tpu.memory_space<vmem>>, vector<6x140xf32>
    tpu.vector_store %arg17[%c6, %c0_25], %22 {strides = array<i32>} : memref<150x140xf32, #tpu.memory_space<vmem>>, vector<6x140xf32>,
    %c0_26 = arith.constant 0 : index
    %c2 = arith.constant 2 : index
    %24 = vector.load %arg16[%c0_26, %c2] : memref<6x200xf32, #tpu.memory_space<vmem>>, vector<6x140xf32>
    %c12 = arith.constant 12 : index
    %c0_27 = arith.constant 0 : index
    %25 = vector.load %arg17[%c12, %c0_27] : memref<150x140xf32, #tpu.memory_space<vmem>>, vector<6x140xf32>
    tpu.vector_store %arg17[%c12, %c0_27], %24 {strides = array<i32>} : memref<150x140xf32, #tpu.memory_space<vmem>>, vector<6x140xf32>,
    %c0_28 = arith.constant 0 : index
    %c3 = arith.constant 3 : index
    %26 = vector.load %arg16[%c0_28, %c3] : memref<6x200xf32, #tpu.memory_space<vmem>>, vector<6x140xf32>
    %c18 = arith.constant 18 : index
    %c0_29 = arith.constant 0 : index
    %27 = vector.load %arg17[%c18, %c0_29] : memref<150x140xf32, #tpu.memory_space<vmem>>, vector<6x140xf32>
    tpu.vector_store %arg17[%c18, %c0_29], %26 {strides = array<i32>} : memref<150x140xf32, #tpu.memory_space<vmem>>, vector<6x140xf32>,
    %c0_30 = arith.constant 0 : index
    %c4 = arith.constant 4 : index
    %28 = vector.load %arg16[%c0_30, %c4] : memref<6x200xf32, #tpu.memory_space<vmem>>, vector<6x140xf32>
    %c24 = arith.constant 24 : index
    %c0_31 = arith.constant 0 : index
    %29 = vector.load %arg17[%c24, %c0_31] : memref<150x140xf32, #tpu.memory_space<vmem>>, vector<6x140xf32>
    tpu.vector_store %arg17[%c24, %c0_31], %28 {strides = array<i32>} : memref<150x140xf32, #tpu.memory_space<vmem>>, vector<6x140xf32>,
    %c0_32 = arith.constant 0 : index
    %c14 = arith.constant 14 : index
    %30 = vector.load %arg16[%c0_32, %c14] : memref<6x200xf32, #tpu.memory_space<vmem>>, vector<6x140xf32>
    %c30 = arith.constant 30 : index
    %c0_33 = arith.constant 0 : index
    %31 = vector.load %arg17[%c30, %c0_33] : memref<150x140xf32, #tpu.memory_space<vmem>>, vector<6x140xf32>
    tpu.vector_store %arg17[%c30, %c0_33], %30 {strides = array<i32>} : memref<150x140xf32, #tpu.memory_space<vmem>>, vector<6x140xf32>,
    %c0_34 = arith.constant 0 : index
    %c15 = arith.constant 15 : index
    %32 = vector.load %arg16[%c0_34, %c15] : memref<6x200xf32, #tpu.memory_space<vmem>>, vector<6x140xf32>
    %c36 = arith.constant 36 : index
    %c0_35 = arith.constant 0 : index
    %33 = vector.load %arg17[%c36, %c0_35] : memref<150x140xf32, #tpu.memory_space<vmem>>, vector<6x140xf32>
    tpu.vector_store %arg17[%c36, %c0_35], %32 {strides = array<i32>} : memref<150x140xf32, #tpu.memory_space<vmem>>, vector<6x140xf32>,
    %c0_36 = arith.constant 0 : index
    %c16 = arith.constant 16 : index
    %34 = vector.load %arg16[%c0_36, %c16] : memref<6x200xf32, #tpu.memory_space<vmem>>, vector<6x140xf32>
    %c42 = arith.constant 42 : index
    %c0_37 = arith.constant 0 : index
    %35 = vector.load %arg17[%c42, %c0_37] : memref<150x140xf32, #tpu.memory_space<vmem>>, vector<6x140xf32>
    tpu.vector_store %arg17[%c42, %c0_37], %34 {strides = array<i32>} : memref<150x140xf32, #tpu.memory_space<vmem>>, vector<6x140xf32>,
    %c0_38 = arith.constant 0 : index
    %c17 = arith.constant 17 : index
    %36 = vector.load %arg16[%c0_38, %c17] : memref<6x200xf32, #tpu.memory_space<vmem>>, vector<6x140xf32>
    %c48 = arith.constant 48 : index
    %c0_39 = arith.constant 0 : index
    %37 = vector.load %arg17[%c48, %c0_39] : memref<150x140xf32, #tpu.memory_space<vmem>>, vector<6x140xf32>
    tpu.vector_store %arg17[%c48, %c0_39], %36 {strides = array<i32>} : memref<150x140xf32, #tpu.memory_space<vmem>>, vector<6x140xf32>,
    %c0_40 = arith.constant 0 : index
    %c18_41 = arith.constant 18 : index
    %38 = vector.load %arg16[%c0_40, %c18_41] : memref<6x200xf32, #tpu.memory_space<vmem>>, vector<6x140xf32>
    %c54 = arith.constant 54 : index
    %c0_42 = arith.constant 0 : index
    %39 = vector.load %arg17[%c54, %c0_42] : memref<150x140xf32, #tpu.memory_space<vmem>>, vector<6x140xf32>
    tpu.vector_store %arg17[%c54, %c0_42], %38 {strides = array<i32>} : memref<150x140xf32, #tpu.memory_space<vmem>>, vector<6x140xf32>,
    %c0_43 = arith.constant 0 : index
    %c28 = arith.constant 28 : index
    %40 = vector.load %arg16[%c0_43, %c28] : memref<6x200xf32, #tpu.memory_space<vmem>>, vector<6x140xf32>
    %c60 = arith.constant 60 : index
    %c0_44 = arith.constant 0 : index
    %41 = vector.load %arg17[%c60, %c0_44] : memref<150x140xf32, #tpu.memory_space<vmem>>, vector<6x140xf32>
    tpu.vector_store %arg17[%c60, %c0_44], %40 {strides = array<i32>} : memref<150x140xf32, #tpu.memory_space<vmem>>, vector<6x140xf32>,
    %c0_45 = arith.constant 0 : index
    %c29 = arith.constant 29 : index
    %42 = vector.load %arg16[%c0_45, %c29] : memref<6x200xf32, #tpu.memory_space<vmem>>, vector<6x140xf32>
    %c66 = arith.constant 66 : index
    %c0_46 = arith.constant 0 : index
    %43 = vector.load %arg17[%c66, %c0_46] : memref<150x140xf32, #tpu.memory_space<vmem>>, vector<6x140xf32>
    tpu.vector_store %arg17[%c66, %c0_46], %42 {strides = array<i32>} : memref<150x140xf32, #tpu.memory_space<vmem>>, vector<6x140xf32>,
    %c0_47 = arith.constant 0 : index
    %c30_48 = arith.constant 30 : index
    %44 = vector.load %arg16[%c0_47, %c30_48] : memref<6x200xf32, #tpu.memory_space<vmem>>, vector<6x140xf32>
    %c72 = arith.constant 72 : index
    %c0_49 = arith.constant 0 : index
    %45 = vector.load %arg17[%c72, %c0_49] : memref<150x140xf32, #tpu.memory_space<vmem>>, vector<6x140xf32>
    tpu.vector_store %arg17[%c72, %c0_49], %44 {strides = array<i32>} : memref<150x140xf32, #tpu.memory_space<vmem>>, vector<6x140xf32>,
    %c0_50 = arith.constant 0 : index
    %c31 = arith.constant 31 : index
    %46 = vector.load %arg16[%c0_50, %c31] : memref<6x200xf32, #tpu.memory_space<vmem>>, vector<6x140xf32>
    %c78 = arith.constant 78 : index
    %c0_51 = arith.constant 0 : index
    %47 = vector.load %arg17[%c78, %c0_51] : memref<150x140xf32, #tpu.memory_space<vmem>>, vector<6x140xf32>
    tpu.vector_store %arg17[%c78, %c0_51], %46 {strides = array<i32>} : memref<150x140xf32, #tpu.memory_space<vmem>>, vector<6x140xf32>,
    %c0_52 = arith.constant 0 : index
    %c32_53 = arith.constant 32 : index
    %48 = vector.load %arg16[%c0_52, %c32_53] : memref<6x200xf32, #tpu.memory_space<vmem>>, vector<6x140xf32>
    %c84 = arith.constant 84 : index
    %c0_54 = arith.constant 0 : index
    %49 = vector.load %arg17[%c84, %c0_54] : memref<150x140xf32, #tpu.memory_space<vmem>>, vector<6x140xf32>
    tpu.vector_store %arg17[%c84, %c0_54], %48 {strides = array<i32>} : memref<150x140xf32, #tpu.memory_space<vmem>>, vector<6x140xf32>,
    %c0_55 = arith.constant 0 : index
    %c42_56 = arith.constant 42 : index
    %50 = vector.load %arg16[%c0_55, %c42_56] : memref<6x200xf32, #tpu.memory_space<vmem>>, vector<6x140xf32>
    %c90 = arith.constant 90 : index
    %c0_57 = arith.constant 0 : index
    %51 = vector.load %arg17[%c90, %c0_57] : memref<150x140xf32, #tpu.memory_space<vmem>>, vector<6x140xf32>
    tpu.vector_store %arg17[%c90, %c0_57], %50 {strides = array<i32>} : memref<150x140xf32, #tpu.memory_space<vmem>>, vector<6x140xf32>,
    %c0_58 = arith.constant 0 : index
    %c43 = arith.constant 43 : index
    %52 = vector.load %arg16[%c0_58, %c43] : memref<6x200xf32, #tpu.memory_space<vmem>>, vector<6x140xf32>
    %c96 = arith.constant 96 : index
    %c0_59 = arith.constant 0 : index
    %53 = vector.load %arg17[%c96, %c0_59] : memref<150x140xf32, #tpu.memory_space<vmem>>, vector<6x140xf32>
    tpu.vector_store %arg17[%c96, %c0_59], %52 {strides = array<i32>} : memref<150x140xf32, #tpu.memory_space<vmem>>, vector<6x140xf32>,
    %c0_60 = arith.constant 0 : index
    %c44 = arith.constant 44 : index
    %54 = vector.load %arg16[%c0_60, %c44] : memref<6x200xf32, #tpu.memory_space<vmem>>, vector<6x140xf32>
    %c102 = arith.constant 102 : index
    %c0_61 = arith.constant 0 : index
    %55 = vector.load %arg17[%c102, %c0_61] : memref<150x140xf32, #tpu.memory_space<vmem>>, vector<6x140xf32>
    tpu.vector_store %arg17[%c102, %c0_61], %54 {strides = array<i32>} : memref<150x140xf32, #tpu.memory_space<vmem>>, vector<6x140xf32>,
    %c0_62 = arith.constant 0 : index
    %c45 = arith.constant 45 : index
    %56 = vector.load %arg16[%c0_62, %c45] : memref<6x200xf32, #tpu.memory_space<vmem>>, vector<6x140xf32>
    %c108 = arith.constant 108 : index
    %c0_63 = arith.constant 0 : index
    %57 = vector.load %arg17[%c108, %c0_63] : memref<150x140xf32, #tpu.memory_space<vmem>>, vector<6x140xf32>
    tpu.vector_store %arg17[%c108, %c0_63], %56 {strides = array<i32>} : memref<150x140xf32, #tpu.memory_space<vmem>>, vector<6x140xf32>,
    %c0_64 = arith.constant 0 : index
    %c46 = arith.constant 46 : index
    %58 = vector.load %arg16[%c0_64, %c46] : memref<6x200xf32, #tpu.memory_space<vmem>>, vector<6x140xf32>
    %c114 = arith.constant 114 : index
    %c0_65 = arith.constant 0 : index
    %59 = vector.load %arg17[%c114, %c0_65] : memref<150x140xf32, #tpu.memory_space<vmem>>, vector<6x140xf32>
    tpu.vector_store %arg17[%c114, %c0_65], %58 {strides = array<i32>} : memref<150x140xf32, #tpu.memory_space<vmem>>, vector<6x140xf32>,
    %c0_66 = arith.constant 0 : index
    %c56 = arith.constant 56 : index
    %60 = vector.load %arg16[%c0_66, %c56] : memref<6x200xf32, #tpu.memory_space<vmem>>, vector<6x140xf32>
    %c120 = arith.constant 120 : index
    %c0_67 = arith.constant 0 : index
    %61 = vector.load %arg17[%c120, %c0_67] : memref<150x140xf32, #tpu.memory_space<vmem>>, vector<6x140xf32>
    tpu.vector_store %arg17[%c120, %c0_67], %60 {strides = array<i32>} : memref<150x140xf32, #tpu.memory_space<vmem>>, vector<6x140xf32>,
    %c0_68 = arith.constant 0 : index
    %c57 = arith.constant 57 : index
    %62 = vector.load %arg16[%c0_68, %c57] : memref<6x200xf32, #tpu.memory_space<vmem>>, vector<6x140xf32>
    %c126 = arith.constant 126 : index
    %c0_69 = arith.constant 0 : index
    %63 = vector.load %arg17[%c126, %c0_69] : memref<150x140xf32, #tpu.memory_space<vmem>>, vector<6x140xf32>
    tpu.vector_store %arg17[%c126, %c0_69], %62 {strides = array<i32>} : memref<150x140xf32, #tpu.memory_space<vmem>>, vector<6x140xf32>,
    %c0_70 = arith.constant 0 : index
    %c58 = arith.constant 58 : index
    %64 = vector.load %arg16[%c0_70, %c58] : memref<6x200xf32, #tpu.memory_space<vmem>>, vector<6x140xf32>
    %c132 = arith.constant 132 : index
    %c0_71 = arith.constant 0 : index
    %65 = vector.load %arg17[%c132, %c0_71] : memref<150x140xf32, #tpu.memory_space<vmem>>, vector<6x140xf32>
    tpu.vector_store %arg17[%c132, %c0_71], %64 {strides = array<i32>} : memref<150x140xf32, #tpu.memory_space<vmem>>, vector<6x140xf32>,
    %c0_72 = arith.constant 0 : index
    %c59 = arith.constant 59 : index
    %66 = vector.load %arg16[%c0_72, %c59] : memref<6x200xf32, #tpu.memory_space<vmem>>, vector<6x140xf32>
    %c138 = arith.constant 138 : index
    %c0_73 = arith.constant 0 : index
    %67 = vector.load %arg17[%c138, %c0_73] : memref<150x140xf32, #tpu.memory_space<vmem>>, vector<6x140xf32>
    tpu.vector_store %arg17[%c138, %c0_73], %66 {strides = array<i32>} : memref<150x140xf32, #tpu.memory_space<vmem>>, vector<6x140xf32>,
    %c0_74 = arith.constant 0 : index
    %c60_75 = arith.constant 60 : index
    %68 = vector.load %arg16[%c0_74, %c60_75] : memref<6x200xf32, #tpu.memory_space<vmem>>, vector<6x140xf32>
    %c144 = arith.constant 144 : index
    %c0_76 = arith.constant 0 : index
    %69 = vector.load %arg17[%c144, %c0_76] : memref<150x140xf32, #tpu.memory_space<vmem>>, vector<6x140xf32>
    tpu.vector_store %arg17[%c144, %c0_76], %68 {strides = array<i32>} : memref<150x140xf32, #tpu.memory_space<vmem>>, vector<6x140xf32>,
    %c0_77 = arith.constant 0 : index
    %c0_78 = arith.constant 0 : index
    %70 = vector.load %arg5[%c0_77, %c0_78] : memref<16x150xf32, #tpu.memory_space<vmem>>, vector<16x150xf32>
    %c0_79 = arith.constant 0 : index
    %c0_80 = arith.constant 0 : index
    %71 = vector.load %arg17[%c0_79, %c0_80] : memref<150x140xf32, #tpu.memory_space<vmem>>, vector<150x140xf32>
    %cst_81 = arith.constant dense<0.000000e+00> : vector<16x140xf32>
    %72 = tpu.matmul %70, %71, %cst_81 {dimension_numbers = #tpu.dot_dimension_numbers<[1], [0], [0], [1], [0, 0, 1, 1], [], []>} : vector<16x150xf32>, vector<150x140xf32>, vector<16x140xf32> -> vector<16x140xf32>
    %c0_82 = arith.constant 0 : index
    %c0_83 = arith.constant 0 : index
    %73 = vector.load %arg6[%c0_82, %c0_83] : memref<16x1xf32, #tpu.memory_space<vmem>>, vector<16x1xf32>
    %74 = vector.broadcast %73 : vector<16x1xf32> to vector<16x140xf32>
    %75 = arith.addf %72, %74 : vector<16x140xf32>
    %cst_84 = arith.constant 0.000000e+00 : f32
    %76 = vector.broadcast %cst_84 : f32 to vector<16x140xf32>
    %77 = arith.maximumf %75, %76 : vector<16x140xf32>
    %c0_85 = arith.constant 0 : index
    %c0_86 = arith.constant 0 : index
    %78 = vector.load %arg18[%c0_85, %c0_86] : memref<16x140xf32, #tpu.memory_space<vmem>>, vector<16x140xf32>
    tpu.vector_store %arg18[%c0_85, %c0_86], %77 {strides = array<i32>} : memref<16x140xf32, #tpu.memory_space<vmem>>, vector<16x140xf32>,
    %c0_87 = arith.constant 0 : index
    %c0_88 = arith.constant 0 : index
    %79 = vector.load %arg18[%c0_87, %c0_88] : memref<16x140xf32, #tpu.memory_space<vmem>>, vector<16x125xf32>
    %c0_89 = arith.constant 0 : index
    %c1_90 = arith.constant 1 : index
    %80 = vector.load %arg18[%c0_89, %c1_90] : memref<16x140xf32, #tpu.memory_space<vmem>>, vector<16x125xf32>
    %81 = arith.maximumf %79, %80 : vector<16x125xf32>
    %c0_91 = arith.constant 0 : index
    %c14_92 = arith.constant 14 : index
    %82 = vector.load %arg18[%c0_91, %c14_92] : memref<16x140xf32, #tpu.memory_space<vmem>>, vector<16x125xf32>
    %c0_93 = arith.constant 0 : index
    %c15_94 = arith.constant 15 : index
    %83 = vector.load %arg18[%c0_93, %c15_94] : memref<16x140xf32, #tpu.memory_space<vmem>>, vector<16x125xf32>
    %84 = arith.maximumf %82, %83 : vector<16x125xf32>
    %85 = arith.maximumf %81, %84 : vector<16x125xf32>
    %c0_95 = arith.constant 0 : index
    %c0_96 = arith.constant 0 : index
    %86 = vector.load %arg7[%c0_95, %c0_96] : memref<125x25xf32, #tpu.memory_space<vmem>>, vector<125x25xf32>
    %cst_97 = arith.constant dense<0.000000e+00> : vector<16x25xf32>
    %87 = tpu.matmul %85, %86, %cst_97 {dimension_numbers = #tpu.dot_dimension_numbers<[1], [0], [0], [1], [0, 0, 1, 1], [], []>} : vector<16x125xf32>, vector<125x25xf32>, vector<16x25xf32> -> vector<16x25xf32>
    %c0_98 = arith.constant 0 : index
    %c0_99 = arith.constant 0 : index
    %88 = vector.load %arg19[%c0_98, %c0_99] : memref<16x25xf32, #tpu.memory_space<vmem>>, vector<16x25xf32>
    tpu.vector_store %arg19[%c0_98, %c0_99], %87 {strides = array<i32>} : memref<16x25xf32, #tpu.memory_space<vmem>>, vector<16x25xf32>,
    %c0_100 = arith.constant 0 : index
    %c0_101 = arith.constant 0 : index
    %89 = vector.load %arg19[%c0_100, %c0_101] : memref<16x25xf32, #tpu.memory_space<vmem>>, vector<1x25xf32>
    %c0_102 = arith.constant 0 : index
    %c0_103 = arith.constant 0 : index
    %90 = vector.load %arg20[%c0_102, %c0_103] : memref<1x400xf32, #tpu.memory_space<vmem>>, vector<1x25xf32>
    tpu.vector_store %arg20[%c0_102, %c0_103], %89 {strides = array<i32>} : memref<1x400xf32, #tpu.memory_space<vmem>>, vector<1x25xf32>,
    %c1_104 = arith.constant 1 : index
    %c0_105 = arith.constant 0 : index
    %91 = vector.load %arg19[%c1_104, %c0_105] : memref<16x25xf32, #tpu.memory_space<vmem>>, vector<1x25xf32>
    %c0_106 = arith.constant 0 : index
    %c25 = arith.constant 25 : index
    %92 = vector.load %arg20[%c0_106, %c25] : memref<1x400xf32, #tpu.memory_space<vmem>>, vector<1x25xf32>
    tpu.vector_store %arg20[%c0_106, %c25], %91 {strides = array<i32>} : memref<1x400xf32, #tpu.memory_space<vmem>>, vector<1x25xf32>,
    %c2_107 = arith.constant 2 : index
    %c0_108 = arith.constant 0 : index
    %93 = vector.load %arg19[%c2_107, %c0_108] : memref<16x25xf32, #tpu.memory_space<vmem>>, vector<1x25xf32>
    %c0_109 = arith.constant 0 : index
    %c50 = arith.constant 50 : index
    %94 = vector.load %arg20[%c0_109, %c50] : memref<1x400xf32, #tpu.memory_space<vmem>>, vector<1x25xf32>
    tpu.vector_store %arg20[%c0_109, %c50], %93 {strides = array<i32>} : memref<1x400xf32, #tpu.memory_space<vmem>>, vector<1x25xf32>,
    %c3_110 = arith.constant 3 : index
    %c0_111 = arith.constant 0 : index
    %95 = vector.load %arg19[%c3_110, %c0_111] : memref<16x25xf32, #tpu.memory_space<vmem>>, vector<1x25xf32>
    %c0_112 = arith.constant 0 : index
    %c75 = arith.constant 75 : index
    %96 = vector.load %arg20[%c0_112, %c75] : memref<1x400xf32, #tpu.memory_space<vmem>>, vector<1x25xf32>
    tpu.vector_store %arg20[%c0_112, %c75], %95 {strides = array<i32>} : memref<1x400xf32, #tpu.memory_space<vmem>>, vector<1x25xf32>,
    %c4_113 = arith.constant 4 : index
    %c0_114 = arith.constant 0 : index
    %97 = vector.load %arg19[%c4_113, %c0_114] : memref<16x25xf32, #tpu.memory_space<vmem>>, vector<1x25xf32>
    %c0_115 = arith.constant 0 : index
    %c100 = arith.constant 100 : index
    %98 = vector.load %arg20[%c0_115, %c100] : memref<1x400xf32, #tpu.memory_space<vmem>>, vector<1x25xf32>
    tpu.vector_store %arg20[%c0_115, %c100], %97 {strides = array<i32>} : memref<1x400xf32, #tpu.memory_space<vmem>>, vector<1x25xf32>,
    %c5 = arith.constant 5 : index
    %c0_116 = arith.constant 0 : index
    %99 = vector.load %arg19[%c5, %c0_116] : memref<16x25xf32, #tpu.memory_space<vmem>>, vector<1x25xf32>
    %c0_117 = arith.constant 0 : index
    %c125 = arith.constant 125 : index
    %100 = vector.load %arg20[%c0_117, %c125] : memref<1x400xf32, #tpu.memory_space<vmem>>, vector<1x25xf32>
    tpu.vector_store %arg20[%c0_117, %c125], %99 {strides = array<i32>} : memref<1x400xf32, #tpu.memory_space<vmem>>, vector<1x25xf32>,
    %c6_118 = arith.constant 6 : index
    %c0_119 = arith.constant 0 : index
    %101 = vector.load %arg19[%c6_118, %c0_119] : memref<16x25xf32, #tpu.memory_space<vmem>>, vector<1x25xf32>
    %c0_120 = arith.constant 0 : index
    %c150 = arith.constant 150 : index
    %102 = vector.load %arg20[%c0_120, %c150] : memref<1x400xf32, #tpu.memory_space<vmem>>, vector<1x25xf32>
    tpu.vector_store %arg20[%c0_120, %c150], %101 {strides = array<i32>} : memref<1x400xf32, #tpu.memory_space<vmem>>, vector<1x25xf32>,
    %c7 = arith.constant 7 : index
    %c0_121 = arith.constant 0 : index
    %103 = vector.load %arg19[%c7, %c0_121] : memref<16x25xf32, #tpu.memory_space<vmem>>, vector<1x25xf32>
    %c0_122 = arith.constant 0 : index
    %c175 = arith.constant 175 : index
    %104 = vector.load %arg20[%c0_122, %c175] : memref<1x400xf32, #tpu.memory_space<vmem>>, vector<1x25xf32>
    tpu.vector_store %arg20[%c0_122, %c175], %103 {strides = array<i32>} : memref<1x400xf32, #tpu.memory_space<vmem>>, vector<1x25xf32>,
    %c8 = arith.constant 8 : index
    %c0_123 = arith.constant 0 : index
    %105 = vector.load %arg19[%c8, %c0_123] : memref<16x25xf32, #tpu.memory_space<vmem>>, vector<1x25xf32>
    %c0_124 = arith.constant 0 : index
    %c200 = arith.constant 200 : index
    %106 = vector.load %arg20[%c0_124, %c200] : memref<1x400xf32, #tpu.memory_space<vmem>>, vector<1x25xf32>
    tpu.vector_store %arg20[%c0_124, %c200], %105 {strides = array<i32>} : memref<1x400xf32, #tpu.memory_space<vmem>>, vector<1x25xf32>,
    %c9 = arith.constant 9 : index
    %c0_125 = arith.constant 0 : index
    %107 = vector.load %arg19[%c9, %c0_125] : memref<16x25xf32, #tpu.memory_space<vmem>>, vector<1x25xf32>
    %c0_126 = arith.constant 0 : index
    %c225 = arith.constant 225 : index
    %108 = vector.load %arg20[%c0_126, %c225] : memref<1x400xf32, #tpu.memory_space<vmem>>, vector<1x25xf32>
    tpu.vector_store %arg20[%c0_126, %c225], %107 {strides = array<i32>} : memref<1x400xf32, #tpu.memory_space<vmem>>, vector<1x25xf32>,
    %c10 = arith.constant 10 : index
    %c0_127 = arith.constant 0 : index
    %109 = vector.load %arg19[%c10, %c0_127] : memref<16x25xf32, #tpu.memory_space<vmem>>, vector<1x25xf32>
    %c0_128 = arith.constant 0 : index
    %c250 = arith.constant 250 : index
    %110 = vector.load %arg20[%c0_128, %c250] : memref<1x400xf32, #tpu.memory_space<vmem>>, vector<1x25xf32>
    tpu.vector_store %arg20[%c0_128, %c250], %109 {strides = array<i32>} : memref<1x400xf32, #tpu.memory_space<vmem>>, vector<1x25xf32>,
    %c11 = arith.constant 11 : index
    %c0_129 = arith.constant 0 : index
    %111 = vector.load %arg19[%c11, %c0_129] : memref<16x25xf32, #tpu.memory_space<vmem>>, vector<1x25xf32>
    %c0_130 = arith.constant 0 : index
    %c275 = arith.constant 275 : index
    %112 = vector.load %arg20[%c0_130, %c275] : memref<1x400xf32, #tpu.memory_space<vmem>>, vector<1x25xf32>
    tpu.vector_store %arg20[%c0_130, %c275], %111 {strides = array<i32>} : memref<1x400xf32, #tpu.memory_space<vmem>>, vector<1x25xf32>,
    %c12_131 = arith.constant 12 : index
    %c0_132 = arith.constant 0 : index
    %113 = vector.load %arg19[%c12_131, %c0_132] : memref<16x25xf32, #tpu.memory_space<vmem>>, vector<1x25xf32>
    %c0_133 = arith.constant 0 : index
    %c300 = arith.constant 300 : index
    %114 = vector.load %arg20[%c0_133, %c300] : memref<1x400xf32, #tpu.memory_space<vmem>>, vector<1x25xf32>
    tpu.vector_store %arg20[%c0_133, %c300], %113 {strides = array<i32>} : memref<1x400xf32, #tpu.memory_space<vmem>>, vector<1x25xf32>,
    %c13 = arith.constant 13 : index
    %c0_134 = arith.constant 0 : index
    %115 = vector.load %arg19[%c13, %c0_134] : memref<16x25xf32, #tpu.memory_space<vmem>>, vector<1x25xf32>
    %c0_135 = arith.constant 0 : index
    %c325 = arith.constant 325 : index
    %116 = vector.load %arg20[%c0_135, %c325] : memref<1x400xf32, #tpu.memory_space<vmem>>, vector<1x25xf32>
    tpu.vector_store %arg20[%c0_135, %c325], %115 {strides = array<i32>} : memref<1x400xf32, #tpu.memory_space<vmem>>, vector<1x25xf32>,
    %c14_136 = arith.constant 14 : index
    %c0_137 = arith.constant 0 : index
    %117 = vector.load %arg19[%c14_136, %c0_137] : memref<16x25xf32, #tpu.memory_space<vmem>>, vector<1x25xf32>
    %c0_138 = arith.constant 0 : index
    %c350 = arith.constant 350 : index
    %118 = vector.load %arg20[%c0_138, %c350] : memref<1x400xf32, #tpu.memory_space<vmem>>, vector<1x25xf32>
    tpu.vector_store %arg20[%c0_138, %c350], %117 {strides = array<i32>} : memref<1x400xf32, #tpu.memory_space<vmem>>, vector<1x25xf32>,
    %c15_139 = arith.constant 15 : index
    %c0_140 = arith.constant 0 : index
    %119 = vector.load %arg19[%c15_139, %c0_140] : memref<16x25xf32, #tpu.memory_space<vmem>>, vector<1x25xf32>
    %c0_141 = arith.constant 0 : index
    %c375 = arith.constant 375 : index
    %120 = vector.load %arg20[%c0_141, %c375] : memref<1x400xf32, #tpu.memory_space<vmem>>, vector<1x25xf32>
    tpu.vector_store %arg20[%c0_141, %c375], %119 {strides = array<i32>} : memref<1x400xf32, #tpu.memory_space<vmem>>, vector<1x25xf32>,
    %c0_142 = arith.constant 0 : index
    %c0_143 = arith.constant 0 : index
    %121 = vector.load %arg20[%c0_142, %c0_143] : memref<1x400xf32, #tpu.memory_space<vmem>>, vector<1x400xf32>
    %c0_144 = arith.constant 0 : index
    %c0_145 = arith.constant 0 : index
    %122 = vector.load %arg8[%c0_144, %c0_145] : memref<400x128xf32, #tpu.memory_space<vmem>>, vector<400x128xf32>
    %cst_146 = arith.constant dense<0.000000e+00> : vector<1x128xf32>
    %123 = tpu.matmul %121, %122, %cst_146 {dimension_numbers = #tpu.dot_dimension_numbers<[1], [0], [0], [1], [0, 0, 1, 1], [], []>} : vector<1x400xf32>, vector<400x128xf32>, vector<1x128xf32> -> vector<1x128xf32>
    %c0_147 = arith.constant 0 : index
    %c0_148 = arith.constant 0 : index
    %124 = vector.load %arg9[%c0_147, %c0_148] : memref<1x128xf32, #tpu.memory_space<vmem>>, vector<1x128xf32>
    %125 = arith.addf %123, %124 : vector<1x128xf32>
    %cst_149 = arith.constant 0.000000e+00 : f32
    %126 = vector.broadcast %cst_149 : f32 to vector<1x128xf32>
    %127 = arith.maximumf %125, %126 : vector<1x128xf32>
    %c0_150 = arith.constant 0 : index
    %c0_151 = arith.constant 0 : index
    %128 = vector.load %arg10[%c0_150, %c0_151] : memref<128x128xf32, #tpu.memory_space<vmem>>, vector<128x128xf32>
    %cst_152 = arith.constant dense<0.000000e+00> : vector<1x128xf32>
    %129 = tpu.matmul %127, %128, %cst_152 {dimension_numbers = #tpu.dot_dimension_numbers<[1], [0], [0], [1], [0, 0, 1, 1], [], []>} : vector<1x128xf32>, vector<128x128xf32>, vector<1x128xf32> -> vector<1x128xf32>
    %c0_153 = arith.constant 0 : index
    %c0_154 = arith.constant 0 : index
    %130 = vector.load %arg11[%c0_153, %c0_154] : memref<1x128xf32, #tpu.memory_space<vmem>>, vector<1x128xf32>
    %131 = arith.addf %129, %130 : vector<1x128xf32>
    %cst_155 = arith.constant 0.000000e+00 : f32
    %132 = vector.broadcast %cst_155 : f32 to vector<1x128xf32>
    %133 = arith.maximumf %131, %132 : vector<1x128xf32>
    %c0_156 = arith.constant 0 : index
    %c0_157 = arith.constant 0 : index
    %134 = vector.load %arg12[%c0_156, %c0_157] : memref<128x128xf32, #tpu.memory_space<vmem>>, vector<128x128xf32>
    %cst_158 = arith.constant dense<0.000000e+00> : vector<1x128xf32>
    %135 = tpu.matmul %133, %134, %cst_158 {dimension_numbers = #tpu.dot_dimension_numbers<[1], [0], [0], [1], [0, 0, 1, 1], [], []>} : vector<1x128xf32>, vector<128x128xf32>, vector<1x128xf32> -> vector<1x128xf32>
    %c0_159 = arith.constant 0 : index
    %c0_160 = arith.constant 0 : index
    %136 = vector.load %arg13[%c0_159, %c0_160] : memref<1x128xf32, #tpu.memory_space<vmem>>, vector<1x128xf32>
    %137 = arith.addf %135, %136 : vector<1x128xf32>
    %c0_161 = arith.constant 0 : index
    %c0_162 = arith.constant 0 : index
    %c0_163 = arith.constant 0 : index
    %138 = vector.load %arg14[%c0_161, %c0_162, %c0_163] : memref<1x1x128xf32, #tpu.memory_space<vmem>>, vector<1x1x128xf32>
    %139 = vector.shape_cast %138 : vector<1x1x128xf32> to vector<1x128xf32>
    %140 = vector.shape_cast %137 : vector<1x128xf32> to vector<1x1x128xf32>
    tpu.vector_store %arg14[%c0_161, %c0_162, %c0_163], %140 {strides = array<i32>} : memref<1x1x128xf32, #tpu.memory_space<vmem>>, vector<1x1x128xf32>,
    return
  }
  func.func @transform_0(%arg0: i32) -> (i32, i32, i32) {
    %c0_i32 = arith.constant 0 : i32
    %c0_i32_0 = arith.constant 0 : i32
    %c0_i32_1 = arith.constant 0 : i32
    return %arg0, %c0_i32, %c0_i32_0 : i32, i32, i32
  }
  func.func @transform_1(%arg0: i32) -> (i32, i32) {
    %c0_i32 = arith.constant 0 : i32
    %c0_i32_0 = arith.constant 0 : i32
    %c0_i32_1 = arith.constant 0 : i32
    return %c0_i32, %c0_i32_0 : i32, i32
  }
  func.func @transform_2(%arg0: i32) -> (i32, i32) {
    %c0_i32 = arith.constant 0 : i32
    %c0_i32_0 = arith.constant 0 : i32
    %c0_i32_1 = arith.constant 0 : i32
    return %c0_i32, %c0_i32_0 : i32, i32
  }
  func.func @transform_3(%arg0: i32) -> (i32, i32) {
    %c0_i32 = arith.constant 0 : i32
    %c0_i32_0 = arith.constant 0 : i32
    %c0_i32_1 = arith.constant 0 : i32
    return %c0_i32, %c0_i32_0 : i32, i32
  }
  func.func @transform_4(%arg0: i32) -> (i32, i32) {
    %c0_i32 = arith.constant 0 : i32
    %c0_i32_0 = arith.constant 0 : i32
    %c0_i32_1 = arith.constant 0 : i32
    return %c0_i32, %c0_i32_0 : i32, i32
  }
  func.func @transform_5(%arg0: i32) -> (i32, i32) {
    %c0_i32 = arith.constant 0 : i32
    %c0_i32_0 = arith.constant 0 : i32
    %c0_i32_1 = arith.constant 0 : i32
    return %c0_i32, %c0_i32_0 : i32, i32
  }
  func.func @transform_6(%arg0: i32) -> (i32, i32) {
    %c0_i32 = arith.constant 0 : i32
    %c0_i32_0 = arith.constant 0 : i32
    %c0_i32_1 = arith.constant 0 : i32
    return %c0_i32, %c0_i32_0 : i32, i32
  }
  func.func @transform_7(%arg0: i32) -> (i32, i32) {
    %c0_i32 = arith.constant 0 : i32
    %c0_i32_0 = arith.constant 0 : i32
    %c0_i32_1 = arith.constant 0 : i32
    return %c0_i32, %c0_i32_0 : i32, i32
  }
  func.func @transform_8(%arg0: i32) -> (i32, i32) {
    %c0_i32 = arith.constant 0 : i32
    %c0_i32_0 = arith.constant 0 : i32
    %c0_i32_1 = arith.constant 0 : i32
    return %c0_i32, %c0_i32_0 : i32, i32
  }
  func.func @transform_9(%arg0: i32) -> (i32, i32) {
    %c0_i32 = arith.constant 0 : i32
    %c0_i32_0 = arith.constant 0 : i32
    %c0_i32_1 = arith.constant 0 : i32
    return %c0_i32, %c0_i32_0 : i32, i32
  }
  func.func @transform_10(%arg0: i32) -> (i32, i32) {
    %c0_i32 = arith.constant 0 : i32
    %c0_i32_0 = arith.constant 0 : i32
    %c0_i32_1 = arith.constant 0 : i32
    return %c0_i32, %c0_i32_0 : i32, i32
  }
  func.func @transform_11(%arg0: i32) -> (i32, i32) {
    %c0_i32 = arith.constant 0 : i32
    %c0_i32_0 = arith.constant 0 : i32
    %c0_i32_1 = arith.constant 0 : i32
    return %c0_i32, %c0_i32_0 : i32, i32
  }
  func.func @transform_12(%arg0: i32) -> (i32, i32) {
    %c0_i32 = arith.constant 0 : i32
    %c0_i32_0 = arith.constant 0 : i32
    %c0_i32_1 = arith.constant 0 : i32
    return %c0_i32, %c0_i32_0 : i32, i32
  }
  func.func @transform_13(%arg0: i32) -> (i32, i32, i32) {
    %c0_i32 = arith.constant 0 : i32
    %c0_i32_0 = arith.constant 0 : i32
    %c0_i32_1 = arith.constant 0 : i32
    return %arg0, %c0_i32, %c0_i32_0 : i32, i32, i32
  }
}

</mosaic_0001>

<bundles_post_ra>
// kernel: lenet_apply.1
= control target key start
LH: loop header
LB: loop body
LE: loop exit
PB: predicated region body
PF: predicated region fallthrough
CT: control target
= control target key end

     0   :  { %s4244_s0 = inlined_call_operand.vmem [shape: f32[2,25,896], index: 0, kind: input, shape index: {}]   ;;  %s4245_s1 = inlined_call_operand.vmem [shape: f32[6,25], index: 1, kind: input, shape index: {}]   ;;  %s4246_s2 = inlined_call_operand.vmem [shape: f32[6,1], index: 2, kind: input, shape index: {}]   ;;  %s4247_s3 = inlined_call_operand.vmem [shape: f32[863,200], index: 3, kind: input, shape index: {}]   ;;  %s4248_s4 = inlined_call_operand.vmem [shape: f32[16,150], index: 4, kind: input, shape index: {}]   ;;  %s4249_s5 = inlined_call_operand.vmem [shape: f32[16,1], index: 5, kind: input, shape index: {}]   ;;  %s4250_s6 = inlined_call_operand.vmem [shape: f32[125,25], index: 6, kind: input, shape index: {}]   ;;  %s4251_s7 = inlined_call_operand.vmem [shape: f32[400,128], index: 7, kind: input, shape index: {}]   ;;  %s4252_s8 = inlined_call_operand.vmem [shape: f32[1,128], index: 8, kind: input, shape index: {}]   ;;  %s4253_s9 = inlined_call_operand.vmem [shape: f32[128,128], index: 9, kind: input, shape index: {}]   ;;  %s4254_s10 = inlined_call_operand.vmem [shape: f32[1,128], index: 10, kind: input, shape index: {}]   ;;  %s4255_s11 = inlined_call_operand.vmem [shape: f32[128,128], index: 11, kind: input, shape index: {}]   ;;  %s4256_s12 = inlined_call_operand.vmem [shape: f32[1,128], index: 12, kind: input, shape index: {}]   ;;  %s4257_s13 = inlined_call_operand.hbm [shape: f32[2,1,128], index: 13, kind: output, shape index: {}]  }
   0x1   :  { %4276 = sst [smem:[#allocation11_spill]] %s4244_s0 }
   0x2   :  { %4277 = sst [smem:[#allocation12_spill]] %s4245_s1 }
   0x3   :  { %4278 = sst [smem:[#allocation13_spill]] %s4246_s2 }
   0x4   :  { %4279 = sst [smem:[#allocation14_spill]] %s4247_s3 }
   0x5   :  { %4280 = sst [smem:[#allocation15_spill]] %s4248_s4 }
   0x6   :  { %18 = vsyncpa [#allocation9], 0 }
   0x7   :  { %20 = vsyncpa [#allocation9 + $0x1], 0  ;;  %s2670_s25 = smov 0   ;;  %s2672_s26 = smov 0  }
   0x8   :  { %s2674_s27 = smov 0   ;;  %s2676_s28 = smov 0  }
   0x9 LB: > { %s2691_s29 = sadd.s32 4294967295, %s2563_s28   ;;  %s2363_s30 = sadd.s32 4294967294, %s2563_s28   ;;  %s2563_s28 = sphi %s2676_s28, %s4350_s28   ;;  %s2559_s27 = sphi %s2674_s27, %s4349_s27   ;;  %s2555_s26 = sphi %s2672_s26, %s4348_s26   ;;  %s2551_s25 = sphi %s2670_s25, %s4347_s25  }
   0xa   : > { %s2695_s14 = sadd.s32 1, %s2563_s28   ;;  %s311_s15 = sadd.s32 1, %s2559_s27 }
   0xb   : > { %s308_s16 = ssub.s32 %s2563_s28, %s2695_s14  ;;  %p321_p0 = scmp.ne.s32.totalorder %s2559_s27, %s2555_s26 }
   0xc   : > { %p309_p1 = scmp.eq.s32.totalorder %s308_s16, 0  ;;  %p322_p2 = scmp.eq.s32.totalorder %s2691_s29, 1 }
   0xd   : > { %p327_p3 = scmp.ne.s32.totalorder %s2555_s26, %s2551_s25  ;;  %p328_p4 = scmp.eq.s32.totalorder %s2363_s30, 1 }
   0xe   : > { %s2706_s17 = scalar_select %p309_p1, %s2559_s27, %s311_s15  }
   0xf   : > { %p2708_p5 = por %p322_p2, %p321_p0  ;;  %p2712_p6 = por %p328_p4, %p327_p3 }
  0x10   : > { %p2366_p7 = scmp.ge.s32.totalorder %s2563_s28, 1  ;;  %p390_p8 = scmp.lt.s32.totalorder %s2563_s28, 3 }
  0x12   : > { %p391_p9 = pnand %p2366_p7, %p390_p8 }
  0x13   : > { %p433_p10 = scmp.lt.s32.totalorder (!%p391_p9), %s2691_s29, 1  ;;  %s4283_s2 = sld [smem:[#allocation13_spill]] (!%p391_p9) }
  0x14   : > { %394 = sbr.rel (%p391_p9) target bundleno = 1931 (0x78b), region = 72  ;;  %s4284_s0 = sld [smem:[#allocation11_spill]] (!%p391_p9) }
  0x15   : > { %s4285_s1 = sld [smem:[#allocation12_spill]] (!%p391_p9)  ;;  %s4258_s21 = smov (!%p391_p9), 127  }
  0x16   : > { %s4286_s3 = sld [smem:[#allocation14_spill]] (!%p391_p9)  ;;  %s2570_s20 = smov (!%p391_p9), 111  }
  0x17   : > { %s4263_s24 = smov (!%p391_p9), 70   ;;  %s2575_s30 = smov (!%p391_p9), 98  }
  0x18   : > { %s2576_s16 = smov (!%p391_p9), 82   ;;  %s4298_s4 = sld [smem:[#allocation15_spill]] (!%p391_p9) }
  0x19   : > { %v2565_v0 = vmov 0   ;;  %v467_v1 = vld [vmem:[%s4283_s2] sm:$0x3f]  ;;  %s434_s22 = scalar_select %p433_p10, %s2691_s29, 1  ;;  %vm477_vm0 = vcmask 1040384   ;;  %vm473_vm1 = vcmask 203776  }
  0x1a   : > { %2473 = vset.pattern.permute.xlu0 %v2565_v0  ;;  %2499 = vset.pattern.permute.xlu1 %v2565_v0  ;;  %vm681_vm2 = vcmask 1039360   ;;  %vm964_vm3 = vcmask 1046528   ;;  %vm723_vm4 = vcmask 785408   ;;  %vm960_vm5 = vcmask 777216   ;;  %s2572_s2 = smov 85  }
  0x1b   : > { %470 = vperm.xlu0 %2473, %v467_v1   ;;  %2500 = vset.pattern.permute.xlu2 %v2565_v0  ;;  %s2398_s23 = smul.u32 224, %s434_s22  ;;  %v438_v10 = vld [vmem:[%s4285_s1] sm:$0x3f]  ;;  %s2568_s1 = smov 68   ;;  %vm1252_vm6 = vcmask 586752   ;;  %vm1257_vm7 = vcmask 95232  }
  0x1c   : > { %v774_v63 = vld [vmem:[%s4286_s3 + $0xf0] sm:$0xff]  ;;  %v772_v0 = vld [vmem:[%s4286_s3 + $0xe0] sm:$0xff]  ;;  %s4264_s22 = smov 83   ;;  %vm1520_vm8 = vcmask 695296   ;;  %vm1273_vm9 = vcmask 97286   ;;  %vm1602_vm10 = vcmask 580608  }
  0x1d   : > { %s2726_s15 = scalar_lea.vmem %s4284_s0, %s2398_s23  ;;  %s4262_s23 = smov 71   ;;  %vm1276_vm11 = vcmask 93184   ;;  %vm1586_vm12 = vcmask 588800   ;;  %vm1652_vm13 = vcmask 556032   ;;  %vm1536_vm14 = vcmask 687104  }
  0x1e   : > { %v460_v2 = vld [vmem:[%s2726_s15 + $0xa8] sm:$0x1]  ;;  %v462_v3 = vld [vmem:[%s2726_s15 + $0xb8] sm:$0x1]  ;;  %v453_v4 = vld [vmem:[%s2726_s15 + $0x70] sm:$0xff]  ;;  %s4265_s0 = smov 86  }
  0x1f   : > { %2368 = vmatpush.msk.msra.mxu3 %vm477_vm0, %v460_v2  ;;  %2372 = vmatpush.msk.msra.mxu2 %vm477_vm0, %v462_v3  ;;  %v455_v5 = vld [vmem:[%s2726_s15 + $0x80] sm:$0xff]  ;;  %v446_v6 = vld [vmem:[%s2726_s15 + $0x38] sm:$0xff]  ;;  %v448_v7 = vld [vmem:[%s2726_s15 + $0x48] sm:$0xff]  ;;  %vm1455_vm15 = vcmask 801792  }
  0x20   : > { %v439_v8 = vld [vmem:[%s2726_s15] sm:$0xff]  ;;  %v441_v9 = vld [vmem:[%s2726_s15 + $0x10] sm:$0xff]  ;;  %v464_v12 = vld [vmem:[%s2726_s15 + $0xc8] sm:$0x1] }
  0x21   : > { %512 = vmatpush.msra.mxu3 %v453_v4  ;;  %552 = vmatpush.msra.mxu2 %v455_v5  ;;  %v461_v11 = vld [vmem:[%s2726_s15 + $0xb0] sm:$0x1]  ;;  %v454_v14 = vld [vmem:[%s2726_s15 + $0x78] sm:$0xff]  ;;  %v447_v17 = vld [vmem:[%s2726_s15 + $0x40] sm:$0xff] }
  0x22   : > { %v465_v13 = vld [vmem:[%s2726_s15 + $0xd0] sm:$0x1]  ;;  %v458_v16 = vld [vmem:[%s2726_s15 + $0x98] sm:$0xff]  ;;  %v451_v19 = vld [vmem:[%s2726_s15 + $0x60] sm:$0xff] }
  0x23   : > { %513 = vmatpush.msra.mxu3 %v446_v6  ;;  %553 = vmatpush.msra.mxu2 %v448_v7  ;;  %v457_v15 = vld [vmem:[%s2726_s15 + $0x90] sm:$0xff]  ;;  %v450_v18 = vld [vmem:[%s2726_s15 + $0x58] sm:$0xff]  ;;  %v440_v20 = vld [vmem:[%s2726_s15 + $0x8] sm:$0xff] }
  0x24   : > { %2378 = vmatpush.msk.msra.mxu1 %vm477_vm0, %v465_v13  ;;  %v443_v21 = vld [vmem:[%s2726_s15 + $0x20] sm:$0xff]  ;;  %v466_v23 = vld [vmem:[%s2726_s15 + $0xd8] sm:$0x1]  ;;  %v444_v24 = vld [vmem:[%s2726_s15 + $0x28] sm:$0xff] }
  0x25   : > { %514 = vmatpush.msra.mxu3 %v439_v8  ;;  %554 = vmatpush.msra.mxu2 %v441_v9  ;;  %v463_v22 = vld [vmem:[%s2726_s15 + $0xc0] sm:$0x1]  ;;  %v456_v25 = vld [vmem:[%s2726_s15 + $0x88] sm:$0xff]  ;;  %v449_v27 = vld [vmem:[%s2726_s15 + $0x50] sm:$0xff] }
  0x26   : > { %2369 = vmatmul.msk.f32.vlgmr.msra.gmra.mxu3 %vm473_vm1, %v438_v10  ;;  %2373 = vmatmul.msk.f32.vlgmr.msra.gmra.mxu2 %vm473_vm1, %v438_v10  ;;  %v459_v26 = vld [vmem:[%s2726_s15 + $0xa0] sm:$0xff]  ;;  %v452_v28 = vld [vmem:[%s2726_s15 + $0x68] sm:$0xff]  ;;  %v442_v29 = vld [vmem:[%s2726_s15 + $0x18] sm:$0xff] }
  0x27   : > { %2370 = vmatpush.msk.msrb.mxu3 %vm477_vm0, %v461_v11  ;;  %2376 = vmatpush.msk.msrb.mxu2 %vm477_vm0, %v464_v12  ;;  %v445_v30 = vld [vmem:[%s2726_s15 + $0x30] sm:$0xff]  ;;  %v768_v3 = vld [vmem:[%s4286_s3 + $0xc0] sm:$0xff]  ;;  %s4260_s15 = smov 96  }
  0x28   : > { %612 = vmatpush.msra.mxu1 %v458_v16  ;;  %v770_v2 = vld [vmem:[%s4286_s3 + $0xd0] sm:$0xff]  ;;  %v804_v8 = vld [vmem:[%s4286_s3 + $0x1e0] sm:$0xff] }
  0x29   : > { %532 = vmatpush.msrb.mxu3 %v454_v14  ;;  %592 = vmatpush.msrb.mxu2 %v457_v15  ;;  %v806_v4 = vld [vmem:[%s4286_s3 + $0x1f0] sm:$0xff]  ;;  %v868_v9 = vld [vmem:[%s4286_s3 + $0x3e0] sm:$0xff] }
  0x2a   : > { %613 = vmatpush.msra.mxu1 %v451_v19  ;;  %v870_v5 = vld [vmem:[%s4286_s3 + $0x3f0] sm:$0xff]  ;;  %991 = vmatpush.msra.mxu0 %v806_v4  ;;  %v764_v14 = vld [vmem:[%s4286_s3 + $0xa0] sm:$0xff] }
  0x2b   : > { %533 = vmatpush.msrb.mxu3 %v447_v17  ;;  %593 = vmatpush.msrb.mxu2 %v450_v18  ;;  %v802_v11 = vld [vmem:[%s4286_s3 + $0x1d0] sm:$0xff]  ;;  %v800_v15 = vld [vmem:[%s4286_s3 + $0x1c0] sm:$0xff] }
  0x2c   : > { %614 = vmatpush.msra.mxu1 %v444_v24  ;;  %992 = vmatpush.msra.mxu0 %v804_v8  ;;  %v866_v12 = vld [vmem:[%s4286_s3 + $0x3d0] sm:$0xff]  ;;  %v864_v19 = vld [vmem:[%s4286_s3 + $0x3c0] sm:$0xff] }
  0x2d   : > { %534 = vmatpush.msrb.mxu3 %v440_v20  ;;  %594 = vmatpush.msrb.mxu2 %v443_v21  ;;  %v838_v16 = vld [vmem:[%s4286_s3 + $0x2f0] sm:$0xff]  ;;  %v824_v4 = vld [vmem:[%s4286_s3 + $0x280] sm:$0xff] }
  0x2e   : > { %2371 = vmatmul.msk.f32.vlgmr.msrb.gmra.mxu3 %vm473_vm1, %v438_v10  ;;  %2377 = vmatmul.msk.f32.vlgmr.msrb.gmra.mxu2 %vm473_vm1, %v438_v10  ;;  %v762_v20 = vld [vmem:[%s4286_s3 + $0x90] sm:$0xff]  ;;  %v744_v8 = vld [vmem:[%s4286_s3] sm:$0xff] }
  0x2f   : > { %2374 = vmatpush.msk.msra.mxu3 %vm477_vm0, %v463_v22  ;;  %2380 = vmatpush.msk.msra.mxu2 %vm477_vm0, %v466_v23  ;;  %v798_v21 = vld [vmem:[%s4286_s3 + $0x1b0] sm:$0xff]  ;;  %v836_v22 = vld [vmem:[%s4286_s3 + $0x2e0] sm:$0xff]  ;;  %vm1389_vm0 = vcmask 908288  }
  0x30   : > { %2379 = vmatmul.msk.f32.vlgmr.msra.gmra.mxu1 %vm473_vm1, %v438_v10  ;;  %993 = vmatpush.msra.mxu0 %v802_v11  ;;  %v862_v24 = vld [vmem:[%s4286_s3 + $0x3b0] sm:$0xff] }
  0x31   : > { %572 = vmatpush.msra.mxu3 %v456_v25  ;;  %632 = vmatpush.msra.mxu2 %v459_v26  ;;  %v834_v25 = vld [vmem:[%s4286_s3 + $0x2d0] sm:$0xff] }
  0x32   : > { %1011 = vmatpush.msrb.mxu1 %v838_v16  ;;  %994 = vmatpush.msra.mxu0 %v800_v15  ;;  %v894_v15 = vld [vmem:[%s4286_s3 + $0x4b0] sm:$0xff]  ;;  %v892_v16 = vld [vmem:[%s4286_s3 + $0x4a0] sm:$0xff] }
  0x33   : > { %573 = vmatpush.msra.mxu3 %v449_v27  ;;  %633 = vmatpush.msra.mxu2 %v452_v28  ;;  %v760_v28 = vld [vmem:[%s4286_s3 + $0x80] sm:$0xff] }
  0x34   : > { %1012 = vmatpush.msrb.mxu1 %v836_v22  ;;  %995 = vmatpush.msra.mxu0 %v798_v21  ;;  %v780_v21 = vld [vmem:[%s4286_s3 + $0x120] sm:$0xff] }
  0x35   : > { %574 = vmatpush.msra.mxu3 %v442_v29  ;;  %634 = vmatpush.msra.mxu2 %v445_v30  ;;  %v796_v29 = vld [vmem:[%s4286_s3 + $0x1a0] sm:$0xff] }
  0x36   : > { %2375 = vmatmul.msk.f32.vlgmr.msra.gmra.mxu3 %vm473_vm1, %v438_v10  ;;  %2381 = vmatmul.msk.f32.vlgmr.msra.gmra.mxu2 %vm473_vm1, %v438_v10  ;;  %v766_v10 = vld [vmem:[%s4286_s3 + $0xb0] sm:$0xff]  ;;  %v820_v22 = vld [vmem:[%s4286_s3 + $0x260] sm:$0xff] }
  0x37   : > { %971 = vmatpush.msrb.mxu3 %v774_v63  ;;  %1031 = vmatpush.msrb.mxu2 %v870_v5  ;;  %v748_v63 = vld [vmem:[%s4286_s3 + $0x20] sm:$0xff] }
  0x38   : > { %1013 = vmatpush.msrb.mxu1 %v834_v25  ;;  %996 = vmatpush.msra.mxu0 %v796_v29  ;;  %v778_v25 = vld [vmem:[%s4286_s3 + $0x110] sm:$0xff] }
  0x39   : > { %972 = vmatpush.msrb.mxu3 %v772_v0  ;;  %1032 = vmatpush.msrb.mxu2 %v868_v9  ;;  %v826_v0 = vld [vmem:[%s4286_s3 + $0x290] sm:$0xff] }
  0x3a   : > { %v822_v9 = vld [vmem:[%s4286_s3 + $0x270] sm:$0xff] }
  0x3b   : > { %973 = vmatpush.msrb.mxu3 %v770_v2  ;;  %1033 = vmatpush.msrb.mxu2 %v866_v12  ;;  %v784_v2 = vld [vmem:[%s4286_s3 + $0x140] sm:$0xff]  ;;  %v846_v12 = vld [vmem:[%s4286_s3 + $0x330] sm:$0xff] }
  0x3c   : > { %v842_v29 = vld [vmem:[%s4286_s3 + $0x310] sm:$0xff] }
  0x3d   : > { %974 = vmatpush.msrb.mxu3 %v768_v3  ;;  %1034 = vmatpush.msrb.mxu2 %v864_v19  ;;  %v746_v3 = vld [vmem:[%s4286_s3 + $0x10] sm:$0xff] }
  0x3e   : > { %v886_v19 = vld [vmem:[%s4286_s3 + $0x470] sm:$0xff] }
  0x3f   : > { %975 = vmatpush.msrb.mxu3 %v766_v10  ;;  %1035 = vmatpush.msrb.mxu2 %v862_v24  ;;  %v902_v10 = vld [vmem:[%s4286_s3 + $0x4f0] sm:$0xff] }
  0x40   : > { %v882_v24 = vld [vmem:[%s4286_s3 + $0x450] sm:$0xff] }
  0x41   : > { %976 = vmatpush.msrb.mxu3 %v764_v14  ;;  %v896_v14 = vld [vmem:[%s4286_s3 + $0x4c0] sm:$0xff] }
  0x43   : > { %977 = vmatpush.msrb.mxu3 %v762_v20  ;;  %v884_v20 = vld [vmem:[%s4286_s3 + $0x460] sm:$0xff] }
  0x45   : > { %978 = vmatpush.msrb.mxu3 %v760_v28  ;;  %v818_v28 = vld [vmem:[%s4286_s3 + $0x250] sm:$0xff] }
  0x8d   : > { %v471_v31 = vpop.permute.xlu0 %470 }
  0xa9   : > { %v516_v32 = vpop.f32.mrf.mxu3  ;;  %v556_v33 = vpop.f32.mrf.mxu2 }
  0xaa   : > { %v517_v34 = vadd.f32 %v516_v32, %v471_v31  ;;  %v557_v35 = vadd.f32 %v556_v33, %v471_v31  ;;  %v758_v33 = vld [vmem:[%s4286_s3 + $0x70] sm:$0xff] }
  0xab   : > { %979 = vmatpush.msrb.mxu3 %v758_v33  ;;  %v840_v33 = vld [vmem:[%s4286_s3 + $0x300] sm:$0xff] }
  0xac   : > { %v639_v36 = vmax.f32 %v517_v34, 0.0  ;;  %v641_v37 = vmax.f32 %v557_v35, 0.0  ;;  %v794_v34 = vld [vmem:[%s4286_s3 + $0x190] sm:$0xff] }
  0xad   : > { %v616_v38 = vpop.f32.mrf.mxu1  ;;  %v858_v35 = vld [vmem:[%s4286_s3 + $0x390] sm:$0xff]  ;;  %997 = vmatpush.msra.mxu0 %v794_v34 }
  0xae   : > { %646 = vst [vmem:[#allocation2 + $0x30] sm:$0x3f] %v639_v36  ;;  %v617_v39 = vadd.f32 %v616_v38, %v471_v31  ;;  %v832_v36 = vld [vmem:[%s4286_s3 + $0x2c0] sm:$0xff]  ;;  %v878_v34 = vld [vmem:[%s4286_s3 + $0x430] sm:$0xff] }
  0xaf   : > { %648 = vst [vmem:[#allocation2 + $0x18] sm:$0x3f] %v641_v37  ;;  %v756_v38 = vld [vmem:[%s4286_s3 + $0x60] sm:$0xff]  ;;  %1014 = vmatpush.msrb.mxu1 %v832_v36  ;;  %v775_v36 = vld [vmem:[%s4286_s3 + $0xf8] sm:$0xff] }
  0xb0   : > { %v644_v44 = vmax.f32 %v617_v39, 0.0  ;;  %v792_v39 = vld [vmem:[%s4286_s3 + $0x180] sm:$0xff]  ;;  %980 = vmatpush.msrb.mxu3 %v756_v38 }
  0xb1   : > { %v536_v40 = vpop.f32.mrf.mxu3  ;;  %v596_v41 = vpop.f32.mrf.mxu2  ;;  %998 = vmatpush.msra.mxu0 %v792_v39  ;;  %v876_v38 = vld [vmem:[%s4286_s3 + $0x420] sm:$0xff] }
  0xb2   : > { %v537_v42 = vadd.f32 %v536_v40, %v471_v31  ;;  %v597_v43 = vadd.f32 %v596_v41, %v471_v31  ;;  %651 = vst [vmem:[#allocation2 + $0x20] sm:$0x3f] %v644_v44  ;;  %v830_v44 = vld [vmem:[%s4286_s3 + $0x2b0] sm:$0xff]  ;;  %v932_v39 = vld [vmem:[%s4286_s3 + $0x5e0] sm:$0xff] }
  0xb3   : > { %1015 = vmatpush.msrb.mxu1 %v830_v44  ;;  %v771_v44 = vld [vmem:[%s4286_s3 + $0xd8] sm:$0xff] }
  0xb4   : > { %v640_v45 = vmax.f32 %v537_v42, 0.0  ;;  %v643_v46 = vmax.f32 %v597_v43, 0.0  ;;  %v856_v43 = vld [vmem:[%s4286_s3 + $0x380] sm:$0xff] }
  0xb5   : > { %v653_v53 = vld [vmem:[#allocation2 + $0x30] sm:$0x3f] }
  0xb6   : > { %647 = vst [vmem:[#allocation2] sm:$0x3f] %v640_v45  ;;  %v2774_v56 = vld [vmem:[#allocation2 + $0x18] sm:$0x3f]  ;;  %v754_v45 = vld [vmem:[%s4286_s3 + $0x50] sm:$0xff] }
  0xb7   : > { %650 = vst [vmem:[#allocation2 + $0x8] sm:$0x3f] %v643_v46  ;;  %v790_v46 = vld [vmem:[%s4286_s3 + $0x170] sm:$0xff]  ;;  %981 = vmatpush.msrb.mxu3 %v754_v45 }
  0xb8   : > { %999 = vmatpush.msra.mxu0 %v790_v46  ;;  %v810_v45 = vld [vmem:[%s4286_s3 + $0x210] sm:$0xff]  ;;  %v872_v46 = vld [vmem:[%s4286_s3 + $0x400] sm:$0xff] }
  0xb9   : > { %v576_v47 = vpop.f32.mrf.mxu3  ;;  %v636_v48 = vpop.f32.mrf.mxu2  ;;  %v2787_v61 = vld [vmem:[#allocation2 + $0x20] sm:$0x3f] }
  0xba   : > { %v577_v49 = vadd.f32 %v576_v47, %v471_v31  ;;  %v637_v50 = vadd.f32 %v636_v48, %v471_v31  ;;  %v860_v31 = vld [vmem:[%s4286_s3 + $0x3a0] sm:$0xff] }
  0xbb   : > { %1036 = vmatpush.msrb.mxu2 %v860_v31  ;;  %v776_v31 = vld [vmem:[%s4286_s3 + $0x100] sm:$0xff] }
  0xbc   : > { %v642_v51 = vmax.f32 %v577_v49, 0.0  ;;  %v645_v52 = vmax.f32 %v637_v50, 0.0  ;;  %v854_v50 = vld [vmem:[%s4286_s3 + $0x370] sm:$0xff] }
  0xbd   : > { %v654_v54 = vld [vmem:[#allocation2] sm:$0x3f]  ;;  %1037 = vmatpush.msrb.mxu2 %v858_v35  ;;  %v934_v35 = vld [vmem:[%s4286_s3 + $0x5f0] sm:$0xff] }
  0xbe   : > { %649 = vst [vmem:[#allocation2 + $0x10] sm:$0x3f] %v642_v51  ;;  %v2474_v55 = vpack.i.bf16 %v654_v54, %v653_v53  ;;  %v2785_v60 = vld [vmem:[#allocation2 + $0x8] sm:$0x3f] }
  0xbf   : > { %652 = vst [vmem:[#allocation2 + $0x28] sm:$0x3f] %v645_v52  ;;  %v2484_v62 = vpack.i.bf16 %v2787_v61, %v2785_v60  ;;  %1038 = vmatpush.msrb.mxu2 %v856_v43  ;;  %v930_v43 = vld [vmem:[%s4286_s3 + $0x5d0] sm:$0xff] }
  0xc0   : > { %2475 = vrot.lane.b32.xlu0 %v2474_v55, %s4258_s21  ;;  %v788_v55 = vld [vmem:[%s4286_s3 + $0x160] sm:$0xff] }
  0xc1   : > { %1039 = vmatpush.msrb.mxu2 %v854_v50  ;;  %1000 = vmatpush.msra.mxu0 %v788_v55  ;;  %v926_v50 = vld [vmem:[%s4286_s3 + $0x5b0] sm:$0xff]  ;;  %v767_v55 = vld [vmem:[%s4286_s3 + $0xb8] sm:$0xff] }
  0xc5   : > { %v2776_v57 = vld [vmem:[#allocation2 + $0x10] sm:$0x3f] }
  0xc6   : > { %v2778_v58 = vld [vmem:[#allocation2 + $0x28] sm:$0x3f]  ;;  %v2479_v59 = vpack.i.bf16 %v2776_v57, %v2774_v56 }
  0xc7   : > { %679 = vrot.lane.b32.xlu2 %v2778_v58, %s4258_s21 }
  0xc8   : > { %2480 = vrot.lane.b32.xlu1 %v2479_v59, %s4258_s21 }
  0xd0   : > { %2485 = vrot.lane.b32.xlu1 %v2484_v62, %s4258_s21  ;;  %v786_v62 = vld [vmem:[%s4286_s3 + $0x150] sm:$0xff]  ;;  %s4274_s21 = smov 72  }
  0xd1   : > { %1001 = vmatpush.msra.mxu0 %v786_v62  ;;  %v954_v62 = vld [vmem:[%s4286_s3 + $0x690] sm:$0xff] }
  0xd3   : > { %1002 = vmatpush.msra.mxu0 %v784_v2  ;;  %v761_v2 = vld [vmem:[%s4286_s3 + $0x88] sm:$0xff] }
 0x121   : > { %v680_v47 = vpop.permute.xlu2 %679 }
 0x122   : > { %v2922_v59 = vmax.f32 %v2778_v58, %v680_v47  ;;  %v852_v58 = vld [vmem:[%s4286_s3 + $0x360] sm:$0xff] }
 0x123   : > { %1040 = vmatpush.msrb.mxu2 %v852_v58  ;;  %v922_v58 = vld [vmem:[%s4286_s3 + $0x590] sm:$0xff] }
 0x132   : > { %v2476_v1 = vpop.permute.xlu0 %2475 }
 0x133   : > { %v2478_v6 = vunpack.i.h.bf16 %v2476_v1  ;;  %v2477_v7 = vunpack.i.l.bf16 %v2476_v1  ;;  %v850_v1 = vld [vmem:[%s4286_s3 + $0x350] sm:$0xff] }
 0x134   : > { %1041 = vmatpush.msrb.mxu2 %v850_v1  ;;  %v952_v1 = vld [vmem:[%s4286_s3 + $0x680] sm:$0xff] }
 0x135   : > { %v682_v17 = vsel %vm681_vm2, %v2477_v7, %v2478_v6  ;;  %v782_v7 = vld [vmem:[%s4286_s3 + $0x130] sm:$0xff] }
 0x136   : > { %v2854_v26 = vmax.f32 %v653_v53, %v682_v17  ;;  %1003 = vmatpush.msra.mxu0 %v782_v7  ;;  %v890_v17 = vld [vmem:[%s4286_s3 + $0x490] sm:$0xff]  ;;  %v948_v7 = vld [vmem:[%s4286_s3 + $0x660] sm:$0xff] }
 0x138   : > { %1004 = vmatpush.msra.mxu0 %v780_v21  ;;  %v908_v21 = vld [vmem:[%s4286_s3 + $0x520] sm:$0xff] }
 0x13a   : > { %v2481_v13 = vpop.permute.xlu1 %2480  ;;  %1005 = vmatpush.msra.mxu0 %v778_v25  ;;  %v906_v25 = vld [vmem:[%s4286_s3 + $0x510] sm:$0xff] }
 0x13b   : > { %v2482_v18 = vunpack.i.l.bf16 %v2481_v13  ;;  %v2483_v30 = vunpack.i.h.bf16 %v2481_v13  ;;  %v900_v13 = vld [vmem:[%s4286_s3 + $0x4e0] sm:$0xff] }
 0x13c   : > { %1006 = vmatpush.msra.mxu0 %v776_v31  ;;  %v839_v31 = vld [vmem:[%s4286_s3 + $0x2f8] sm:$0xff] }
 0x13d   : > { %v683_v23 = vsel %vm681_vm2, %v2478_v6, %v2482_v18  ;;  %v684_v40 = vsel %vm681_vm2, %v2482_v18, %v2483_v30  ;;  %v848_v6 = vld [vmem:[%s4286_s3 + $0x340] sm:$0xff] }
 0x13e   : > { %v2856_v27 = vmax.f32 %v654_v54, %v683_v23  ;;  %v2910_v52 = vmax.f32 %v2774_v56, %v684_v40  ;;  %v752_v54 = vld [vmem:[%s4286_s3 + $0x40] sm:$0xff]  ;;  %1042 = vmatpush.msrb.mxu2 %v848_v6  ;;  %1071 = vmatpush.msrb.mxu0 %v934_v35  ;;  %v773_v40 = vld [vmem:[%s4286_s3 + $0xe8] sm:$0xff]  ;;  %v835_v35 = vld [vmem:[%s4286_s3 + $0x2d8] sm:$0xff] }
 0x13f   : > { %982 = vmatpush.msrb.mxu3 %v752_v54  ;;  %v888_v18 = vld [vmem:[%s4286_s3 + $0x480] sm:$0xff]  ;;  %v958_v54 = vld [vmem:[%s4286_s3 + $0x6b0] sm:$0x7f] }
 0x140   : > { %v2489_v32 = vpack.i.bf16 %v2856_v27, %v2854_v26  ;;  %1043 = vmatpush.msrb.mxu2 %v846_v12  ;;  %v844_v23 = vld [vmem:[%s4286_s3 + $0x320] sm:$0xff]  ;;  %1072 = vmatpush.msrb.mxu0 %v932_v39  ;;  %v755_v12 = vld [vmem:[%s4286_s3 + $0x58] sm:$0xff] }
 0x141   : > { %v916_v6 = vld [vmem:[%s4286_s3 + $0x560] sm:$0xff]  ;;  %v827_v39 = vld [vmem:[%s4286_s3 + $0x298] sm:$0xff] }
 0x142   : > { %v2486_v37 = vpop.permute.xlu1 %2485  ;;  %2490 = vrot.lane.b32.xlu2 %v2489_v32, %s4260_s15  ;;  %1044 = vmatpush.msrb.mxu2 %v844_v23  ;;  %v816_v32 = vld [vmem:[%s4286_s3 + $0x240] sm:$0xff]  ;;  %v749_v23 = vld [vmem:[%s4286_s3 + $0x28] sm:$0xff] }
 0x143   : > { %v2488_v41 = vunpack.i.h.bf16 %v2486_v37  ;;  %v2487_v42 = vunpack.i.l.bf16 %v2486_v37  ;;  %v814_v37 = vld [vmem:[%s4286_s3 + $0x230] sm:$0xff]  ;;  %1073 = vmatpush.msrb.mxu0 %v930_v43  ;;  %v819_v43 = vld [vmem:[%s4286_s3 + $0x258] sm:$0xff] }
 0x144   : > { %1045 = vmatpush.msrb.mxu2 %v842_v29  ;;  %v747_v29 = vld [vmem:[%s4286_s3 + $0x18] sm:$0xff] }
 0x145   : > { %v685_v48 = vsel %vm681_vm2, %v2483_v30, %v2487_v42  ;;  %v686_v49 = vsel %vm681_vm2, %v2487_v42, %v2488_v41  ;;  %v687_v5 = vsel %vm681_vm2, %v2488_v41, %v680_v47  ;;  %v880_v30 = vld [vmem:[%s4286_s3 + $0x440] sm:$0xff]  ;;  %v874_v42 = vld [vmem:[%s4286_s3 + $0x410] sm:$0xff] }
 0x146   : > { %v2907_v51 = vmax.f32 %v2785_v60, %v686_v49  ;;  %v2913_v53 = vmax.f32 %v2776_v57, %v685_v48  ;;  %v750_v57 = vld [vmem:[%s4286_s3 + $0x30] sm:$0xff]  ;;  %v828_v60 = vld [vmem:[%s4286_s3 + $0x2a0] sm:$0xff]  ;;  %v2978_v11 = vmax.f32 %v2787_v61, %v687_v5  ;;  %1046 = vmatpush.msrb.mxu2 %v840_v33  ;;  %v769_v48 = vld [vmem:[%s4286_s3 + $0xc8] sm:$0xff] }
 0x147   : > { %983 = vmatpush.msrb.mxu3 %v750_v57  ;;  %1016 = vmatpush.msrb.mxu1 %v828_v60  ;;  %v898_v61 = vld [vmem:[%s4286_s3 + $0x4d0] sm:$0xff]  ;;  %v812_v41 = vld [vmem:[%s4286_s3 + $0x220] sm:$0xff]  ;;  %v765_v60 = vld [vmem:[%s4286_s3 + $0xa8] sm:$0xff] }
 0x148   : > { %717 = vrot.lane.b32.xlu1 %v2907_v51, %s4260_s15  ;;  %v2494_v56 = vpack.i.bf16 %v2913_v53, %v2910_v52  ;;  %1111 = vmatpush.msra.mxu2 %v775_v36  ;;  %v928_v47 = vld [vmem:[%s4286_s3 + $0x5c0] sm:$0xff]  ;;  %v759_v5 = vld [vmem:[%s4286_s3 + $0x78] sm:$0xff]  ;;  %v833_v36 = vld [vmem:[%s4286_s3 + $0x2c8] sm:$0xff] }
 0x149   : > { %984 = vmatpush.msrb.mxu3 %v748_v63  ;;  %1017 = vmatpush.msrb.mxu1 %v826_v0  ;;  %v808_v49 = vld [vmem:[%s4286_s3 + $0x200] sm:$0xff]  ;;  %v763_v63 = vld [vmem:[%s4286_s3 + $0x98] sm:$0xff] }
 0x14a   : > { %2495 = vrot.lane.b32.xlu0 %v2494_v56, %s4260_s15  ;;  %721 = vrot.lane.b32.xlu2 %v2922_v59, %s4260_s15  ;;  %s4287_s15 = smov 96   ;;  %v924_v56 = vld [vmem:[%s4286_s3 + $0x5a0] sm:$0xff] }
 0x14b   : > { %985 = vmatpush.msrb.mxu3 %v746_v3  ;;  %1018 = vmatpush.msrb.mxu1 %v824_v4  ;;  %v956_v57 = vld [vmem:[%s4286_s3 + $0x6a0] sm:$0xff]  ;;  %v918_v3 = vld [vmem:[%s4286_s3 + $0x570] sm:$0xff] }
 0x14c   : > { %1112 = vmatpush.msra.mxu2 %v773_v40  ;;  %1074 = vmatpush.msrb.mxu0 %v928_v47  ;;  %v920_v0 = vld [vmem:[%s4286_s3 + $0x580] sm:$0xff]  ;;  %v950_v4 = vld [vmem:[%s4286_s3 + $0x670] sm:$0xff]  ;;  %v825_v40 = vld [vmem:[%s4286_s3 + $0x288] sm:$0xff] }
 0x14d   : > { %986 = vmatpush.msrb.mxu3 %v744_v8  ;;  %1019 = vmatpush.msrb.mxu1 %v822_v9  ;;  %v757_v8 = vld [vmem:[%s4286_s3 + $0x68] sm:$0xff]  ;;  %v914_v9 = vld [vmem:[%s4286_s3 + $0x550] sm:$0xff]  ;;  %v936_v33 = vld [vmem:[%s4286_s3 + $0x600] sm:$0xff] }
 0x14e   : > { %1113 = vmatpush.msra.mxu2 %v771_v44  ;;  %1075 = vmatpush.msrb.mxu0 %v926_v50  ;;  %v817_v44 = vld [vmem:[%s4286_s3 + $0x248] sm:$0xff] }
 0x14f   : > { %1051 = vmatpush.msra.mxu3 %v902_v10  ;;  %1020 = vmatpush.msrb.mxu1 %v820_v22  ;;  %v946_v10 = vld [vmem:[%s4286_s3 + $0x650] sm:$0xff]  ;;  %v940_v22 = vld [vmem:[%s4286_s3 + $0x620] sm:$0xff] }
 0x150   : > { %1114 = vmatpush.msra.mxu2 %v769_v48  ;;  %1076 = vmatpush.msrb.mxu0 %v924_v56  ;;  %v811_v48 = vld [vmem:[%s4286_s3 + $0x218] sm:$0xff] }
 0x151   : > { %1052 = vmatpush.msra.mxu3 %v900_v13  ;;  %1021 = vmatpush.msrb.mxu1 %v818_v28  ;;  %v912_v13 = vld [vmem:[%s4286_s3 + $0x540] sm:$0xff]  ;;  %v938_v28 = vld [vmem:[%s4286_s3 + $0x610] sm:$0xff] }
 0x152   : > { %719 = vrot.lane.b32.xlu0 %v2978_v11, %s4287_s15  ;;  %1115 = vmatpush.msra.mxu2 %v767_v55  ;;  %v809_v55 = vld [vmem:[%s4286_s3 + $0x208] sm:$0xff] }
 0x153   : > { %1053 = vmatpush.msra.mxu3 %v898_v61  ;;  %1022 = vmatpush.msrb.mxu1 %v816_v32  ;;  %v944_v61 = vld [vmem:[%s4286_s3 + $0x640] sm:$0xff] }
 0x154   : > { %1116 = vmatpush.msra.mxu2 %v765_v60  ;;  %1077 = vmatpush.msrb.mxu0 %v922_v58  ;;  %v904_v32 = vld [vmem:[%s4286_s3 + $0x500] sm:$0xff] }
 0x155   : > { %1054 = vmatpush.msra.mxu3 %v896_v14  ;;  %1023 = vmatpush.msrb.mxu1 %v814_v37  ;;  %v753_v14 = vld [vmem:[%s4286_s3 + $0x48] sm:$0xff]  ;;  %v831_v37 = vld [vmem:[%s4286_s3 + $0x2b8] sm:$0xff] }
 0x156   : > { %1117 = vmatpush.msra.mxu2 %v763_v63  ;;  %1078 = vmatpush.msrb.mxu0 %v920_v0  ;;  %v807_v0 = vld [vmem:[%s4286_s3 + $0x1f8] sm:$0xff] }
 0x157   : > { %1055 = vmatpush.msra.mxu3 %v894_v15  ;;  %1024 = vmatpush.msrb.mxu1 %v812_v41  ;;  %v910_v15 = vld [vmem:[%s4286_s3 + $0x530] sm:$0xff]  ;;  %v823_v41 = vld [vmem:[%s4286_s3 + $0x278] sm:$0xff] }
 0x158   : > { %1118 = vmatpush.msra.mxu2 %v761_v2  ;;  %1079 = vmatpush.msrb.mxu0 %v918_v3  ;;  %v903_v2 = vld [vmem:[%s4286_s3 + $0x4f8] sm:$0xff] }
 0x159   : > { %1056 = vmatpush.msra.mxu3 %v892_v16  ;;  %1025 = vmatpush.msrb.mxu1 %v810_v45  ;;  %v942_v16 = vld [vmem:[%s4286_s3 + $0x630] sm:$0xff]  ;;  %v815_v45 = vld [vmem:[%s4286_s3 + $0x238] sm:$0xff] }
 0x15a   : > { %1119 = vmatpush.msra.mxu2 %v759_v5  ;;  %1080 = vmatpush.msrb.mxu0 %v916_v6 }
 0x15b   : > { %1057 = vmatpush.msra.mxu3 %v890_v17  ;;  %1026 = vmatpush.msrb.mxu1 %v808_v49  ;;  %v751_v17 = vld [vmem:[%s4286_s3 + $0x38] sm:$0xff] }
 0x15c   : > { %1120 = vmatpush.msra.mxu2 %v757_v8  ;;  %1081 = vmatpush.msrb.mxu0 %v914_v9  ;;  %v899_v8 = vld [vmem:[%s4286_s3 + $0x4d8] sm:$0xff] }
 0x15d   : > { %1058 = vmatpush.msra.mxu3 %v888_v18  ;;  %2382 = vmatpush.msk.msra.mxu1 %vm964_vm3, %v958_v54 }
 0x15e   : > { %1121 = vmatpush.msra.mxu2 %v755_v12  ;;  %1082 = vmatpush.msrb.mxu0 %v912_v13  ;;  %v801_v12 = vld [vmem:[%s4286_s3 + $0x1c8] sm:$0xff] }
 0x15f   : > { %1059 = vmatpush.msra.mxu3 %v886_v19  ;;  %1096 = vmatpush.msra.mxu1 %v956_v57  ;;  %v865_v13 = vld [vmem:[%s4286_s3 + $0x3c8] sm:$0xff] }
 0x160   : > { %1122 = vmatpush.msra.mxu2 %v753_v14  ;;  %1083 = vmatpush.msrb.mxu0 %v910_v15 }
 0x161   : > { %1060 = vmatpush.msra.mxu3 %v884_v20  ;;  %1097 = vmatpush.msra.mxu1 %v954_v62 }
 0x162   : > { %1123 = vmatpush.msra.mxu2 %v751_v17  ;;  %1084 = vmatpush.msrb.mxu0 %v908_v21  ;;  %v863_v17 = vld [vmem:[%s4286_s3 + $0x3b8] sm:$0xff] }
 0x163   : > { %1061 = vmatpush.msra.mxu3 %v882_v24  ;;  %1098 = vmatpush.msra.mxu1 %v952_v1  ;;  %v871_v1 = vld [vmem:[%s4286_s3 + $0x3f8] sm:$0xff] }
 0x164   : > { %1124 = vmatpush.msra.mxu2 %v749_v23  ;;  %1085 = vmatpush.msrb.mxu0 %v906_v25  ;;  %v955_v21 = vld [vmem:[%s4286_s3 + $0x698] sm:$0xff]  ;;  %v953_v25 = vld [vmem:[%s4286_s3 + $0x688] sm:$0xff] }
 0x165   : > { %1062 = vmatpush.msra.mxu3 %v880_v30  ;;  %1099 = vmatpush.msra.mxu1 %v950_v4  ;;  %v803_v4 = vld [vmem:[%s4286_s3 + $0x1d8] sm:$0xff] }
 0x166   : > { %1125 = vmatpush.msra.mxu2 %v747_v29  ;;  %1086 = vmatpush.msrb.mxu0 %v904_v32  ;;  %v859_v23 = vld [vmem:[%s4286_s3 + $0x398] sm:$0xff]  ;;  %v857_v29 = vld [vmem:[%s4286_s3 + $0x388] sm:$0xff] }
 0x167   : > { %1063 = vmatpush.msra.mxu3 %v878_v34  ;;  %1100 = vmatpush.msra.mxu1 %v948_v7  ;;  %v837_v34 = vld [vmem:[%s4286_s3 + $0x2e8] sm:$0xff]  ;;  %v867_v7 = vld [vmem:[%s4286_s3 + $0x3d8] sm:$0xff] }
 0x168   : > { %v791_v32 = vld [vmem:[%s4286_s3 + $0x178] sm:$0xff] }
 0x169   : > { %1064 = vmatpush.msra.mxu3 %v876_v38  ;;  %1101 = vmatpush.msra.mxu1 %v946_v10  ;;  %v829_v38 = vld [vmem:[%s4286_s3 + $0x2a8] sm:$0xff] }
 0x16b   : > { %1065 = vmatpush.msra.mxu3 %v874_v42  ;;  %1102 = vmatpush.msra.mxu1 %v944_v61  ;;  %v821_v42 = vld [vmem:[%s4286_s3 + $0x268] sm:$0xff] }
 0x16c   : > { %v897_v61 = vld [vmem:[%s4286_s3 + $0x4c8] sm:$0xff] }
 0x16d   : > { %1066 = vmatpush.msra.mxu3 %v872_v46  ;;  %1103 = vmatpush.msra.mxu1 %v942_v16  ;;  %v813_v46 = vld [vmem:[%s4286_s3 + $0x228] sm:$0xff]  ;;  %v799_v16 = vld [vmem:[%s4286_s3 + $0x1b8] sm:$0xff] }
 0x16f   : > { %1104 = vmatpush.msra.mxu1 %v940_v22  ;;  %v795_v22 = vld [vmem:[%s4286_s3 + $0x198] sm:$0xff] }
 0x171   : > { %1105 = vmatpush.msra.mxu1 %v938_v28  ;;  %v793_v28 = vld [vmem:[%s4286_s3 + $0x188] sm:$0xff] }
 0x173   : > { %1106 = vmatpush.msra.mxu1 %v936_v33  ;;  %v855_v33 = vld [vmem:[%s4286_s3 + $0x378] sm:$0xff] }
 0x19c   : > { %v3175_v18 = vpop.permute.xlu2 %2490 }
 0x19d   : > { %v2493_v19 = vunpack.i.h.bf16 %v3175_v18  ;;  %v2492_v20 = vunpack.i.l.bf16 %v3175_v18  ;;  %v797_v18 = vld [vmem:[%s4286_s3 + $0x1a8] sm:$0xff] }
 0x19f   : > { %v724_v24 = vsel %vm723_vm4, %v2492_v20, %v2493_v19  ;;  %v893_v20 = vld [vmem:[%s4286_s3 + $0x4a8] sm:$0xff] }
 0x1a0   : > { %v3199_v30 = vmax.f32 %v2854_v26, %v724_v24  ;;  %v745_v26 = vld [vmem:[%s4286_s3 + $0x8] sm:$0xff]  ;;  %v891_v24 = vld [vmem:[%s4286_s3 + $0x498] sm:$0xff] }
 0x1a1   : > { %1126 = vmatpush.msra.mxu2 %v745_v26  ;;  %v887_v26 = vld [vmem:[%s4286_s3 + $0x478] sm:$0xff] }
 0x1a2   : > { %987 = vmatmul.f32.vlgmr.msrb.gmra.mxu3 %v3199_v30 }
 0x1a3   : > { %1151 = vmatpush.msrb.mxu3 %v839_v31  ;;  %v951_v31 = vld [vmem:[%s4286_s3 + $0x678] sm:$0xff] }
 0x1a4   : > { %v722_v5 = vpop.permute.xlu2 %721 }
 0x1a5   : > { %1152 = vmatpush.msrb.mxu3 %v837_v34  ;;  %v3323_v15 = vmax.f32 %v2922_v59, %v722_v5  ;;  %v957_v59 = vld [vmem:[%s4286_s3 + $0x6a8] sm:$0xff] }
 0x1a6   : > { %v949_v34 = vld [vmem:[%s4286_s3 + $0x668] sm:$0xff] }
 0x1a7   : > { %1153 = vmatpush.msrb.mxu3 %v835_v35  ;;  %v789_v35 = vld [vmem:[%s4286_s3 + $0x168] sm:$0xff] }
 0x1a9   : > { %1154 = vmatpush.msrb.mxu3 %v833_v36  ;;  %v853_v36 = vld [vmem:[%s4286_s3 + $0x368] sm:$0xff] }
 0x1ab   : > { %1155 = vmatpush.msrb.mxu3 %v831_v37  ;;  %v885_v37 = vld [vmem:[%s4286_s3 + $0x468] sm:$0xff] }
 0x1ad   : > { %1156 = vmatpush.msrb.mxu3 %v829_v38  ;;  %v947_v38 = vld [vmem:[%s4286_s3 + $0x658] sm:$0xff] }
 0x1af   : > { %1157 = vmatpush.msrb.mxu3 %v827_v39  ;;  %v787_v39 = vld [vmem:[%s4286_s3 + $0x158] sm:$0xff] }
 0x1b1   : > { %1158 = vmatpush.msrb.mxu3 %v825_v40  ;;  %v851_v40 = vld [vmem:[%s4286_s3 + $0x358] sm:$0xff] }
 0x1b3   : > { %1159 = vmatpush.msrb.mxu3 %v823_v41  ;;  %v883_v41 = vld [vmem:[%s4286_s3 + $0x458] sm:$0xff] }
 0x1b5   : > { %1160 = vmatpush.msrb.mxu3 %v821_v42  ;;  %v945_v42 = vld [vmem:[%s4286_s3 + $0x648] sm:$0xff] }
 0x1b7   : > { %1161 = vmatpush.msrb.mxu3 %v819_v43  ;;  %v785_v43 = vld [vmem:[%s4286_s3 + $0x148] sm:$0xff] }
 0x1b9   : > { %1162 = vmatpush.msrb.mxu3 %v817_v44  ;;  %v849_v44 = vld [vmem:[%s4286_s3 + $0x348] sm:$0xff] }
 0x1ba   : > { %v718_v54 = vpop.permute.xlu1 %717 }
 0x1bb   : > { %1163 = vmatpush.msrb.mxu3 %v815_v45  ;;  %v881_v45 = vld [vmem:[%s4286_s3 + $0x448] sm:$0xff] }
 0x1bc   : > { %v2496_v47 = vpop.permute.xlu0 %2495 }
 0x1bd   : > { %v2498_v49 = vunpack.i.h.bf16 %v2496_v47  ;;  %v2497_v50 = vunpack.i.l.bf16 %v2496_v47  ;;  %1164 = vmatpush.msrb.mxu3 %v813_v46  ;;  %v943_v46 = vld [vmem:[%s4286_s3 + $0x638] sm:$0xff] }
 0x1be   : > { %v783_v47 = vld [vmem:[%s4286_s3 + $0x138] sm:$0xff] }
 0x1bf   : > { %v727_v56 = vsel %vm723_vm4, %v2498_v49, %v718_v54  ;;  %v725_v57 = vsel %vm723_vm4, %v2493_v19, %v2497_v50  ;;  %v726_v60 = vsel %vm723_vm4, %v2497_v50, %v2498_v49  ;;  %1165 = vmatpush.msrb.mxu3 %v811_v48  ;;  %v861_v19 = vld [vmem:[%s4286_s3 + $0x3a8] sm:$0xff]  ;;  %v847_v48 = vld [vmem:[%s4286_s3 + $0x338] sm:$0xff] }
 0x1c0   : > { %v3263_v58 = vmax.f32 %v2913_v53, %v727_v56  ;;  %v3266_v62 = vmax.f32 %v2856_v27, %v725_v57  ;;  %v3269_v63 = vmax.f32 %v2910_v52, %v726_v60  ;;  %v805_v27 = vld [vmem:[%s4286_s3 + $0x1e8] sm:$0xff]  ;;  %v879_v49 = vld [vmem:[%s4286_s3 + $0x438] sm:$0xff] }
 0x1c1   : > { %1166 = vmatpush.msrb.mxu3 %v809_v55  ;;  %v869_v52 = vld [vmem:[%s4286_s3 + $0x3e8] sm:$0xff]  ;;  %v939_v57 = vld [vmem:[%s4286_s3 + $0x618] sm:$0xff] }
 0x1c2   : > { %1007 = vmatmul.f32.vlgmr.msra.gmra.mxu0 %v3266_v62  ;;  %1027 = vmatmul.f32.vlgmr.msrb.gmra.mxu1 %v3269_v63  ;;  %v901_v53 = vld [vmem:[%s4286_s3 + $0x4e8] sm:$0xff]  ;;  %v779_v60 = vld [vmem:[%s4286_s3 + $0x118] sm:$0xff] }
 0x1c3   : > { %1047 = vmatmul.f32.vlgmr.msrb.gmra.mxu2 %v3263_v58  ;;  %1131 = vmatpush.msrb.mxu1 %v807_v0  ;;  %v941_v50 = vld [vmem:[%s4286_s3 + $0x628] sm:$0xff]  ;;  %v875_v0 = vld [vmem:[%s4286_s3 + $0x418] sm:$0xff] }
 0x1c4   : > { %1171 = vmatpush.msra.mxu0 %v871_v1  ;;  %1191 = vmatpush.msrb.mxu2 %v903_v2  ;;  %v720_v3 = vpop.permute.xlu0 %719  ;;  %v845_v55 = vld [vmem:[%s4286_s3 + $0x328] sm:$0xff] }
 0x1c5   : > { %v728_v6 = vsel %vm723_vm4, %v718_v54, %v720_v3  ;;  %1132 = vmatpush.msrb.mxu1 %v805_v27  ;;  %v729_v9 = vsel %vm723_vm4, %v720_v3, %v722_v5  ;;  %v781_v54 = vld [vmem:[%s4286_s3 + $0x128] sm:$0xff] }
 0x1c6   : > { %v3304_v10 = vmax.f32 %v2907_v51, %v728_v6  ;;  %1172 = vmatpush.msra.mxu0 %v869_v52  ;;  %1192 = vmatpush.msrb.mxu2 %v901_v53  ;;  %v959_v51 = vld [vmem:[%s4286_s3 + $0x6b8] sm:$0x7f]  ;;  %v3319_v14 = vmax.f32 %v2978_v11, %v729_v9  ;;  %v877_v56 = vld [vmem:[%s4286_s3 + $0x428] sm:$0xff] }
 0x1c7   : > { %1133 = vmatpush.msrb.mxu1 %v803_v4  ;;  %v895_v11 = vld [vmem:[%s4286_s3 + $0x4b8] sm:$0xff]  ;;  %v937_v1 = vld [vmem:[%s4286_s3 + $0x608] sm:$0xff] }
 0x1c8   : > { %1173 = vmatpush.msra.mxu0 %v867_v7  ;;  %1193 = vmatpush.msrb.mxu2 %v899_v8  ;;  %v777_v2 = vld [vmem:[%s4286_s3 + $0x108] sm:$0xff]  ;;  %v935_v53 = vld [vmem:[%s4286_s3 + $0x5f8] sm:$0xff] }
 0x1c9   : > { %1067 = vmatmul.f32.vlgmr.msra.gmra.mxu3 %v3304_v10  ;;  %1134 = vmatpush.msrb.mxu1 %v801_v12  ;;  %v841_v27 = vld [vmem:[%s4286_s3 + $0x308] sm:$0xff]  ;;  %v931_v4 = vld [vmem:[%s4286_s3 + $0x5d8] sm:$0xff] }
 0x1ca   : > { %1174 = vmatpush.msra.mxu0 %v865_v13  ;;  %1194 = vmatpush.msrb.mxu2 %v897_v61  ;;  %v873_v52 = vld [vmem:[%s4286_s3 + $0x408] sm:$0xff]  ;;  %v923_v6 = vld [vmem:[%s4286_s3 + $0x598] sm:$0xff] }
 0x1cb   : > { %2384 = vmatpush.msk.msra.mxu3 %vm964_vm3, %v959_v51  ;;  %1087 = vmatmul.f32.vlgmr.msrb.gmra.mxu0 %v3319_v14  ;;  %v933_v3 = vld [vmem:[%s4286_s3 + $0x5e8] sm:$0xff]  ;;  %v919_v8 = vld [vmem:[%s4286_s3 + $0x578] sm:$0xff]  ;;  %vm1719_vm3 = vcmask 1045504  }
 0x1cc   : > { %2383 = vmatmul.msk.f32.vlgmr.msra.gmra.mxu1 %vm960_vm5, %v3323_v15  ;;  %1127 = vmatmul.f32.vlgmr.msra.gmra.mxu2 %v3199_v30  ;;  %v889_v30 = vld [vmem:[%s4286_s3 + $0x488] sm:$0xff]  ;;  %v911_v13 = vld [vmem:[%s4286_s3 + $0x538] sm:$0xff] }
 0x1cd   : > { %1135 = vmatpush.msrb.mxu1 %v799_v16  ;;  %1175 = vmatpush.msra.mxu0 %v863_v17  ;;  %v929_v5 = vld [vmem:[%s4286_s3 + $0x5c8] sm:$0xff]  ;;  %v907_v51 = vld [vmem:[%s4286_s3 + $0x518] sm:$0xff] }
 0x1ce   : > { %1195 = vmatpush.msrb.mxu2 %v895_v11  ;;  %1236 = vmatpush.msra.mxu3 %v957_v59  ;;  %v921_v7 = vld [vmem:[%s4286_s3 + $0x588] sm:$0xff] }
 0x1cf   : > { %1136 = vmatpush.msrb.mxu1 %v797_v18  ;;  %1176 = vmatpush.msra.mxu0 %v861_v19  ;;  %v917_v9 = vld [vmem:[%s4286_s3 + $0x568] sm:$0xff] }
 0x1d0   : > { %1196 = vmatpush.msrb.mxu2 %v893_v20  ;;  %1237 = vmatpush.msra.mxu3 %v955_v21  ;;  %v913_v12 = vld [vmem:[%s4286_s3 + $0x548] sm:$0xff] }
 0x1d1   : > { %1137 = vmatpush.msrb.mxu1 %v795_v22  ;;  %1177 = vmatpush.msra.mxu0 %v859_v23  ;;  %v909_v61 = vld [vmem:[%s4286_s3 + $0x528] sm:$0xff] }
 0x1d2   : > { %1197 = vmatpush.msrb.mxu2 %v891_v24  ;;  %1238 = vmatpush.msra.mxu3 %v953_v25 }
 0x1d3   : > { %1138 = vmatpush.msrb.mxu1 %v793_v28  ;;  %1167 = vmatmul.f32.vlgmr.msrb.gmra.mxu3 %v3269_v63  ;;  %v843_v63 = vld [vmem:[%s4286_s3 + $0x318] sm:$0xff] }
 0x1d4   : > { %1178 = vmatpush.msra.mxu0 %v857_v29  ;;  %1198 = vmatpush.msrb.mxu2 %v889_v30 }
 0x1d5   : > { %1239 = vmatpush.msra.mxu3 %v951_v31  ;;  %1139 = vmatpush.msrb.mxu1 %v791_v32 }
 0x1d6   : > { %1179 = vmatpush.msra.mxu0 %v855_v33  ;;  %1199 = vmatpush.msrb.mxu2 %v887_v26 }
 0x1d7   : > { %1240 = vmatpush.msra.mxu3 %v949_v34  ;;  %1140 = vmatpush.msrb.mxu1 %v789_v35 }
 0x1d8   : > { %1180 = vmatpush.msra.mxu0 %v853_v36  ;;  %1200 = vmatpush.msrb.mxu2 %v885_v37 }
 0x1d9   : > { %1241 = vmatpush.msra.mxu3 %v947_v38  ;;  %1141 = vmatpush.msrb.mxu1 %v787_v39 }
 0x1da   : > { %1181 = vmatpush.msra.mxu0 %v851_v40  ;;  %1201 = vmatpush.msrb.mxu2 %v883_v41 }
 0x1db   : > { %1242 = vmatpush.msra.mxu3 %v945_v42  ;;  %1142 = vmatpush.msrb.mxu1 %v785_v43 }
 0x1dc   : > { %1182 = vmatpush.msra.mxu0 %v849_v44  ;;  %1202 = vmatpush.msrb.mxu2 %v881_v45 }
 0x1dd   : > { %1243 = vmatpush.msra.mxu3 %v943_v46  ;;  %1143 = vmatpush.msrb.mxu1 %v783_v47 }
 0x1de   : > { %1183 = vmatpush.msra.mxu0 %v847_v48  ;;  %1203 = vmatpush.msrb.mxu2 %v879_v49 }
 0x1df   : > { %1244 = vmatpush.msra.mxu3 %v941_v50  ;;  %1144 = vmatpush.msrb.mxu1 %v781_v54 }
 0x1e0   : > { %1184 = vmatpush.msra.mxu0 %v845_v55  ;;  %1204 = vmatpush.msrb.mxu2 %v877_v56 }
 0x1e1   : > { %1245 = vmatpush.msra.mxu3 %v939_v57  ;;  %1145 = vmatpush.msrb.mxu1 %v779_v60 }
 0x1e2   : > { %1185 = vmatpush.msra.mxu0 %v843_v63  ;;  %1205 = vmatpush.msrb.mxu2 %v875_v0 }
 0x1e3   : > { %1246 = vmatpush.msra.mxu3 %v937_v1  ;;  %1146 = vmatpush.msrb.mxu1 %v777_v2 }
 0x1e4   : > { %2385 = vmatmul.msk.f32.vlgmr.msra.gmra.mxu3 %vm960_vm5, %v3323_v15  ;;  %1186 = vmatpush.msra.mxu0 %v841_v27  ;;  %v905_v15 = vld [vmem:[%s4286_s3 + $0x508] sm:$0xff]  ;;  %vm1293_vm5 = vcmask 97284  }
 0x1e5   : > { %1206 = vmatpush.msrb.mxu2 %v873_v52  ;;  %1147 = vmatmul.f32.vlgmr.msrb.gmra.mxu1 %v3266_v62  ;;  %v925_v62 = vld [vmem:[%s4286_s3 + $0x5a8] sm:$0xff] }
 0x1e6   : > { %1187 = vmatmul.f32.vlgmr.msra.gmra.mxu0 %v3263_v58  ;;  %1207 = vmatmul.f32.vlgmr.msrb.gmra.mxu2 %v3304_v10  ;;  %v927_v58 = vld [vmem:[%s4286_s3 + $0x5b8] sm:$0xff] }
 0x1e7   : > { %1211 = vmatpush.msra.mxu1 %v935_v53  ;;  %v915_v10 = vld [vmem:[%s4286_s3 + $0x558] sm:$0xff]  ;;  %s2593_s3 = smov 22  }
 0x1e9   : > { %1212 = vmatpush.msra.mxu1 %v933_v3 }
 0x1eb   : > { %1213 = vmatpush.msra.mxu1 %v931_v4 }
 0x1ed   : > { %1214 = vmatpush.msra.mxu1 %v929_v5 }
 0x1ef   : > { %1215 = vmatpush.msra.mxu1 %v927_v58 }
 0x1f1   : > { %1216 = vmatpush.msra.mxu1 %v925_v62 }
 0x1f3   : > { %1217 = vmatpush.msra.mxu1 %v923_v6 }
 0x1f5   : > { %1218 = vmatpush.msra.mxu1 %v921_v7 }
 0x1f7   : > { %1219 = vmatpush.msra.mxu1 %v919_v8 }
 0x1f9   : > { %1220 = vmatpush.msra.mxu1 %v917_v9 }
 0x1fb   : > { %1221 = vmatpush.msra.mxu1 %v915_v10 }
 0x1fd   : > { %1222 = vmatpush.msra.mxu1 %v913_v12 }
 0x1ff   : > { %1223 = vmatpush.msra.mxu1 %v911_v13 }
 0x201   : > { %1224 = vmatpush.msra.mxu1 %v909_v61 }
 0x203   : > { %1225 = vmatpush.msra.mxu1 %v907_v51 }
 0x205   : > { %1226 = vmatpush.msra.mxu1 %v905_v15 }
 0x206   : > { %1227 = vmatmul.f32.vlgmr.msra.gmra.mxu1 %v3319_v14 }
 0x225   : > { %v988_v17 = vpop.f32.mrf.mxu3 }
 0x23f   : > { %v1008_v16 = vpop.f32.mrf.mxu0  ;;  %v1028_v59 = vpop.f32.mrf.mxu1 }
 0x240   : > { %v1009_v11 = vadd.f32 %v1008_v16, %v988_v17 }
 0x242   : > { %v1029_v19 = vadd.f32 %v1028_v59, %v1009_v11 }
 0x246   : > { %v1048_v18 = vpop.f32.mrf.mxu2 }
 0x247   : > { %v1049_v20 = vadd.f32 %v1048_v18, %v1029_v19 }
 0x248   : > { %v1088_v23 = vpop.f32.mrf.mxu0 }
 0x249   : > { %v1108_v25 = vpop.f32.mrf.mxu1 }
 0x24c   : > { %v1068_v21 = vpop.f32.mrf.mxu3 }
 0x24d   : > { %v1069_v22 = vadd.f32 %v1068_v21, %v1049_v20 }
 0x24f   : > { %v1089_v24 = vadd.f32 %v1088_v23, %v1069_v22  ;;  %v1128_v48 = vpop.f32.mrf.mxu2 }
 0x251   : > { %v1109_v28 = vadd.f32 %v1108_v25, %v1089_v24 }
 0x253   : > { %1251 = vst [vmem:[#allocation3] sm:$0x3f] %v1109_v28 }
 0x256   : > { %v1168_v56 = vpop.f32.mrf.mxu3 }
 0x25a   : > { %v1644_v29 = vld [vmem:[#allocation3] sm:$0x3f] }
 0x25b   : > { %v1578_v30 = vld [vmem:[#allocation3] sm:$0x3f]  ;;  %1648 = vrot.lane.b32.xlu2 %v1644_v29, %s2568_s1 }
 0x25c   : > { %v1381_v31 = vld [vmem:[#allocation3] sm:$0x3f]  ;;  %1582 = vrot.lane.b32.xlu0 %v1578_v30, %s4274_s21 }
 0x25d   : > { %1385 = vrot.lane.b32.xlu1 %v1381_v31, %s2570_s20  ;;  %v1544_v14 = vld [vmem:[#allocation3] sm:$0x3f] }
 0x25e   : > { %v1592_v32 = vld [vmem:[#allocation3] sm:$0x3f]  ;;  %v1548_v33 = vrot.slane %v1544_v14, 4 }
 0x25f   : > { %v1512_v26 = vld [vmem:[#allocation3] sm:$0x3f]  ;;  %v1596_v34 = vrot.slane %v1592_v32, 2 }
 0x260   : > { %v1254_v35 = vld [vmem:[#allocation3] sm:$0x3f] }
 0x261   : > { %v1610_v36 = vld [vmem:[#allocation3] sm:$0x3f]  ;;  %1256 = vst [vmem:[#allocation4] sm:$0x3f] %v1254_v35 }
 0x262   : > { %v1562_v37 = vld [vmem:[#allocation3] sm:$0x3f]  ;;  %v1614_v38 = vrot.slane %v1610_v36, 4  ;;  %v1148_v47 = vpop.f32.mrf.mxu1 }
 0x263   : > { %1516 = vrot.lane.b32.xlu2 %v1512_v26, %s2572_s2  ;;  %v1447_v39 = vld [vmem:[#allocation3] sm:$0x3f]  ;;  %v1566_v40 = vrot.slane %v1562_v37, 6  ;;  %v1149_v49 = vadd.f32 %v1148_v47, %v1128_v48  ;;  %v1188_v1 = vpop.f32.mrf.mxu0 }
 0x264   : > { %1550 = vrot.lane.b32.xlu0 %v1548_v33, %s4264_s22  ;;  %v1496_v41 = vld [vmem:[#allocation3] sm:$0x3f]  ;;  %s4269_s22 = smov 97  }
 0x265   : > { %1598 = vrot.lane.b32.xlu1 %v1596_v34, %s4262_s23  ;;  %v1628_v42 = vld [vmem:[#allocation3] sm:$0x3f]  ;;  %v1500_v44 = vrot.slane %v1496_v41, 6  ;;  %s4266_s23 = smov 69   ;;  %v1169_v63 = vadd.f32 %v1168_v56, %v1149_v49 }
 0x266   : > { %v1526_v43 = vld [vmem:[#allocation3] sm:$0x3f]  ;;  %v1632_v45 = vrot.slane %v1628_v42, 6 }
 0x267   : > { %v1530_v46 = vrot.slane %v1526_v43, 2  ;;  %v1461_v50 = vld [vmem:[#allocation3] sm:$0x3f]  ;;  %v1189_v2 = vadd.f32 %v1188_v1, %v1169_v63  ;;  %v1248_v8 = vpop.f32.mrf.mxu3 }
 0x268   : > { %v1479_v54 = vld [vmem:[#allocation3] sm:$0x3f]  ;;  %v1465_v57 = vrot.slane %v1461_v50, 2 }
 0x269   : > { %v1413_v55 = vld [vmem:[#allocation3] sm:$0x3f]  ;;  %v1483_v60 = vrot.slane %v1479_v54, 4  ;;  %v1208_v53 = vpop.f32.mrf.mxu2 }
 0x26a   : > { %v1417_v0 = vrot.slane %v1413_v55, 4  ;;  %v1431_v27 = vld [vmem:[#allocation3] sm:$0x3f]  ;;  %v1209_v58 = vadd.f32 %v1208_v53, %v1189_v2 }
 0x26b   : > { %1451 = vrot.lane.b32.xlu2 %v1447_v39, %s2575_s30  ;;  %v1347_v52 = vld [vmem:[#allocation3] sm:$0x3f]  ;;  %v1435_v4 = vrot.slane %v1431_v27, 6 }
 0x26c   : > { %1616 = vrot.lane.b32.xlu0 %v1614_v38, %s4263_s24  ;;  %s4268_s24 = smov 84   ;;  %v1365_v3 = vld [vmem:[#allocation3] sm:$0x3f]  ;;  %v1351_v5 = vrot.slane %v1347_v52, 4 }
 0x26d   : > { %1568 = vrot.lane.b32.xlu1 %v1566_v40, %s2576_s16  ;;  %v1369_v62 = vrot.slane %v1365_v3, 6  ;;  %v1395_v10 = vld [vmem:[#allocation3] sm:$0x3f] }
 0x26e   : > { %v1399_v12 = vrot.slane %v1395_v10, 2  ;;  %v1298_v53 = vld [vmem:[#allocation3] sm:$0x3f] }
 0x26f   : > { %v1302_v3 = vrot.slane %v1298_v53, 6 }
 0x273   : > { %1634 = vrot.lane.b32.xlu2 %v1632_v45, %s4266_s23  ;;  %s2582_s23 = smov 99  }
 0x274   : > { %1502 = vrot.lane.b32.xlu0 %v1500_v44, %s4265_s0  ;;  %s4271_s0 = smov 100  }
 0x275   : > { %1532 = vrot.lane.b32.xlu1 %v1530_v46, %s4268_s24  ;;  %s2583_s24 = smov 113   ;;  %v1315_v46 = vld [vmem:[#allocation3] sm:$0x3f] }
 0x27b   : > { %1485 = vrot.lane.b32.xlu2 %v1483_v60, %s4287_s15  ;;  %v1329_v60 = vld [vmem:[#allocation3] sm:$0x3f] }
 0x27c   : > { %1467 = vrot.lane.b32.xlu0 %v1465_v57, %s4269_s22  ;;  %s4273_s22 = smov 112   ;;  %v1333_v2 = vrot.slane %v1329_v60, 2 }
 0x27d   : > { %1419 = vrot.lane.b32.xlu1 %v1417_v0, %s4271_s0  ;;  %s2585_s0 = smov 110  }
 0x283   : > { %v1228_v6 = vpop.f32.mrf.mxu1  ;;  %1437 = vrot.lane.b32.xlu2 %v1435_v4, %s2582_s23  ;;  %v1278_v4 = vld [vmem:[#allocation3] sm:$0x3f] }
 0x284   : > { %1353 = vrot.lane.b32.xlu0 %v1351_v5, %s2583_s24  ;;  %v1229_v7 = vadd.f32 %v1228_v6, %v1209_v58  ;;  %v1259_v5 = vld [vmem:[#allocation3] sm:$0x3f]  ;;  %v1282_v6 = vrot.slane %v1278_v4, 4 }
 0x285   : > { %1371 = vrot.lane.b32.xlu1 %v1369_v62, %s4273_s22  ;;  %s2586_s22 = smov 124  }
 0x286   : > { %v1249_v9 = vadd.f32 %v1248_v8, %v1229_v7  ;;  %v1263_v7 = vrot.slane %v1259_v5, 2 }
 0x288   : > { %1253 = vst.msk [vmem:[#allocation3 + $0x8] sm:$0x3f] %vm1252_vm6, %v1249_v9  ;;  %vm1296_vm6 = vcmask 91136  }
 0x28b   : > { %1401 = vrot.lane.b32.xlu2 %v1399_v12, %s2585_s0 }
 0x28f   : > { %v1579_v13 = vld [vmem:[#allocation3 + $0x8] sm:$0x3f] }
 0x290   : > { %v1645_v61 = vld [vmem:[#allocation3 + $0x8] sm:$0x3f]  ;;  %1584 = vrot.lane.b32.xlu1 %v1579_v13, %s4274_s21  ;;  %s4292_s21 = smov 84  }
 0x291   : > { %1650 = vrot.lane.b32.xlu0 %v1645_v61, %s2568_s1  ;;  %v1513_v51 = vld [vmem:[#allocation3 + $0x8] sm:$0x3f]  ;;  %s4288_s1 = smov 83  }
 0x292   : > { %v1448_v15 = vld [vmem:[#allocation3 + $0x8] sm:$0x3f] }
 0x293   : > { %1518 = vrot.lane.b32.xlu2 %v1513_v51, %s2572_s2  ;;  %v1382_v16 = vld [vmem:[#allocation3 + $0x8] sm:$0x3f]  ;;  %s4289_s2 = smov 71  }
 0x294   : > { %v1316_v17 = vld [vmem:[#allocation3 + $0x8] sm:$0x3f] }
 0x295   : > { %v1255_v11 = vld [vmem:[#allocation3 + $0x8] sm:$0x3f] }
 0x296   : > { %v1563_v59 = vld [vmem:[#allocation3 + $0x8] sm:$0x3f]  ;;  %1258 = vst.msk [vmem:[#allocation4 + $0x8] sm:$0x3f] %vm1257_vm7, %v1255_v11 }
 0x297   : > { %v1545_v18 = vld [vmem:[#allocation3 + $0x8] sm:$0x3f]  ;;  %v1567_v19 = vrot.slane %v1563_v59, 6 }
 0x298   : > { %1453 = vrot.lane.b32.xlu1 %v1448_v15, %s2575_s30  ;;  %v1549_v20 = vrot.slane %v1545_v18, 4  ;;  %v1593_v21 = vld [vmem:[#allocation3 + $0x8] sm:$0x3f]  ;;  %s4291_s30 = smov 86  }
 0x299   : > { %1387 = vrot.lane.b32.xlu0 %v1382_v16, %s2570_s20  ;;  %v1597_v22 = vrot.slane %v1593_v21, 2  ;;  %v1462_v23 = vld [vmem:[#allocation3 + $0x8] sm:$0x3f]  ;;  %s4290_s20 = smov 97  }
 0x29a   : > { %v1497_v24 = vld [vmem:[#allocation3 + $0x8] sm:$0x3f]  ;;  %v1466_v25 = vrot.slane %v1462_v23, 2 }
 0x29b   : > { %1321 = vrot.lane.b32.xlu2 %v1316_v17, %s2586_s22  ;;  %v1501_v28 = vrot.slane %v1497_v24, 6  ;;  %v1527_v29 = vld [vmem:[#allocation3 + $0x8] sm:$0x3f] }
 0x29c   : > { %v1531_v30 = vrot.slane %v1527_v29, 2  ;;  %v1611_v31 = vld [vmem:[#allocation3 + $0x8] sm:$0x3f] }
 0x29d   : > { %v1629_v14 = vld [vmem:[#allocation3 + $0x8] sm:$0x3f]  ;;  %v1615_v32 = vrot.slane %v1611_v31, 4 }
 0x29e   : > { %v1633_v33 = vrot.slane %v1629_v14, 6  ;;  %v1480_v26 = vld [vmem:[#allocation3 + $0x8] sm:$0x3f] }
 0x29f   : > { %v1484_v34 = vrot.slane %v1480_v26, 4  ;;  %v1414_v35 = vld [vmem:[#allocation3 + $0x8] sm:$0x3f] }
 0x2a0   : > { %1570 = vrot.lane.b32.xlu1 %v1567_v19, %s2576_s16  ;;  %s4293_s16 = smov 70   ;;  %v1348_v36 = vld [vmem:[#allocation3 + $0x8] sm:$0x3f]  ;;  %v1418_v38 = vrot.slane %v1414_v35, 4 }
 0x2a1   : > { %1552 = vrot.lane.b32.xlu0 %v1549_v20, %s4288_s1  ;;  %s4294_s1 = smov 69   ;;  %v1352_v39 = vrot.slane %v1348_v36, 4  ;;  %v1432_v40 = vld [vmem:[#allocation3 + $0x8] sm:$0x3f] }
 0x2a2   : > { %v1436_v41 = vrot.slane %v1432_v40, 6  ;;  %v1396_v42 = vld [vmem:[#allocation3 + $0x8] sm:$0x3f] }
 0x2a3   : > { %1600 = vrot.lane.b32.xlu2 %v1597_v22, %s4289_s2  ;;  %v1400_v44 = vrot.slane %v1396_v42, 2  ;;  %v1279_v45 = vld [vmem:[#allocation3 + $0x8] sm:$0x3f]  ;;  %s2591_s2 = smov 50  }
 0x2a4   : > { %v1283_v47 = vrot.slane %v1279_v45, 4  ;;  %v1366_v48 = vld [vmem:[#allocation3 + $0x8] sm:$0x3f] }
 0x2a5   : > { %v1330_v49 = vld [vmem:[#allocation3 + $0x8] sm:$0x3f]  ;;  %v1370_v54 = vrot.slane %v1366_v48, 6 }
 0x2a6   : > { %v1334_v55 = vrot.slane %v1330_v49, 2  ;;  %v1260_v56 = vld [vmem:[#allocation3 + $0x8] sm:$0x3f] }
 0x2a7   : > { %v1264_v57 = vrot.slane %v1260_v56, 2  ;;  %v1299_v63 = vld [vmem:[#allocation3 + $0x8] sm:$0x3f] }
 0x2a8   : > { %1469 = vrot.lane.b32.xlu1 %v1466_v25, %s4290_s20  ;;  %v1303_v27 = vrot.slane %v1299_v63, 6 }
 0x2a9   : > { %1504 = vrot.lane.b32.xlu0 %v1501_v28, %s4291_s30  ;;  %s2592_s30 = smov 75  }
 0x2ab   : > { %1534 = vrot.lane.b32.xlu2 %v1531_v30, %s4292_s21  ;;  %s4295_s21 = smov 100  }
 0x2b0   : > { %1618 = vrot.lane.b32.xlu1 %v1615_v32, %s4293_s16  ;;  %s2597_s16 = smov 19  }
 0x2b1   : > { %1636 = vrot.lane.b32.xlu0 %v1633_v33, %s4294_s1 }
 0x2b3   : > { %1487 = vrot.lane.b32.xlu2 %v1484_v34, %s4287_s15  ;;  %s2587_s15 = smov 126  }
 0x2b5   : > { %v3561_v37 = vpop.permute.xlu2 %1648 }
 0x2b8   : > { %1421 = vrot.lane.b32.xlu1 %v1418_v38, %s4295_s21 }
 0x2b9   : > { %1355 = vrot.lane.b32.xlu0 %v1352_v39, %s2583_s24  ;;  %s2588_s24 = smov 114  }
 0x2bb   : > { %1439 = vrot.lane.b32.xlu2 %v1436_v41, %s2582_s23  ;;  %s4296_s23 = smov 112  }
 0x2bd   : > { %v1517_v43 = vpop.permute.xlu2 %1516 }
 0x2c0   : > { %1403 = vrot.lane.b32.xlu1 %v1400_v44, %s2585_s0  ;;  %s4297_s0 = smov 127  }
 0x2c1   : > { %1319 = vrot.lane.b32.xlu0 %v1315_v46, %s2586_s22  ;;  %s4275_s22 = smov 125  }
 0x2c3   : > { %1286 = vrot.lane.b32.xlu2 %v1283_v47, %s2587_s15 }
 0x2c5   : > { %v3569_v50 = vpop.permute.xlu2 %1451 }
 0x2c8   : > { %1373 = vrot.lane.b32.xlu1 %v1370_v54, %s4296_s23  ;;  %s4299_s23 = smov 125  }
 0x2c9   : > { %1337 = vrot.lane.b32.xlu0 %v1334_v55, %s2588_s24 }
 0x2cb   : > { %1267 = vrot.lane.b32.xlu2 %v1264_v57, %s4297_s0 }
 0x2cd   : > { %v3574_v1 = vpop.permute.xlu2 %1634 }
 0x2ce   : > { %v1583_v0 = vpop.permute.xlu0 %1582 }
 0x2cf   : > { %v3576_v52 = vpop.permute.xlu1 %1385 }
 0x2d0   : > { %1335 = vrot.lane.b32.xlu1 %v1333_v2, %s2588_s24 }
 0x2d1   : > { %1306 = vrot.lane.b32.xlu0 %v1303_v27, %s4275_s22 }
 0x2d3   : > { %1304 = vrot.lane.b32.xlu2 %v1302_v3, %s4275_s22  ;;  %s2594_s22 = smov 47  }
 0x2d5   : > { %v3583_v62 = vpop.permute.xlu2 %1485 }
 0x2d6   : > { %v3581_v58 = vpop.permute.xlu0 %1550 }
 0x2d7   : > { %v1599_v8 = vpop.permute.xlu1 %1598 }
 0x2d8   : > { %1284 = vrot.lane.b32.xlu1 %v1282_v6, %s2587_s15  ;;  %s2590_s15 = smov 25  }
 0x2d9   : > { %1265 = vrot.lane.b32.xlu0 %v1263_v7, %s4297_s0 }
 0x2dd   : > { %v3589_v10 = vpop.permute.xlu2 %1437 }
 0x2de   : > { %v3587_v9 = vpop.permute.xlu0 %1616 }
 0x2df   : > { %v3591_v12 = vpop.permute.xlu1 %1568 }
 0x2e5   : > { %v3595_v61 = vpop.permute.xlu2 %1401 }
 0x2e6   : > { %v3593_v13 = vpop.permute.xlu0 %1502 }
 0x2e7   : > { %v1533_v51 = vpop.permute.xlu1 %1532 }
 0x2ed   : > { %v1519_v15 = vpop.permute.xlu2 %1518 }
 0x2ee   : > { %v3597_v16 = vpop.permute.xlu0 %1467  ;;  %v1521_v17 = vsel %vm1520_vm8, %v1517_v43, %v1519_v15  ;;  %1525 = vst.msk [vmem:[#allocation4 + $0xc8] sm:$0x3f] %vm1257_vm7, %v1519_v15  ;;  %vm1313_vm8 = vcmask 97282  }
 0x2ef   : > { %v3600_v11 = vpop.permute.xlu1 %1419  ;;  %1524 = vst [vmem:[#allocation4 + $0xc0] sm:$0x3f] %v1521_v17 }
 0x2f5   : > { %v3602_v59 = vpop.permute.xlu2 %1321 }
 0x2f6   : > { %1328 = vst.msk [vmem:[#allocation4 + $0x38] sm:$0x3f] %vm1257_vm7, %v3602_v59  ;;  %v3608_v19 = vpop.permute.xlu0 %1353 }
 0x2f7   : > { %v3606_v18 = vpop.permute.xlu1 %1371 }
 0x2fd   : > { %v1601_v20 = vpop.permute.xlu2 %1600 }
 0x2fe   : > { %v1603_v21 = vsel %vm1602_vm10, %v1599_v8, %v1601_v20  ;;  %1607 = vst.msk [vmem:[#allocation4 + $0xf8] sm:$0xc0] %vm1273_vm9, %v1601_v20  ;;  %vm1572_vm10 = vcmask 670720  }
 0x2ff   : > { %1606 = vst [vmem:[#allocation4 + $0xf0] sm:$0xc0] %v1603_v21 }
 0x300   : > { %1608 = vst [vmem:[#allocation4 + $0x100] sm:$0xf] %v1603_v21 }
 0x301   : > { %1609 = vst.msk [vmem:[#allocation4 + $0x108] sm:$0xf] %vm1276_vm11, %v1601_v20 }
 0x302   : > { %v1585_v22 = vpop.permute.xlu1 %1584 }
 0x303   : > { %v1651_v23 = vpop.permute.xlu0 %1650  ;;  %v1587_v24 = vsel %vm1586_vm12, %v1583_v0, %v1585_v22  ;;  %1591 = vst.msk [vmem:[#allocation4 + $0xf8] sm:$0x3f] %vm1257_vm7, %v1585_v22  ;;  %vm1554_vm12 = vcmask 678912  }
 0x304   : > { %v1653_v25 = vsel %vm1652_vm13, %v3561_v37, %v1651_v23  ;;  %1590 = vst [vmem:[#allocation4 + $0xf0] sm:$0x3f] %v1587_v24  ;;  %vm1506_vm13 = vcmask 703488  }
 0x305   : > { %1656 = vst [vmem:[#allocation4 + $0x120] sm:$0x3f] %v1653_v25  ;;  %v1535_v28 = vpop.permute.xlu2 %1534 }
 0x306   : > { %1657 = vst.msk [vmem:[#allocation4 + $0x128] sm:$0x3f] %vm1257_vm7, %v1651_v23  ;;  %v1537_v29 = vsel %vm1536_vm14, %v1533_v51, %v1535_v28  ;;  %vm1620_vm14 = vcmask 572416  }
 0x307   : > { %1540 = vst [vmem:[#allocation4 + $0xc0] sm:$0xc0] %v1537_v29 }
 0x308   : > { %1541 = vst.msk [vmem:[#allocation4 + $0xc8] sm:$0xc0] %vm1273_vm9, %v1535_v28 }
 0x309   : > { %1542 = vst [vmem:[#allocation4 + $0xd0] sm:$0xf] %v1537_v29 }
 0x30a   : > { %1543 = vst.msk [vmem:[#allocation4 + $0xd8] sm:$0xf] %vm1276_vm11, %v1535_v28  ;;  %v1454_v30 = vpop.permute.xlu1 %1453  ;;  %v1693_v6 = vld [vmem:[#allocation4 + $0xf8] sm:$0xff] }
 0x30b   : > { %v1388_v31 = vpop.permute.xlu0 %1387  ;;  %v1456_v14 = vsel %vm1455_vm15, %v3569_v50, %v1454_v30  ;;  %1460 = vst.msk [vmem:[#allocation4 + $0x98] sm:$0x3f] %vm1257_vm7, %v1454_v30  ;;  %v1692_v33 = vld [vmem:[#allocation4 + $0xf0] sm:$0xff]  ;;  %vm1638_vm15 = vcmask 564224   ;;  %v1701_v30 = vld [vmem:[%s4249_s5 + $0x8] sm:$0xff] }
 0x30c   : > { %v1390_v32 = vsel %vm1389_vm0, %v3576_v52, %v1388_v31  ;;  %1459 = vst [vmem:[#allocation4 + $0x90] sm:$0x3f] %v1456_v14  ;;  %1726 = vmatpush.msrb.mxu0 %v1692_v33  ;;  %v1698_v26 = vld [vmem:[#allocation4 + $0x120] sm:$0x3f]  ;;  %vm1423_vm0 = vcmask 818176   ;;  %1709 = vperm.xlu2 %2500, %v1701_v30   ;;  %v1882_v30 = vld [vmem:[%s4250_s6 + $0x38] sm:$0xff] }
 0x30d   : > { %1393 = vst [vmem:[#allocation4 + $0x60] sm:$0x3f] %v1390_v32  ;;  %v1699_v34 = vld [vmem:[#allocation4 + $0x128] sm:$0x3f]  ;;  %2386 = vmatpush.msk.msra.mxu2 %vm1719_vm3, %v1698_v26  ;;  %v1488_v35 = vpop.permute.xlu2 %1487 }
 0x30e   : > { %1394 = vst.msk [vmem:[#allocation4 + $0x68] sm:$0x3f] %vm1257_vm7, %v1388_v31  ;;  %2389 = vmatpush.msk.msrb.mxu3 %vm1719_vm3, %v1699_v34  ;;  %v1489_v36 = vsel %vm723_vm4, %v3583_v62, %v1488_v35  ;;  %vm1441_vm7 = vcmask 809984   ;;  %vm1471_vm4 = vcmask 793600   ;;  %v1686_v50 = vld [vmem:[#allocation4 + $0xc0] sm:$0xff]  ;;  %vm1357_vm3 = vcmask 924672  }
 0x30f   : > { %1492 = vst [vmem:[#allocation4 + $0xa0] sm:$0xf0] %v1489_v36  ;;  %v1687_v15 = vld [vmem:[#allocation4 + $0xc8] sm:$0xff] }
 0x310   : > { %1493 = vst.msk [vmem:[#allocation4 + $0xa8] sm:$0xf0] %vm1293_vm5, %v1488_v35 }
 0x311   : > { %1494 = vst [vmem:[#allocation4 + $0xb0] sm:$0x3] %v1489_v36 }
 0x312   : > { %1495 = vst.msk [vmem:[#allocation4 + $0xb8] sm:$0x3] %vm1296_vm6, %v1488_v35  ;;  %v1571_v37 = vpop.permute.xlu1 %1570 }
 0x313   : > { %v1553_v38 = vpop.permute.xlu0 %1552  ;;  %v1573_v39 = vsel %vm1572_vm10, %v3591_v12, %v1571_v37  ;;  %1577 = vst.msk [vmem:[#allocation4 + $0xe8] sm:$0xfc] %vm1313_vm8, %v1571_v37  ;;  %vm1405_vm10 = vcmask 900096  }
 0x314   : > { %v1555_v40 = vsel %vm1554_vm12, %v3581_v58, %v1553_v38  ;;  %1576 = vst [vmem:[#allocation4 + $0xe0] sm:$0xfc] %v1573_v39  ;;  %v1659_v58 = vld [vmem:[%s4298_s4 + $0x8] sm:$0xff]  ;;  %vm1712_vm12 = vcmask 179200  }
 0x315   : > { %1558 = vst [vmem:[#allocation4 + $0xd0] sm:$0xf0] %v1555_v40  ;;  %v1440_v41 = vpop.permute.xlu2 %1439 }
 0x316   : > { %1559 = vst.msk [vmem:[#allocation4 + $0xd8] sm:$0xf0] %vm1293_vm5, %v1553_v38  ;;  %v1442_v42 = vsel %vm1441_vm7, %v3589_v10, %v1440_v41  ;;  %vm1323_vm7 = vcmask 1014784  }
 0x317   : > { %1560 = vst [vmem:[#allocation4 + $0xe0] sm:$0x3] %v1555_v40 }
 0x318   : > { %1561 = vst.msk [vmem:[#allocation4 + $0xe8] sm:$0x3] %vm1296_vm6, %v1553_v38 }
 0x319   : > { %1445 = vst [vmem:[#allocation4 + $0x80] sm:$0xfc] %v1442_v42 }
 0x31a   : > { %1446 = vst.msk [vmem:[#allocation4 + $0x88] sm:$0xfc] %vm1313_vm8, %v1440_v41  ;;  %v1470_v43 = vpop.permute.xlu1 %1469 }
 0x31b   : > { %v1505_v44 = vpop.permute.xlu0 %1504  ;;  %v1472_v45 = vsel %vm1471_vm4, %v3597_v16, %v1470_v43  ;;  %1476 = vst.msk [vmem:[#allocation4 + $0x98] sm:$0xc0] %vm1273_vm9, %v1470_v43  ;;  %vm1308_vm4 = vcmask 1022976  }
 0x31c   : > { %1475 = vst [vmem:[#allocation4 + $0x90] sm:$0xc0] %v1472_v45  ;;  %v1507_v46 = vsel %vm1506_vm13, %v3593_v13, %v1505_v44  ;;  %v1688_v49 = vld [vmem:[#allocation4 + $0xd0] sm:$0xff] }
 0x31d   : > { %1477 = vst [vmem:[#allocation4 + $0xa0] sm:$0xf] %v1472_v45  ;;  %v3635_v47 = vpop.permute.xlu2 %1286  ;;  %v1689_v51 = vld [vmem:[#allocation4 + $0xd8] sm:$0xff] }
 0x31e   : > { %1478 = vst.msk [vmem:[#allocation4 + $0xa8] sm:$0xf] %vm1276_vm11, %v1470_v43  ;;  %v1690_v48 = vld [vmem:[#allocation4 + $0xe0] sm:$0xff] }
 0x31f   : > { %1510 = vst [vmem:[#allocation4 + $0xb0] sm:$0xfc] %v1507_v46  ;;  %1727 = vmatpush.msrb.mxu0 %v1690_v48  ;;  %v1660_v48 = vld [vmem:[%s4298_s4 + $0x10] sm:$0xff] }
 0x320   : > { %1511 = vst.msk [vmem:[#allocation4 + $0xb8] sm:$0xfc] %vm1313_vm8, %v1505_v44  ;;  %v1658_v44 = vld [vmem:[%s4298_s4] sm:$0xff] }
 0x321   : > { %1728 = vmatpush.msrb.mxu0 %v1688_v49  ;;  %1294 = vst.msk [vmem:[#allocation4 + $0x18] sm:$0xf0] %vm1293_vm5, %v3635_v47 }
 0x322   : > { %1297 = vst.msk [vmem:[#allocation4 + $0x28] sm:$0x3] %vm1296_vm6, %v3635_v47  ;;  %v1619_v54 = vpop.permute.xlu1 %1618  ;;  %v1681_v22 = vld [vmem:[#allocation4 + $0x98] sm:$0xff] }
 0x323   : > { %v1637_v55 = vpop.permute.xlu0 %1636  ;;  %1729 = vmatpush.msrb.mxu0 %v1686_v50  ;;  %v1621_v56 = vsel %vm1620_vm14, %v3587_v9, %v1619_v54  ;;  %1625 = vst.msk [vmem:[#allocation4 + $0x108] sm:$0xf0] %vm1293_vm5, %v1619_v54  ;;  %v1680_v2 = vld [vmem:[#allocation4 + $0x90] sm:$0xff]  ;;  %v1691_v9 = vld [vmem:[#allocation4 + $0xe8] sm:$0xff] }
 0x324   : > { %1624 = vst [vmem:[#allocation4 + $0x100] sm:$0xf0] %v1621_v56  ;;  %v1639_v57 = vsel %vm1638_vm15, %v3574_v1, %v1637_v55  ;;  %v1682_v0 = vld [vmem:[#allocation4 + $0xa0] sm:$0xff] }
 0x325   : > { %1626 = vst [vmem:[#allocation4 + $0x110] sm:$0x3] %v1621_v56  ;;  %v3647_v63 = vpop.permute.xlu2 %1267 }
 0x326   : > { %1627 = vst.msk [vmem:[#allocation4 + $0x118] sm:$0x3] %vm1296_vm6, %v1619_v54  ;;  %v1684_v60 = vld [vmem:[#allocation4 + $0xb0] sm:$0xff] }
 0x327   : > { %1642 = vst [vmem:[#allocation4 + $0x110] sm:$0xfc] %v1639_v57  ;;  %1730 = vmatpush.msrb.mxu0 %v1684_v60  ;;  %v1685_v16 = vld [vmem:[#allocation4 + $0xb8] sm:$0xff] }
 0x328   : > { %1643 = vst.msk [vmem:[#allocation4 + $0x118] sm:$0xfc] %vm1313_vm8, %v1637_v55 }
 0x329   : > { %1731 = vmatpush.msrb.mxu0 %v1682_v0  ;;  %1274 = vst.msk [vmem:[#allocation4 + $0x8] sm:$0xc0] %vm1273_vm9, %v3647_v63 }
 0x32a   : > { %1277 = vst.msk [vmem:[#allocation4 + $0x18] sm:$0xf] %vm1276_vm11, %v3647_v63  ;;  %v1422_v1 = vpop.permute.xlu1 %1421  ;;  %v1695_v62 = vld [vmem:[#allocation4 + $0x108] sm:$0xff] }
 0x32b   : > { %v1356_v27 = vpop.permute.xlu0 %1355  ;;  %1732 = vmatpush.msrb.mxu0 %v1680_v2  ;;  %v1424_v52 = vsel %vm1423_vm0, %v3600_v11, %v1422_v1  ;;  %1428 = vst.msk [vmem:[#allocation4 + $0x78] sm:$0xf0] %vm1293_vm5, %v1422_v1  ;;  %v1694_v5 = vld [vmem:[#allocation4 + $0x100] sm:$0xff] }
 0x32c   : > { %1427 = vst [vmem:[#allocation4 + $0x70] sm:$0xf0] %v1424_v52  ;;  %v1358_v53 = vsel %vm1357_vm3, %v3608_v19, %v1356_v27  ;;  %v1683_v19 = vld [vmem:[#allocation4 + $0xa8] sm:$0xff] }
 0x32d   : > { %1429 = vst [vmem:[#allocation4 + $0x80] sm:$0x3] %v1424_v52 }
 0x32e   : > { %1430 = vst.msk [vmem:[#allocation4 + $0x88] sm:$0x3] %vm1296_vm6, %v1422_v1  ;;  %v1696_v3 = vld [vmem:[#allocation4 + $0x110] sm:$0xff] }
 0x32f   : > { %1361 = vst [vmem:[#allocation4 + $0x40] sm:$0xf0] %v1358_v53  ;;  %v1697_v4 = vld [vmem:[#allocation4 + $0x118] sm:$0xff]  ;;  %1763 = vmatpush.msra.mxu2 %v1696_v3 }
 0x330   : > { %1362 = vst.msk [vmem:[#allocation4 + $0x48] sm:$0xf0] %vm1293_vm5, %v1356_v27  ;;  %1809 = vmatpush.msrb.mxu3 %v1697_v4  ;;  %vm1375_vm5 = vcmask 916480   ;;  %v1663_v45 = vld [vmem:[#allocation4 + $0x8] sm:$0xff] }
 0x331   : > { %1363 = vst [vmem:[#allocation4 + $0x50] sm:$0x3] %v1358_v53  ;;  %1764 = vmatpush.msra.mxu2 %v1694_v5  ;;  %v1665_v42 = vld [vmem:[#allocation4 + $0x18] sm:$0xff] }
 0x332   : > { %1364 = vst.msk [vmem:[#allocation4 + $0x58] sm:$0x3] %vm1296_vm6, %v1356_v27  ;;  %1810 = vmatpush.msrb.mxu3 %v1695_v62  ;;  %v1404_v7 = vpop.permute.xlu1 %1403  ;;  %2387 = vmatmul.msk.f32.vlgmr.msra.gmra.mxu2 %vm1712_vm12, %v1659_v58  ;;  %vm1339_vm6 = vcmask 932864  }
 0x333   : > { %1772 = vmatpush.msrb.mxu2 %v1693_v6  ;;  %v1320_v8 = vpop.permute.xlu0 %1319  ;;  %v1406_v10 = vsel %vm1405_vm10, %v3595_v61, %v1404_v7  ;;  %1410 = vst.msk [vmem:[#allocation4 + $0x68] sm:$0xc0] %vm1273_vm9, %v1404_v7  ;;  %2390 = vmatmul.msk.f32.vlgmr.msrb.gmra.mxu3 %vm1712_vm12, %v1659_v58  ;;  %v1661_v61 = vld [vmem:[%s4298_s4 + $0x18] sm:$0xff]  ;;  %s4300_s4 = smov 72  }
 0x334   : > { %1409 = vst [vmem:[#allocation4 + $0x60] sm:$0xc0] %v1406_v10  ;;  %v1324_v12 = vsel %vm1323_vm7, %v1320_v8, %v3602_v59  ;;  %v1678_v13 = vld [vmem:[#allocation4 + $0x80] sm:$0xff]  ;;  %v1700_v59 = vld [vmem:[%s4249_s5] sm:$0xff] }
 0x335   : > { %1773 = vmatpush.msrb.mxu2 %v1691_v9  ;;  %1411 = vst [vmem:[#allocation4 + $0x70] sm:$0xf] %v1406_v10  ;;  %1733 = vmatpush.msrb.mxu0 %v1678_v13  ;;  %v1679_v24 = vld [vmem:[#allocation4 + $0x88] sm:$0xff] }
 0x336   : > { %1412 = vst.msk [vmem:[#allocation4 + $0x78] sm:$0xf] %vm1276_vm11, %v1404_v7  ;;  %1704 = vperm.xlu1 %2499, %v1700_v59  }
 0x337   : > { %1774 = vmatpush.msrb.mxu2 %v1689_v51  ;;  %1327 = vst [vmem:[#allocation4 + $0x30] sm:$0x3f] %v1324_v12 }
 0x339   : > { %1775 = vmatpush.msrb.mxu2 %v1687_v15 }
 0x33a   : > { %v1374_v17 = vpop.permute.xlu1 %1373  ;;  %2388 = vmatmul.msk.f32.gmra.mxu2 %vm1712_vm12, %v1661_v61  ;;  %v1675_v31 = vld [vmem:[#allocation4 + $0x68] sm:$0xff] }
 0x33b   : > { %1776 = vmatpush.msrb.mxu2 %v1685_v16  ;;  %v1338_v11 = vpop.permute.xlu0 %1337  ;;  %v1376_v20 = vsel %vm1375_vm5, %v3606_v18, %v1374_v17  ;;  %1380 = vst.msk [vmem:[#allocation4 + $0x58] sm:$0xfc] %vm1313_vm8, %v1374_v17  ;;  %2391 = vmatmul.msk.f32.gmra.mxu3 %vm1712_vm12, %v1661_v61  ;;  %v1674_v23 = vld [vmem:[#allocation4 + $0x60] sm:$0xff]  ;;  %v1305_v18 = vpop.permute.xlu2 %1304 }
 0x33c   : > { %1379 = vst [vmem:[#allocation4 + $0x50] sm:$0xfc] %v1376_v20  ;;  %v1676_v21 = vld [vmem:[#allocation4 + $0x70] sm:$0xff] }
 0x33d   : > { %1777 = vmatpush.msrb.mxu2 %v1683_v19  ;;  %1344 = vst.msk [vmem:[#allocation4 + $0x38] sm:$0xc0] %vm1273_vm9, %v1338_v11  ;;  %1734 = vmatpush.msrb.mxu0 %v1676_v21  ;;  %v1677_v25 = vld [vmem:[#allocation4 + $0x78] sm:$0xff]  ;;  %vm1288_vm9 = vcmask 1031168   ;;  %v1890_v21 = vld [vmem:[%s4250_s6 + $0x78] sm:$0x1f] }
 0x33e   : > { %1346 = vst.msk [vmem:[#allocation4 + $0x48] sm:$0xf] %vm1276_vm11, %v1338_v11  ;;  %vm1823_vm11 = vcmask 97280  }
 0x33f   : > { %1778 = vmatpush.msrb.mxu2 %v1681_v22  ;;  %1735 = vmatpush.msrb.mxu0 %v1674_v23  ;;  %v1889_v22 = vld [vmem:[%s4250_s6 + $0x70] sm:$0xff]  ;;  %v1888_v23 = vld [vmem:[%s4250_s6 + $0x68] sm:$0xff] }
 0x341   : > { %1779 = vmatpush.msrb.mxu2 %v1679_v24  ;;  %v1887_v24 = vld [vmem:[%s4250_s6 + $0x60] sm:$0xff] }
 0x342   : > { %v1336_v28 = vpop.permute.xlu1 %1335  ;;  %v1673_v33 = vld [vmem:[#allocation4 + $0x58] sm:$0xff] }
 0x343   : > { %1780 = vmatpush.msrb.mxu2 %v1677_v25  ;;  %v1307_v29 = vpop.permute.xlu0 %1306  ;;  %v1340_v14 = vsel %vm1339_vm6, %v1336_v28, %v1338_v11  ;;  %v1672_v26 = vld [vmem:[#allocation4 + $0x50] sm:$0xff]  ;;  %v1885_v25 = vld [vmem:[%s4250_s6 + $0x50] sm:$0xff]  ;;  %v1884_v28 = vld [vmem:[%s4250_s6 + $0x48] sm:$0xff] }
 0x344   : > { %v1309_v32 = vsel %vm1308_vm4, %v1305_v18, %v1307_v29  ;;  %1314 = vst.msk [vmem:[#allocation4 + $0x28] sm:$0xfc] %vm1313_vm8, %v1307_v29  ;;  %1736 = vmatpush.msrb.mxu0 %v1672_v26  ;;  %v1669_v35 = vld [vmem:[#allocation4 + $0x38] sm:$0xff]  ;;  %vm1897_vm8 = vcmask 1044480   ;;  %v1886_v18 = vld [vmem:[%s4250_s6 + $0x58] sm:$0xff]  ;;  %v1877_v26 = vld [vmem:[%s4250_s6 + $0x10] sm:$0xff] }
 0x345   : > { %1781 = vmatpush.msrb.mxu2 %v1675_v31  ;;  %1343 = vst [vmem:[#allocation4 + $0x30] sm:$0xc0] %v1340_v14  ;;  %v1671_v34 = vld [vmem:[#allocation4 + $0x48] sm:$0xff]  ;;  %2392 = vmatpush.msk.msrb.mxu1 %vm1897_vm8, %v1890_v21  ;;  %v1883_v29 = vld [vmem:[%s4250_s6 + $0x40] sm:$0xff]  ;;  %v2085_v21 = vld [vmem:[%s4251_s7 + $0x48] sm:$0xff] }
 0x346   : > { %1345 = vst [vmem:[#allocation4 + $0x40] sm:$0xf] %v1340_v14  ;;  %v1881_v31 = vld [vmem:[%s4250_s6 + $0x30] sm:$0xff]  ;;  %v1880_v14 = vld [vmem:[%s4250_s6 + $0x28] sm:$0xff] }
 0x347   : > { %1312 = vst [vmem:[#allocation4 + $0x20] sm:$0xfc] %v1309_v32  ;;  %1782 = vmatpush.msrb.mxu2 %v1673_v33  ;;  %1902 = vmatpush.msrb.mxu1 %v1889_v22  ;;  %v1879_v32 = vld [vmem:[%s4250_s6 + $0x20] sm:$0xff]  ;;  %v1878_v33 = vld [vmem:[%s4250_s6 + $0x18] sm:$0xff]  ;;  %v2101_v22 = vld [vmem:[%s4251_s7 + $0xc8] sm:$0xff] }
 0x349   : > { %1783 = vmatpush.msrb.mxu2 %v1671_v34  ;;  %1903 = vmatpush.msrb.mxu1 %v1888_v23  ;;  %v1876_v34 = vld [vmem:[%s4250_s6 + $0x8] sm:$0xff] }
 0x34a   : > { %v1285_v36 = vpop.permute.xlu1 %1284  ;;  %v2117_v23 = vld [vmem:[%s4251_s7 + $0x148] sm:$0xff] }
 0x34b   : > { %1784 = vmatpush.msrb.mxu2 %v1669_v35  ;;  %v1266_v37 = vpop.permute.xlu0 %1265  ;;  %v1667_v38 = vld [vmem:[#allocation4 + $0x28] sm:$0xff]  ;;  %v1289_v39 = vsel %vm1288_vm9, %v1285_v36, %v3635_v47  ;;  %1904 = vmatpush.msrb.mxu1 %v1887_v24  ;;  %v1875_v35 = vld [vmem:[%s4250_s6] sm:$0xff]  ;;  %v2232_v24 = vld [vmem:[%s4253_s9 + $0x68] sm:$0xff] }
 0x34c   : > { %v1269_v40 = vsel %vm681_vm2, %v1266_v37, %v3647_v63  ;;  %1292 = vst [vmem:[#allocation4 + $0x10] sm:$0xf0] %v1289_v39  ;;  %v1668_v43 = vld [vmem:[#allocation4 + $0x30] sm:$0xff] }
 0x34d   : > { %1785 = vmatpush.msrb.mxu2 %v1667_v38  ;;  %v1670_v41 = vld [vmem:[#allocation4 + $0x40] sm:$0xff]  ;;  %1295 = vst [vmem:[#allocation4 + $0x20] sm:$0x3] %v1289_v39  ;;  %1905 = vmatpush.msrb.mxu1 %v1886_v18 }
 0x34e   : > { %1737 = vmatpush.msrb.mxu0 %v1670_v41  ;;  %1272 = vst [vmem:[#allocation4] sm:$0xc0] %v1269_v40 }
 0x34f   : > { %1786 = vmatpush.msrb.mxu2 %v1665_v42  ;;  %1275 = vst [vmem:[#allocation4 + $0x10] sm:$0xf] %v1269_v40  ;;  %1906 = vmatpush.msrb.mxu1 %v1885_v25  ;;  %v2084_v25 = vld [vmem:[%s4251_s7 + $0x40] sm:$0xff] }
 0x350   : > { %1738 = vmatpush.msrb.mxu0 %v1668_v43 }
 0x351   : > { %1787 = vmatpush.msrb.mxu2 %v1663_v45  ;;  %1907 = vmatpush.msrb.mxu1 %v1884_v28  ;;  %v2100_v28 = vld [vmem:[%s4251_s7 + $0xc0] sm:$0xff] }
 0x352   : > { %1788 = vmatmul.f32.vlgmr.msrb.gmra.mxu2 %v1658_v44 }
 0x353   : > { %1908 = vmatpush.msrb.mxu1 %v1883_v29 }
 0x354   : > { %v1666_v46 = vld [vmem:[#allocation4 + $0x20] sm:$0xff] }
 0x355   : > { %1739 = vmatpush.msrb.mxu0 %v1666_v46  ;;  %v1662_v49 = vld [vmem:[#allocation4] sm:$0xff]  ;;  %1909 = vmatpush.msrb.mxu1 %v1882_v30 }
 0x356   : > { %v1664_v47 = vld [vmem:[#allocation4 + $0x10] sm:$0xff] }
 0x357   : > { %1740 = vmatpush.msrb.mxu0 %v1664_v47  ;;  %1910 = vmatpush.msrb.mxu1 %v1881_v31  ;;  %v1927_v47 = vlaneseq  ;;  %v2230_v31 = vld [vmem:[%s4253_s9 + $0x58] sm:$0xff] }
 0x359   : > { %1741 = vmatpush.msrb.mxu0 %v1662_v49  ;;  %1911 = vmatpush.msrb.mxu1 %v1880_v14  ;;  %vm1938_vm13 = vcmp.lt.s32.totalorder %v1927_v47, 50  ;;  %vm3839_vm15 = vcmp.ge.s32.totalorder %v1927_v47, 50  ;;  %vm3844_vm0 = vcmp.lt.s32.totalorder %v1927_v47, 75  ;;  %vm3855_vm3 = vcmp.ge.s32.totalorder %v1927_v47, 75  ;;  %v2116_v14 = vld [vmem:[%s4251_s7 + $0x140] sm:$0xff] }
 0x35a   : > { %1791 = vmatmul.f32.gmra.mxu2 %v1660_v48  ;;  %1742 = vmatmul.f32.vlgmr.msrb.gmra.mxu0 %v1658_v44  ;;  %vm3860_vm10 = vcmp.lt.s32.totalorder %v1927_v47, 100  ;;  %vm1948_vm12 = vmand %vm3839_vm15, %vm3844_vm0  ;;  %vm3894_vm5 = vcmp.ge.s32.totalorder %v1927_v47, 100  ;;  %vm3910_vm9 = vcmp.ge.s32.totalorder %v1927_v47, 125  ;;  %vm3929_vm8 = vcmp.ge.s32.totalorder %v1927_v47, 22 }
 0x35b   : > { %1912 = vmatpush.msrb.mxu1 %v1879_v32  ;;  %v2083_v32 = vld [vmem:[%s4251_s7 + $0x38] sm:$0xff]  ;;  %vm1957_vm7 = vmand %vm3855_vm3, %vm3860_vm10  ;;  %vm4003_vm10 = vcmp.lt.s32.totalorder %v1927_v47, 97 }
 0x35d   : > { %1913 = vmatpush.msrb.mxu1 %v1878_v33  ;;  %v2099_v33 = vld [vmem:[%s4251_s7 + $0xb8] sm:$0xff] }
 0x35f   : > { %1914 = vmatpush.msrb.mxu1 %v1877_v26  ;;  %v2115_v26 = vld [vmem:[%s4251_s7 + $0x138] sm:$0xff] }
 0x361   : > { %1915 = vmatpush.msrb.mxu1 %v1876_v34 }
 0x362   : > { %1745 = vmatmul.f32.gmra.mxu0 %v1660_v48 }
 0x363   : > { %1916 = vmatpush.msrb.mxu1 %v1875_v35  ;;  %v2082_v35 = vld [vmem:[%s4251_s7 + $0x30] sm:$0xff] }
 0x366   : > { %v1710_v52 = vpop.permute.xlu2 %1709 }
 0x3a8   : > { %v1705_v55 = vpop.permute.xlu1 %1704 }
 0x3b5   : > { %v1766_v50 = vpop.f32.mrf.mxu2 }
 0x3b6   : > { %v1812_v56 = vpop.f32.mrf.mxu3 }
 0x3bd   : > { %v1769_v54 = vpop.f32.mrf.mxu2 }
 0x3be   : > { %v1815_v4 = vpop.f32.mrf.mxu3 }
 0x3d5   : > { %v1789_v57 = vpop.f32.mrf.mxu2 }
 0x3d6   : > { %v1790_v60 = vadd.f32 %v1789_v57, %v1705_v55 }
 0x3d7   : > { %v1743_v0 = vpop.f32.mrf.mxu0 }
 0x3d8   : > { %v1813_v63 = vadd.f32 %v1812_v56, %v1790_v60  ;;  %v1744_v2 = vadd.f32 %v1743_v0, %v1705_v55 }
 0x3da   : > { %v1819_v1 = vmax.f32 %v1813_v63, 0.0  ;;  %v1767_v27 = vadd.f32 %v1766_v50, %v1744_v2 }
 0x3dc   : > { %1824 = vst.msk [vmem:[#allocation5 + $0x8] sm:$0xff] %vm1823_vm11, %v1819_v1  ;;  %v3697_v53 = vmax.f32 %v1767_v27, 0.0 }
 0x3dd   : > { %v1792_v3 = vpop.f32.mrf.mxu2 }
 0x3de   : > { %v1793_v5 = vadd.f32 %v1792_v3, %v1710_v52  ;;  %1831 = vrot.lane.b32.xlu0 %v3697_v53, %s4297_s0 }
 0x3df   : > { %v1746_v58 = vpop.f32.mrf.mxu0 }
 0x3e0   : > { %v1816_v62 = vadd.f32 %v1815_v4, %v1793_v5  ;;  %v1747_v6 = vadd.f32 %v1746_v58, %v1710_v52  ;;  %v2091_v58 = vld [vmem:[%s4251_s7 + $0x78] sm:$0xff] }
 0x3e1   : > { %2138 = vmatpush.msra.mxu3 %v2091_v58  ;;  %v2093_v58 = vld [vmem:[%s4251_s7 + $0x88] sm:$0xff] }
 0x3e2   : > { %v1821_v7 = vmax.f32 %v1816_v62, 0.0  ;;  %v1770_v8 = vadd.f32 %v1769_v54, %v1747_v6  ;;  %v2107_v62 = vld [vmem:[%s4251_s7 + $0xf8] sm:$0xff] }
 0x3e3   : > { %v1839_v9 = vld [vmem:[#allocation5 + $0x8] sm:$0xff]  ;;  %2158 = vmatpush.msra.mxu0 %v2107_v62  ;;  %v2123_v6 = vld [vmem:[%s4251_s7 + $0x178] sm:$0xff] }
 0x3e4   : > { %1826 = vst.msk [vmem:[#allocation5 + $0x18] sm:$0xff] %vm1823_vm11, %v1821_v7  ;;  %1843 = vrot.lane.b32.xlu1 %v1839_v9, %s4297_s0  ;;  %v1820_v10 = vmax.f32 %v1770_v8, 0.0  ;;  %v2090_v7 = vld [vmem:[%s4251_s7 + $0x70] sm:$0xff]  ;;  %2178 = vmatpush.msra.mxu2 %v2123_v6  ;;  %vm3915_vm11 = vcmp.lt.s32.totalorder %v1927_v47, 150  ;;  %v2261_v62 = vld [vmem:[%s4255_s11 + $0x20] sm:$0xff] }
 0x3e5   : > { %v2106_v8 = vld [vmem:[%s4251_s7 + $0xf0] sm:$0xff]  ;;  %2139 = vmatpush.msra.mxu3 %v2090_v7  ;;  %vm1977_vm15 = vmand %vm3910_vm9, %vm3915_vm11  ;;  %v2109_v7 = vld [vmem:[%s4251_s7 + $0x108] sm:$0xff]  ;;  %vm4048_vm9 = vcmp.ge.s32.totalorder %v1927_v47, 122  ;;  %vm4053_vm11 = vcmp.lt.s32.totalorder %v1927_v47, 147 }
 0x3e6   : > { %1833 = vrot.lane.b32.xlu2 %v1820_v10, %s4297_s0  ;;  %2159 = vmatpush.msra.mxu0 %v2106_v8  ;;  %v2260_v8 = vld [vmem:[%s4255_s11 + $0x18] sm:$0xff] }
 0x3eb   : > { %v1840_v12 = vld [vmem:[#allocation5 + $0x18] sm:$0xff] }
 0x3ec   : > { %1845 = vrot.lane.b32.xlu0 %v1840_v12, %s4297_s0  ;;  %s2596_s0 = smov 44  }
 0x440   : > { %v1834_v17 = vpop.permute.xlu2 %1833 }
 0x441   : > { %v1838_v41 = vmax.f32 %v1820_v10, %v1834_v17 }
 0x450   : > { %v1832_v51 = vpop.permute.xlu0 %1831 }
 0x451   : > { %v1837_v36 = vmax.f32 %v3697_v53, %v1832_v51 }
 0x456   : > { %v1844_v13 = vpop.permute.xlu1 %1843 }
 0x457   : > { %v1854_v15 = vmax.f32 %v1839_v9, %v1844_v13  ;;  %v1847_v61 = vsel %vm681_vm2, %v1832_v51, %v1844_v13  ;;  %v2122_v9 = vld [vmem:[%s4251_s7 + $0x170] sm:$0xff]  ;;  %v2121_v13 = vld [vmem:[%s4251_s7 + $0x168] sm:$0xff]  ;;  %v2088_v51 = vld [vmem:[%s4251_s7 + $0x60] sm:$0xff] }
 0x458   : > { %v1853_v16 = vmax.f32 %v3697_v53, %v1847_v61  ;;  %2179 = vmatpush.msra.mxu2 %v2122_v9  ;;  %v2120_v61 = vld [vmem:[%s4251_s7 + $0x160] sm:$0xff] }
 0x459   : > { %1863 = vrot.lane.b32.xlu2 %v1854_v15, %s2588_s24  ;;  %v2104_v15 = vld [vmem:[%s4251_s7 + $0xe0] sm:$0xff] }
 0x45a   : > { %1861 = vrot.lane.b32.xlu1 %v1853_v16, %s2588_s24  ;;  %2180 = vmatpush.msra.mxu2 %v2121_v13  ;;  %v2087_v16 = vld [vmem:[%s4251_s7 + $0x58] sm:$0xff]  ;;  %v2108_v13 = vld [vmem:[%s4251_s7 + $0x100] sm:$0xff] }
 0x45c   : > { %2181 = vmatpush.msra.mxu2 %v2120_v61  ;;  %v2125_v61 = vld [vmem:[%s4251_s7 + $0x188] sm:$0xff] }
 0x45e   : > { %v1846_v11 = vpop.permute.xlu0 %1845 }
 0x45f   : > { %v1848_v59 = vsel %vm681_vm2, %v1834_v17, %v1846_v11  ;;  %v1856_v19 = vmax.f32 %v1840_v12, %v1846_v11  ;;  %vm1929_vm2 = vcmp.lt.s32.totalorder %v1927_v47, 25  ;;  %v2105_v12 = vld [vmem:[%s4251_s7 + $0xe8] sm:$0xff]  ;;  %v2103_v17 = vld [vmem:[%s4251_s7 + $0xd8] sm:$0xff] }
 0x460   : > { %v1855_v20 = vmax.f32 %v1820_v10, %v1848_v59  ;;  %v2089_v10 = vld [vmem:[%s4251_s7 + $0x68] sm:$0xff]  ;;  %2160 = vmatpush.msra.mxu0 %v2105_v12  ;;  %v2119_v11 = vld [vmem:[%s4251_s7 + $0x158] sm:$0xff]  ;;  %v2086_v59 = vld [vmem:[%s4251_s7 + $0x50] sm:$0xff] }
 0x461   : > { %2140 = vmatpush.msra.mxu3 %v2089_v10  ;;  %2182 = vmatpush.msra.mxu2 %v2119_v11  ;;  %v2076_v10 = vld [vmem:[%s4251_s7] sm:$0xff] }
 0x462   : > { %1867 = vrot.lane.b32.xlu1 %v1856_v19, %s2588_s24  ;;  %1865 = vrot.lane.b32.xlu0 %v1855_v20, %s2588_s24  ;;  %s2595_s24 = smov 122   ;;  %v2102_v19 = vld [vmem:[%s4251_s7 + $0xd0] sm:$0xff]  ;;  %v2092_v12 = vld [vmem:[%s4251_s7 + $0x80] sm:$0xff] }
 0x463   : > { %2141 = vmatpush.msra.mxu3 %v2088_v51  ;;  %2161 = vmatpush.msra.mxu0 %v2104_v15  ;;  %v2118_v20 = vld [vmem:[%s4251_s7 + $0x150] sm:$0xff] }
 0x464   : > { %2183 = vmatpush.msra.mxu2 %v2118_v20  ;;  %v2259_v15 = vld [vmem:[%s4255_s11 + $0x10] sm:$0xff] }
 0x465   : > { %2142 = vmatpush.msra.mxu3 %v2087_v16  ;;  %2162 = vmatpush.msra.mxu0 %v2103_v17  ;;  %v2124_v16 = vld [vmem:[%s4251_s7 + $0x180] sm:$0xff] }
 0x466   : > { %2184 = vmatpush.msra.mxu2 %v2117_v23 }
 0x467   : > { %2143 = vmatpush.msra.mxu3 %v2086_v59  ;;  %2163 = vmatpush.msra.mxu0 %v2102_v19 }
 0x468   : > { %2185 = vmatpush.msra.mxu2 %v2116_v14 }
 0x469   : > { %2144 = vmatpush.msra.mxu3 %v2085_v21  ;;  %2164 = vmatpush.msra.mxu0 %v2101_v22  ;;  %v2234_v21 = vld [vmem:[%s4253_s9 + $0x78] sm:$0xff]  ;;  %v2233_v22 = vld [vmem:[%s4253_s9 + $0x70] sm:$0xff] }
 0x46a   : > { %2186 = vmatpush.msra.mxu2 %v2115_v26  ;;  %2236 = vmatpush.msra.mxu1 %v2234_v21  ;;  %v2229_v26 = vld [vmem:[%s4253_s9 + $0x50] sm:$0xff] }
 0x46b   : > { %2145 = vmatpush.msra.mxu3 %v2084_v25  ;;  %2165 = vmatpush.msra.mxu0 %v2100_v28  ;;  %v2231_v25 = vld [vmem:[%s4253_s9 + $0x60] sm:$0xff] }
 0x46c   : > { %2237 = vmatpush.msra.mxu1 %v2233_v22 }
 0x46d   : > { %2146 = vmatpush.msra.mxu3 %v2083_v32  ;;  %2166 = vmatpush.msra.mxu0 %v2099_v33 }
 0x46e   : > { %2238 = vmatpush.msra.mxu1 %v2232_v24 }
 0x46f   : > { %2147 = vmatpush.msra.mxu3 %v2082_v35 }
 0x470   : > { %2239 = vmatpush.msra.mxu1 %v2231_v25 }
 0x472   : > { %2240 = vmatpush.msra.mxu1 %v2230_v31 }
 0x474   : > { %2241 = vmatpush.msra.mxu1 %v2229_v26 }
 0x4b3   : > { %v1864_v37 = vpop.permute.xlu2 %1863 }
 0x4cc   : > { %v1862_v38 = vpop.permute.xlu1 %1861 }
 0x4cd   : > { %v1869_v39 = vsel %vm1339_vm6, %v1862_v38, %v1864_v37  ;;  %v2114_v38 = vld [vmem:[%s4251_s7 + $0x130] sm:$0xff] }
 0x4ce   : > { %v1873_v40 = vmax.f32 %v1837_v36, %v1869_v39  ;;  %v2098_v36 = vld [vmem:[%s4251_s7 + $0xb0] sm:$0xff]  ;;  %2187 = vmatpush.msra.mxu2 %v2114_v38 }
 0x4cf   : > { %2167 = vmatpush.msra.mxu0 %v2098_v36 }
 0x4d0   : > { %2393 = vmatmul.msk.f32.vlgmr.msrb.gmra.mxu1 %vm1308_vm4, %v1873_v40 }
 0x4d4   : > { %v1868_v42 = vpop.permute.xlu1 %1867  ;;  %v1866_v43 = vpop.permute.xlu0 %1865 }
 0x4d5   : > { %v1870_v44 = vsel %vm1339_vm6, %v1866_v43, %v1868_v42  ;;  %vm3899_vm6 = vcmp.lt.s32.totalorder %v1927_v47, 125  ;;  %v2097_v42 = vld [vmem:[%s4251_s7 + $0xa8] sm:$0xff]  ;;  %v2227_v43 = vld [vmem:[%s4253_s9 + $0x40] sm:$0xff] }
 0x4d6   : > { %v1874_v45 = vmax.f32 %v1838_v41, %v1870_v44  ;;  %v2081_v41 = vld [vmem:[%s4251_s7 + $0x28] sm:$0xff]  ;;  %2168 = vmatpush.msra.mxu0 %v2097_v42  ;;  %v2226_v44 = vld [vmem:[%s4253_s9 + $0x38] sm:$0xff] }
 0x4d7   : > { %2148 = vmatpush.msra.mxu3 %v2081_v41  ;;  %v2228_v42 = vld [vmem:[%s4253_s9 + $0x48] sm:$0xff] }
 0x4d8   : > { %2394 = vmatmul.msk.f32.gmra.mxu1 %vm1308_vm4, %v1874_v45  ;;  %v2113_v45 = vld [vmem:[%s4251_s7 + $0x128] sm:$0xff] }
 0x4d9   : > { %2188 = vmatpush.msra.mxu2 %v2113_v45  ;;  %2242 = vmatpush.msra.mxu1 %v2228_v42  ;;  %v2225_v45 = vld [vmem:[%s4253_s9 + $0x30] sm:$0xff] }
 0x4db   : > { %2243 = vmatpush.msra.mxu1 %v2227_v43 }
 0x4dd   : > { %2244 = vmatpush.msra.mxu1 %v2226_v44 }
 0x4df   : > { %2245 = vmatpush.msra.mxu1 %v2225_v45 }
 0x54d   : > { %v1918_v46 = vpop.f32.mrf.mxu1 }
 0x54e   : > { %1924 = vst.msk [vmem:[#allocation6] sm:$0xff] %vm473_vm1, %v1918_v46  ;;  %v2080_v46 = vld [vmem:[%s4251_s7 + $0x20] sm:$0xff] }
 0x54f   : > { %2149 = vmatpush.msra.mxu3 %v2080_v46  ;;  %v2224_v46 = vld [vmem:[%s4253_s9 + $0x28] sm:$0xff] }
 0x550   : > { %2246 = vmatpush.msra.mxu1 %v2224_v46 }
 0x555   : > { %v1921_v48 = vpop.f32.mrf.mxu1  ;;  %v1932_v49 = vld [vmem:[#allocation6 + $0x1] sm:$0x1]  ;;  %v1968_v50 = vld [vmem:[#allocation6 + $0x5] sm:$0x1]  ;;  %v1941_v54 = vld [vmem:[#allocation6 + $0x2] sm:$0x1] }
 0x556   : > { %1925 = vst.msk [vmem:[#allocation6 + $0x8] sm:$0xff] %vm473_vm1, %v1921_v48  ;;  %1934 = vrot.lane.b32.xlu2 %v1932_v49, %s2590_s15  ;;  %1970 = vrot.lane.b32.xlu1 %v1968_v50, %s4299_s23  ;;  %v1926_v55 = vld [vmem:[#allocation6] sm:$0x1]  ;;  %v1950_v56 = vld [vmem:[#allocation6 + $0x3] sm:$0x1]  ;;  %s2599_s15 = smov 94  }
 0x557   : > { %1943 = vrot.lane.b32.xlu0 %v1941_v54, %s2591_s2  ;;  %1931 = vst.msk [vmem:[#allocation7] sm:$0x1] %vm1929_vm2, %v1926_v55  ;;  %v1979_v57 = vld [vmem:[#allocation6 + $0x6] sm:$0x1]  ;;  %v1959_v60 = vld [vmem:[#allocation6 + $0x4] sm:$0x1]  ;;  %s2304_s2 = scalar_lea.hbm %s4257_s13, %s2691_s29 }
 0x558   : > { %v1988_v63 = vld [vmem:[#allocation6 + $0x7] sm:$0x1]  ;;  %vm1937_vm1 = vcmp.ge.s32.totalorder %v1927_v47, 25  ;;  %v2096_v48 = vld [vmem:[%s4251_s7 + $0xa0] sm:$0xff]  ;;  %vm3934_vm2 = vcmp.lt.s32.totalorder %v1927_v47, 47  ;;  %v2221_v50 = vld [vmem:[%s4253_s9 + $0x10] sm:$0xff] }
 0x559   : > { %vm1939_vm14 = vmand %vm1937_vm1, %vm1938_vm13  ;;  %v2112_v55 = vld [vmem:[%s4251_s7 + $0x120] sm:$0xff]  ;;  %vm3952_vm13 = vcmp.ge.s32.totalorder %v1927_v47, 47  ;;  %2169 = vmatpush.msra.mxu0 %v2096_v48  ;;  %v2220_v54 = vld [vmem:[%s4253_s9 + $0x8] sm:$0xff] }
 0x55a   : > { %vm1966_vm1 = vmand %vm3894_vm5, %vm3899_vm6  ;;  %2189 = vmatpush.msra.mxu2 %v2112_v55  ;;  %v2223_v48 = vld [vmem:[%s4253_s9 + $0x20] sm:$0xff]  ;;  %v2272_v55 = vld [vmem:[%s4255_s11 + $0x78] sm:$0xff] }
 0x55b   : > { %vm1986_vm0 = vmand %vm3929_vm8, %vm3934_vm2  ;;  %vm2020_vm8 = vcmask 998400   ;;  %2247 = vmatpush.msra.mxu1 %v2223_v48 }
 0x55c   : > { %vm2025_vm2 = vmand %vm4048_vm9, %vm4053_vm11  ;;  %vm2068_vm11 = vcmask 973824  }
 0x55d   : > { %v1997_v0 = vld [vmem:[#allocation6 + $0x8] sm:$0x1]  ;;  %v2015_v2 = vld [vmem:[#allocation6 + $0xa] sm:$0x1]  ;;  %v2006_v1 = vld [vmem:[#allocation6 + $0x9] sm:$0x1] }
 0x55e   : > { %1952 = vrot.lane.b32.xlu2 %v1950_v56, %s2592_s30  ;;  %1981 = vrot.lane.b32.xlu1 %v1979_v57, %s2593_s3  ;;  %v2036_v27 = vld [vmem:[#allocation6 + $0xc] sm:$0x1]  ;;  %v2027_v52 = vld [vmem:[#allocation6 + $0xb] sm:$0x1]  ;;  %v2063_v53 = vld [vmem:[#allocation6 + $0xf] sm:$0x1] }
 0x55f   : > { %1961 = vrot.lane.b32.xlu0 %v1959_v60, %s4295_s21  ;;  %v2054_v3 = vld [vmem:[#allocation6 + $0xe] sm:$0x1]  ;;  %v2045_v4 = vld [vmem:[#allocation6 + $0xd] sm:$0x1]  ;;  %s2598_s21 = smov 119   ;;  %v2079_v56 = vld [vmem:[%s4251_s7 + $0x18] sm:$0xff] }
 0x560   : > { %v2095_v57 = vld [vmem:[%s4251_s7 + $0x98] sm:$0xff]  ;;  %2150 = vmatpush.msra.mxu3 %v2079_v56  ;;  %v2271_v56 = vld [vmem:[%s4255_s11 + $0x70] sm:$0xff] }
 0x561   : > { %2170 = vmatpush.msra.mxu0 %v2095_v57  ;;  %v2219_v57 = vld [vmem:[%s4253_s9] sm:$0xff] }
 0x566   : > { %1990 = vrot.lane.b32.xlu2 %v1988_v63, %s2594_s22  ;;  %1999 = vrot.lane.b32.xlu1 %v1997_v0, %s4300_s4  ;;  %v2269_v63 = vld [vmem:[%s4255_s11 + $0x60] sm:$0xff]  ;;  %v2268_v0 = vld [vmem:[%s4255_s11 + $0x58] sm:$0xff]  ;;  %s2308_s4 = sshll.u32 %s2304_s2, 4  ;;  %s2309_s4 = int_to_ptr.hbm [resolvable:$true] %s2308_s4 }
 0x567   : > { %2017 = vrot.lane.b32.xlu0 %v2015_v2, %s2595_s24  ;;  %v2111_v2 = vld [vmem:[%s4251_s7 + $0x118] sm:$0xff] }
 0x568   : > { %2190 = vmatpush.msra.mxu2 %v2111_v2  ;;  %v2267_v2 = vld [vmem:[%s4255_s11 + $0x50] sm:$0xff] }
 0x56e   : > { %2008 = vrot.lane.b32.xlu2 %v2006_v1, %s4290_s20  ;;  %2038 = vrot.lane.b32.xlu1 %v2036_v27, %s2596_s0  ;;  %v2078_v27 = vld [vmem:[%s4251_s7 + $0x10] sm:$0xff]  ;;  %s2515_s0 = sshra.s32 %s2309_s4, 4  ;;  %s2521_s20 = scalar_lea.hbm %s4257_s13, 2  ;;  %s2516_s0 = int_to_ptr.hbm [resolvable:$true] %s2515_s0 }
 0x56f   : > { %2029 = vrot.lane.b32.xlu0 %v2027_v52, %s2597_s16  ;;  %v2094_v52 = vld [vmem:[%s4251_s7 + $0x90] sm:$0xff]  ;;  %2151 = vmatpush.msra.mxu3 %v2078_v27  ;;  %v2265_v27 = vld [vmem:[%s4255_s11 + $0x40] sm:$0xff]  ;;  %s2517_s16 = scalar_lea.hbm %s2516_s0, 1  ;;  %p2522_p0 = scmp.lt.s32.totalorder %s2516_s0, %s4257_s13 }
 0x570   : > { %2171 = vmatpush.msra.mxu0 %v2094_v52  ;;  %v2264_v52 = vld [vmem:[%s4255_s11 + $0x38] sm:$0xff]  ;;  %p2518_p11 = scmp.ne.s32.totalorder %s2516_s0, %s2517_s16  ;;  %p2523_p1 = scmp.lt.s32.totalorder %s2521_s20, %s2517_s16 }
 0x572   : > { %2172 = vmatpush.msra.mxu0 %v2093_v58  ;;  %p2519_p12 = pnand %p2518_p11, %p2708_p5  ;;  %p2524_p2 = por %p2523_p1, %p2522_p0 }
 0x574   : > { %2173 = vmatpush.msra.mxu0 %v2092_v12  ;;  %p2520_p13 = pneg %p2519_p12 }
 0x576   : > { %2065 = vrot.lane.b32.xlu2 %v2063_v53, %s2598_s21  ;;  %2056 = vrot.lane.b32.xlu1 %v2054_v3, %s2599_s15  ;;  %v2110_v3 = vld [vmem:[%s4251_s7 + $0x110] sm:$0xff]  ;;  %s431_s15 = sand.u32 1, %s2555_s26   ;;  %p2525_p3 = pnand %p2524_p2, %p2520_p13 }
 0x577   : > { %2047 = vrot.lane.b32.xlu0 %v2045_v4, %s4294_s1  ;;  %2191 = vmatpush.msra.mxu2 %v2110_v3  ;;  %v2126_v3 = vld [vmem:[%s4252_s8] sm:$0x1]  ;;  %s432_s22 = scalar_lea.vmem [#allocation8], %s431_s15  ;;  %s2296_s24 = scalar_lea.sflag [#allocation9], %s431_s15 }
 0x578   : > { %2274 = vmatpush.msrb.mxu0 %v2272_v55  ;;  %s2306_s1 = sshll.u32 %s432_s22, 4  ;;  %s2307_s1 = int_to_ptr.vmem [resolvable:$true] %s2306_s1 }
 0x579   : > { %2192 = vmatpush.msra.mxu2 %v2109_v7 }
 0x57a   : > { %2275 = vmatpush.msrb.mxu0 %v2271_v56 }
 0x57b   : > { %2193 = vmatpush.msra.mxu2 %v2108_v13 }
 0x5b0   : > { %v1935_v5 = vpop.permute.xlu2 %1934 }
 0x5b1   : > { %1940 = vst.msk [vmem:[#allocation7] sm:$0x1] %vm1939_vm14, %v1935_v5  ;;  %vm3957_vm14 = vcmp.lt.s32.totalorder %v1927_v47, 72  ;;  %v2077_v5 = vld [vmem:[%s4251_s7 + $0x8] sm:$0xff] }
 0x5b2   : > { %vm1995_vm3 = vmand %vm3952_vm13, %vm3957_vm14  ;;  %2152 = vmatpush.msra.mxu3 %v2077_v5  ;;  %vm2033_vm13 = vcmp.lt.s32.totalorder %v1927_v47, 44  ;;  %vm2041_vm14 = vcmp.ge.s32.totalorder %v1927_v47, 44 }
 0x5b4   : > { %2153 = vmatpush.msra.mxu3 %v2076_v10 }
 0x5b6   : > { %2212 = vmatpush.msrb.mxu3 %v2125_v61  ;;  %v2258_v61 = vld [vmem:[%s4255_s11 + $0x8] sm:$0xff] }
 0x5b8   : > { %v1953_v29 = vpop.permute.xlu2 %1952  ;;  %2213 = vmatpush.msrb.mxu3 %v2124_v16  ;;  %v2257_v16 = vld [vmem:[%s4255_s11] sm:$0xff] }
 0x5c0   : > { %v1991_v60 = vpop.permute.xlu2 %1990 }
 0x5c8   : > { %v1971_v34 = vpop.permute.xlu1 %1970  ;;  %v2009_v11 = vpop.permute.xlu2 %2008 }
 0x5c9   : > { %v1944_v37 = vpop.permute.xlu0 %1943  ;;  %v1972_v49 = vrot.slane %v1971_v34, 7 }
 0x5ca   : > { %1949 = vst.msk [vmem:[#allocation7] sm:$0x1] %vm1948_vm12, %v1944_v37  ;;  %vm4011_vm12 = vcmp.ge.s32.totalorder %v1927_v47, 97 }
 0x5cb   : > { %1958 = vst.msk [vmem:[#allocation7] sm:$0x1] %vm1957_vm7, %v1953_v29  ;;  %v1973_v4 = vsel %vm1308_vm4, %v1972_v49, %v1971_v34  ;;  %vm3998_vm4 = vcmp.ge.s32.totalorder %v1927_v47, 72  ;;  %vm4016_vm7 = vcmp.lt.s32.totalorder %v1927_v47, 122  ;;  %v2222_v49 = vld [vmem:[%s4253_s9 + $0x18] sm:$0xff] }
 0x5cc   : > { %vm2004_vm5 = vmand %vm3998_vm4, %vm4003_vm10  ;;  %vm4084_vm4 = vcmp.ge.s32.totalorder %v1927_v47, 69  ;;  %vm4089_vm10 = vcmp.lt.s32.totalorder %v1927_v47, 94  ;;  %2248 = vmatpush.msra.mxu1 %v2222_v49 }
 0x5cd   : > { %vm2013_vm6 = vmand %vm4011_vm12, %vm4016_vm7  ;;  %vm4097_vm12 = vcmp.ge.s32.totalorder %v1927_v47, 94  ;;  %vm4102_vm7 = vcmp.lt.s32.totalorder %v1927_v47, 119 }
 0x5ce   : > { %vm2052_vm9 = vmand %vm4084_vm4, %vm4089_vm10  ;;  %2249 = vmatpush.msra.mxu1 %v2221_v50 }
 0x5d0   : > { %v1982_v1 = vpop.permute.xlu1 %1981  ;;  %v2066_v28 = vpop.permute.xlu2 %2065  ;;  %2250 = vmatpush.msra.mxu1 %v2220_v54 }
 0x5d1   : > { %v1962_v53 = vpop.permute.xlu0 %1961  ;;  %v2067_v34 = vrot.slane %v2066_v28, 7 }
 0x5d2   : > { %1967 = vst.msk [vmem:[#allocation7] sm:$0x1] %vm1966_vm1, %v1962_v53  ;;  %vm2032_vm1 = vcmp.ge.s32.totalorder %v1927_v47, 19  ;;  %2251 = vmatpush.msra.mxu1 %v2219_v57  ;;  %v2263_v53 = vld [vmem:[%s4255_s11 + $0x30] sm:$0xff] }
 0x5d3   : > { %1978 = vst.msk [vmem:[#allocation7] sm:$0x3] %vm1977_vm15, %v1973_v4  ;;  %vm2042_vm15 = vcmp.lt.s32.totalorder %v1927_v47, 69  ;;  %v2069_v36 = vsel %vm2068_vm11, %v2067_v34, %v2066_v28  ;;  %v2262_v4 = vld [vmem:[%s4255_s11 + $0x28] sm:$0xff] }
 0x5d4   : > { %1987 = vst.msk [vmem:[#allocation7 + $0x1] sm:$0x1] %vm1986_vm0, %v1982_v1  ;;  %vm2034_vm0 = vmand %vm2032_vm1, %vm2033_vm13  ;;  %vm2135_vm1 = vcmask 130048   ;;  %v2266_v1 = vld [vmem:[%s4255_s11 + $0x48] sm:$0xff] }
 0x5d5   : > { %1996 = vst.msk [vmem:[#allocation7 + $0x1] sm:$0x1] %vm1995_vm3, %v1991_v60  ;;  %vm2043_vm3 = vmand %vm2041_vm14, %vm2042_vm15  ;;  %v2270_v60 = vld [vmem:[%s4255_s11 + $0x68] sm:$0xff] }
 0x5d6   : > { %2276 = vmatpush.msrb.mxu0 %v2270_v60 }
 0x5d8   : > { %v2000_v17 = vpop.permute.xlu1 %1999  ;;  %2277 = vmatpush.msrb.mxu0 %v2269_v63 }
 0x5d9   : > { %2005 = vst.msk [vmem:[#allocation7 + $0x1] sm:$0x1] %vm2004_vm5, %v2000_v17  ;;  %v2018_v59 = vpop.permute.xlu0 %2017  ;;  %vm4107_vm5 = vcmp.ge.s32.totalorder %v1927_v47, 119  ;;  %v2235_v17 = vld [vmem:[%s4254_s10] sm:$0x1] }
 0x5da   : > { %2014 = vst.msk [vmem:[#allocation7 + $0x1] sm:$0x1] %vm2013_vm6, %v2009_v11  ;;  %v2019_v19 = vrot.slane %v2018_v59, 7  ;;  %vm2072_vm6 = vcmp.lt.s32.totalorder %v1927_v47, 144  ;;  %2278 = vmatpush.msrb.mxu0 %v2268_v0 }
 0x5dc   : > { %v2021_v20 = vsel %vm2020_vm8, %v2019_v19, %v2018_v59  ;;  %vm2061_vm8 = vmand %vm4097_vm12, %vm4102_vm7  ;;  %2279 = vmatpush.msrb.mxu0 %v2267_v2 }
 0x5dd   : > { %2026 = vst.msk [vmem:[#allocation7 + $0x1] sm:$0x3] %vm2025_vm2, %v2021_v20  ;;  %vm2073_vm2 = vmand %vm4107_vm5, %vm2072_vm6  ;;  %v2273_v20 = vld [vmem:[%s4256_s12] sm:$0x1] }
 0x5de   : > { %2280 = vmatpush.msrb.mxu0 %v2266_v1 }
 0x5e0   : > { %v2039_v23 = vpop.permute.xlu1 %2038  ;;  %2281 = vmatpush.msrb.mxu0 %v2265_v27 }
 0x5e1   : > { %v2030_v18 = vpop.permute.xlu0 %2029 }
 0x5e2   : > { %2035 = vst.msk [vmem:[#allocation7 + $0x2] sm:$0x1] %vm2034_vm0, %v2030_v18  ;;  %2282 = vmatpush.msrb.mxu0 %v2264_v52 }
 0x5e3   : > { %2044 = vst.msk [vmem:[#allocation7 + $0x2] sm:$0x1] %vm2043_vm3, %v2039_v23 }
 0x5e4   : > { %2283 = vmatpush.msrb.mxu0 %v2263_v53 }
 0x5e6   : > { %2284 = vmatpush.msrb.mxu0 %v2262_v4 }
 0x5e8   : > { %v2057_v35 = vpop.permute.xlu1 %2056  ;;  %2285 = vmatpush.msrb.mxu0 %v2261_v62 }
 0x5e9   : > { %v2048_v47 = vpop.permute.xlu0 %2047 }
 0x5ea   : > { %2053 = vst.msk [vmem:[#allocation7 + $0x2] sm:$0x1] %vm2052_vm9, %v2048_v47  ;;  %2286 = vmatpush.msrb.mxu0 %v2260_v8 }
 0x5eb   : > { %2062 = vst.msk [vmem:[#allocation7 + $0x2] sm:$0x1] %vm2061_vm8, %v2057_v35 }
 0x5ec   : > { %2074 = vst.msk [vmem:[#allocation7 + $0x2] sm:$0x3] %vm2073_vm2, %v2069_v36  ;;  %2287 = vmatpush.msrb.mxu0 %v2259_v15 }
 0x5ee   : > { %2288 = vmatpush.msrb.mxu0 %v2258_v61 }
 0x5f0   : > { %2289 = vmatpush.msrb.mxu0 %v2257_v16 }
 0x5f3   : > { %v2075_v37 = vld [vmem:[#allocation7] sm:$0xf] }
 0x5f4   : > { %v2128_v38 = vperm.slane %v2075_v37, 0  ;;  %v2129_v39 = vperm.slane %v2075_v37, 1  ;;  %v2130_v40 = vperm.slane %v2075_v37, 2  ;;  %v2131_v41 = vperm.slane %v2075_v37, 3 }
 0x5f6   : > { %2154 = vmatmul.f32.vlgmr.msra.gmra.mxu3 %v2128_v38  ;;  %2174 = vmatmul.f32.vlgmr.msra.gmra.mxu0 %v2129_v39 }
 0x5f7   : > { %2194 = vmatmul.f32.vlgmr.msra.gmra.mxu2 %v2130_v40 }
 0x5fe   : > { %2395 = vmatmul.msk.f32.vlgmr.msrb.gmra.mxu3 %vm2135_vm1, %v2131_v41 }
 0x673   : > { %v2175_v6 = vpop.f32.mrf.mxu0 }
 0x679   : > { %v2155_v5 = vpop.f32.mrf.mxu3 }
 0x67a   : > { %v2156_v58 = vadd.f32 %v2155_v5, %v2126_v3  ;;  %v2195_v9 = vpop.f32.mrf.mxu2 }
 0x67c   : > { %v2176_v7 = vadd.f32 %v2175_v6, %v2156_v58 }
 0x67e   : > { %v2196_v10 = vadd.f32 %v2195_v9, %v2176_v7 }
 0x681   : > { %v2215_v12 = vpop.f32.mrf.mxu3 }
 0x682   : > { %v2216_v13 = vadd.f32 %v2215_v12, %v2196_v10 }
 0x684   : > { %v2218_v51 = vmax.f32 %v2216_v13, 0.0 }
 0x686   : > { %2252 = vmatmul.f32.vlgmr.msra.gmra.mxu1 %v2218_v51 }
 0x703   : > { %v2253_v11 = vpop.f32.mrf.mxu1 }
 0x704   : > { %v2254_v59 = vadd.f32 %v2253_v11, %v2235_v17 }
 0x706   : > { %v2256_v19 = vmax.f32 %v2254_v59, 0.0 }
 0x708   : > { %2290 = vmatmul.f32.vlgmr.msrb.gmra.mxu0 %v2256_v19 }
 0x785   : > { %v2291_v21 = vpop.f32.mrf.mxu0 }
 0x786   : > { %v2292_v22 = vadd.f32 %v2291_v21, %v2273_v20 }
 0x788   : > { %2294 = vst [vmem:[%s432_s22] sm:$0x1] %v2292_v22 }
 0x789   : > { %2528 = shalt.err (!%p2525_p3)
}
 0x78a   : > { %2399 = dma.vmem_to_hbm [thread:$0]  (%p2708_p5), %s2307_s1, 16, %s2309_s4, %s2296_s24  }
 0x78b PF: > { %p2405_p4 = scmp.ge.s32.totalorder %s2563_s28, 2  ;;  %s2320_s15 = sand.u32 1, %s2551_s25  }
 0x78c   : > { %s2321_s2 = scalar_lea.sflag [#allocation9], %s2320_s15 }
 0x78d   : > { %p2402_p7 = pnand %p2405_p4, %p2712_p6 }
 0x78f   : > { %p2403_p8 = pneg %p2402_p7 }
 0x791   : > { %2546 = dma.done.wait (%p2403_p8), %s2321_s2, 16  }
 0x792   : > { %2548 = vsyncadd (%p2403_p8), %s2321_s2, 4294967280  ;;  %p23_p9 = scmp.ge.s32.totalorder %s2695_s14, 4   ;;  %s4347_s25 = smov %s2555_s26 }
 0x793   : > { %s4348_s26 = smov %s2559_s27  ;;  %s4349_s27 = smov %s2706_s17 }
 0x794   : > { %s4350_s28 = smov %s2695_s14  ;;  %25 = sbr.rel (!%p23_p9) target bundleno = 9 (0x9), region = 107 }
 0x799   :  { %2326 = vsyncpa [#allocation9], 1 }
 0x79a   :  { %2328 = vsyncpa [#allocation9 + $0x1], 1 }

</bundles_post_ra>
